<compile_context>
chip_gen: v7x
topology: tpu7x:2x2x1
jax: 0.10.0
libtpu: 0.0.40
codegen_flags: <defaults>
</compile_context>

<pallas_src>
import jax
import jax.numpy as jnp
import numpy as np
from jax import lax
from jax.experimental import pallas as pl
from jax.experimental.pallas import tpu as pltpu

C1 = 16              # conv1 output channels
C2 = 32              # conv2 output channels
KSZ = 5              # conv kernel size
P1 = 32              # conv1 patch features (25 -> padded to 32, zero rows in w1)
P2 = 25 * C1         # conv2 patch features (= 400)
WPAD = 16            # pooled conv1 map width padded 12 -> 16 (multiple of 8 sublanes)
ROWS1 = 4 * 12 * WPAD  # conv1 GEMM rows per image (pool-offset major) = 768


# ----------------------------------------------------------------------------
# Fused Pallas kernel: the entire Net forward for one tile of TB images
# ----------------------------------------------------------------------------
def fused_net_kernel(p1_ref, w1_ref, b1_ref, w2_ref, b2_ref,
                     fw1_ref, fb1_ref, fw2_ref, fb2_ref,
                     out_ref,
                     y1map_ref, p2_ref, feat_ref):
    TB = out_ref.shape[0]

    # ---- conv1 as ONE GEMM over all (image, pool-offset, spatial) rows ------
    # p1 rows are ordered (b, pool_offset, oh, ow_padded) so the 2x2 max-pool
    # becomes a max over 4 leading-dim slices (pure VPU, no relayout).
    y1 = jnp.dot(p1_ref[...], w1_ref[...],
                 preferred_element_type=jnp.float32)            # (TB*768, 16)
    y1 = y1.reshape(TB, 4, 12 * WPAD, C1)
    pooled1 = jnp.maximum(jnp.maximum(y1[:, 0], y1[:, 1]),
                          jnp.maximum(y1[:, 2], y1[:, 3]))       # 2x2 max-pool
    pooled1 = jnp.maximum(pooled1 + b1_ref[...], 0.0)            # bias + ReLU
    y1map_ref[...] = pooled1.reshape(TB, 12, WPAD, C1)           # 12x12 map (w padded)

    # ---- in-kernel im2col for conv2: 25 static windows of the VMEM map ------
    for t in range(25):
        kh, kw = t // KSZ, t % KSZ
        p2_ref[:, :, :, t * C1:(t + 1) * C1] = \
            y1map_ref[:, kh:kh + 8, kw:kw + 8, :]

    # ---- conv2 as ONE GEMM (M = TB*64, K = 400) ------------------------------
    y2 = jnp.dot(p2_ref[...].reshape(TB * 64, P2), w2_ref[...],
                 preferred_element_type=jnp.float32)             # (TB*64, 32)
    y2 = y2.reshape(TB, 8, 8, C2)                                # (b, h, w, c)
    # TODO(synk): Dropout2d is identity in eval mode; stochastic channel dropout not implemented.

    # ---- 2x2 max-pool + bias + ReLU + flatten to (h, w, c) order in VMEM ----
    for ph in range(4):
        row = jnp.maximum(y2[:, 2 * ph], y2[:, 2 * ph + 1])          # (TB, 8, C2)
        for pw in range(4):
            v = jnp.maximum(row[:, 2 * pw, :], row[:, 2 * pw + 1, :])  # (TB, C2)
            v = jnp.maximum(v + b2_ref[...], 0.0)
            feat_ref[:, (ph * 4 + pw) * C2:(ph * 4 + pw + 1) * C2] = v

    # ---- fc1 -> fc2 -> log_softmax -------------------------------------------
    h = jnp.dot(feat_ref[...], fw1_ref[...],
                preferred_element_type=jnp.float32) + fb1_ref[...]   # (TB, 50)
    logits = jnp.dot(h, fw2_ref[...],
                     preferred_element_type=jnp.float32) + fb2_ref[...]  # (TB, 10)
    m = jnp.max(logits, axis=-1, keepdims=True)
    z = logits - m
    lse = jnp.log(jnp.sum(jnp.exp(z), axis=-1, keepdims=True))
    out_ref[...] = (z - lse).astype(out_ref.dtype)


# ----------------------------------------------------------------------------
# Plain-JAX glue: conv1 im2col (pool-offset major, lane-padded) + param prep
# ----------------------------------------------------------------------------
def _conv1_patches(x_img):
    """x_img: (B, 28, 28) -> (B*768, 32) im2col rows.

    Row order (b, pool_offset=dh*2+dw, oh, ow_padded); feature order (kh, kw)
    padded 25->32.  The pooled-map width is padded 12->16 so every in-kernel
    row group aligns to the 8-sublane tile (padded rows are never read).
    """
    B = x_img.shape[0]
    cols = jnp.stack([x_img[:, kh:kh + 24, kw:kw + 24]
                      for kh in range(KSZ) for kw in range(KSZ)],
                     axis=-1)                                        # (B,24,24,25)
    cols = jnp.pad(cols, ((0, 0), (0, 0), (0, 0), (0, P1 - 25)))     # pad P 25->32
    cols = cols.reshape(B, 12, 2, 12, 2, P1)                         # (b,oh,dh,ow,dw,p)
    cols = cols.transpose(0, 2, 4, 1, 3, 5)                          # (b,dh,dw,oh,ow,p)
    cols = jnp.pad(cols, ((0, 0), (0, 0), (0, 0), (0, 0), (0, WPAD - 12), (0, 0)))
    return cols.reshape(B * ROWS1, P1)


def net_forward(x_nchw, p, tile_b=8):
    """Forward pass matching Net.forward (eval mode). x_nchw: (B, 1, 28, 28)."""
    B = x_nchw.shape[0]
    TB = tile_b if B >= tile_b else B          # TB=8 (divisible by 8) or whole batch
    Bp = ((B + TB - 1) // TB) * TB

    # --- one-time weight plumbing (traced once, negligible) ---
    w1g = jnp.pad(p["conv1_w"].transpose(2, 3, 1, 0).reshape(25, C1),
                  ((0, P1 - 25), (0, 0)))                            # (32, 16)
    b1g = p["conv1_b"].reshape(1, C1)
    w2g = p["conv2_w"].transpose(2, 3, 1, 0).reshape(P2, C2)         # (400, 32)
    b2g = p["conv2_b"].reshape(1, C2)
    # fold PyTorch's (c, h, w) flatten into fc1 weights -> no activation transpose
    fw1g = p["fc1_w"].reshape(50, C2, 4, 4).transpose(0, 2, 3, 1).reshape(50, 512).T
    fb1g = p["fc1_b"].reshape(1, 50)
    fw2g = p["fc2_w"].T                                              # (50, 10)
    fb2g = p["fc2_b"].reshape(1, 10)

    x = x_nchw.reshape(B, 28, 28)
    if Bp != B:
        x = jnp.concatenate([x, jnp.zeros((Bp - B, 28, 28), x.dtype)], axis=0)
    patches1 = _conv1_patches(x)                                     # (Bp*768, 32)

    out = pl.pallas_call(
        fused_net_kernel,
        out_shape=jax.ShapeDtypeStruct((Bp, 10), jnp.float32),
        grid=(Bp // TB,),
        in_specs=[
            pl.BlockSpec((TB * ROWS1, P1), lambda i: (i, 0)),
            pl.BlockSpec((P1, C1), lambda i: (0, 0)),
            pl.BlockSpec((1, C1), lambda i: (0, 0)),
            pl.BlockSpec((P2, C2), lambda i: (0, 0)),
            pl.BlockSpec((1, C2), lambda i: (0, 0)),
            pl.BlockSpec((512, 50), lambda i: (0, 0)),
            pl.BlockSpec((1, 50), lambda i: (0, 0)),
            pl.BlockSpec((50, 10), lambda i: (0, 0)),
            pl.BlockSpec((1, 10), lambda i: (0, 0)),
        ],
        out_specs=pl.BlockSpec((TB, 10), lambda i: (i, 0)),
        scratch_shapes=[
            pltpu.VMEM((TB, 12, WPAD, C1), jnp.float32),   # pooled conv1 map
            pltpu.VMEM((TB, 8, 8, P2), jnp.float32),       # conv2 im2col patches
            pltpu.VMEM((TB, 512), jnp.float32),            # flattened fc input
        ],
        compiler_params=pltpu.CompilerParams(
            dimension_semantics=("parallel",),   # >=2 batch tiles -> both v7x TCs
            vmem_limit_bytes=48 * 1024 * 1024,   # headroom for TB=8 on v5e's 16 MiB default
        ),
    )(patches1, w1g, b1g, w2g, b2g, fw1g, fb1g, fw2g, fb2g)
    return out[:B]


net_forward_jit = jax.jit(net_forward)


# ----------------------------------------------------------------------------
# Parameters + pure-JAX reference (for correctness check)
# ----------------------------------------------------------------------------
def init_params(key):
    ks = jax.random.split(key, 8)
    s = 0.1
    return {
        "conv1_w": jax.random.normal(ks[0], (16, 1, 5, 5), jnp.float32) * s,
        "conv1_b": jax.random.normal(ks[1], (16,), jnp.float32) * s,
        "conv2_w": jax.random.normal(ks[2], (32, 16, 5, 5), jnp.float32) * s,
        "conv2_b": jax.random.normal(ks[3], (32,), jnp.float32) * s,
        "fc1_w": jax.random.normal(ks[4], (50, 512), jnp.float32) * s,
        "fc1_b": jax.random.normal(ks[5], (50,), jnp.float32) * s,
        "fc2_w": jax.random.normal(ks[6], (10, 50), jnp.float32) * s,
        "fc2_b": jax.random.normal(ks[7], (10,), jnp.float32) * s,
    }


def reference_forward(x, p):
    dn = ("NCHW", "OIHW", "NCHW")

    def pool(y):
        return lax.reduce_window(y, -jnp.inf, lax.max,
                                 (1, 1, 2, 2), (1, 1, 2, 2), "VALID")

    y = lax.conv_general_dilated(x, p["conv1_w"], (1, 1), "VALID",
                                 dimension_numbers=dn)
    y = y + p["conv1_b"].reshape(1, 16, 1, 1)
    y = jnp.maximum(pool(y), 0.0)
    y = lax.conv_general_dilated(y, p["conv2_w"], (1, 1), "VALID",
                                 dimension_numbers=dn)
    y = y + p["conv2_b"].reshape(1, 32, 1, 1)
    y = jnp.maximum(pool(y), 0.0)
    y = y.reshape(-1, 512)
    y = y @ p["fc1_w"].T + p["fc1_b"]
    y = y @ p["fc2_w"].T + p["fc2_b"]
    return jax.nn.log_softmax(y, axis=1)


if __name__ == "__main__":
    key = jax.random.PRNGKey(0)
    kx, kp = jax.random.split(key)
    x = jax.random.normal(kx, (2, 1, 28, 28), jnp.float32)   # MNIST-sized input
    params = init_params(kp)

    out = jax.block_until_ready(net_forward_jit(x, params))
    ref = jax.block_until_ready(reference_forward(x, params))

    assert out.shape == (2, 10)
    np.testing.assert_allclose(np.asarray(out), np.asarray(ref),
                               rtol=2e-4, atol=2e-4)
    print("KERNEL_OK")
</pallas_src>

<mosaic_0001>
module attributes {stable_mosaic.version = 11 : i64} {
  func.func @fused_net_kernel(%arg0: i32, %arg1: memref<1536x32xf32, #tpu.memory_space<vmem>>, %arg2: memref<32x16xf32, #tpu.memory_space<vmem>>, %arg3: memref<1x16xf32, #tpu.memory_space<vmem>>, %arg4: memref<400x32xf32, #tpu.memory_space<vmem>>, %arg5: memref<1x32xf32, #tpu.memory_space<vmem>>, %arg6: memref<512x50xf32, #tpu.memory_space<vmem>>, %arg7: memref<1x50xf32, #tpu.memory_space<vmem>>, %arg8: memref<50x10xf32, #tpu.memory_space<vmem>>, %arg9: memref<1x10xf32, #tpu.memory_space<vmem>>, %arg10: memref<2x10xf32, #tpu.memory_space<vmem>>, %arg11: memref<2x12x16x16xf32, #tpu.memory_space<vmem>>, %arg12: memref<2x8x8x400xf32, #tpu.memory_space<vmem>>, %arg13: memref<2x512xf32, #tpu.memory_space<vmem>>) attributes {dimension_semantics = [#tpu.dimension_semantics<parallel>], iteration_bounds = array<i64: 1>, scalar_prefetch = 0 : i64, scratch_operands = 3 : i64, tpu.core_type = #tpu.core_type<tc>, window_params = [{transform_indices = @transform_0, window_bounds = array<i64: 1536, 32>}, {pipeline_mode = #tpu.pipeline_mode<synchronous>, transform_indices = @transform_1, window_bounds = array<i64: 32, 16>}, {pipeline_mode = #tpu.pipeline_mode<synchronous>, transform_indices = @transform_2, window_bounds = array<i64: 1, 16>}, {pipeline_mode = #tpu.pipeline_mode<synchronous>, transform_indices = @transform_3, window_bounds = array<i64: 400, 32>}, {pipeline_mode = #tpu.pipeline_mode<synchronous>, transform_indices = @transform_4, window_bounds = array<i64: 1, 32>}, {pipeline_mode = #tpu.pipeline_mode<synchronous>, transform_indices = @transform_5, window_bounds = array<i64: 512, 50>}, {pipeline_mode = #tpu.pipeline_mode<synchronous>, transform_indices = @transform_6, window_bounds = array<i64: 1, 50>}, {pipeline_mode = #tpu.pipeline_mode<synchronous>, transform_indices = @transform_7, window_bounds = array<i64: 50, 10>}, {pipeline_mode = #tpu.pipeline_mode<synchronous>, transform_indices = @transform_8, window_bounds = array<i64: 1, 10>}, {transform_indices = @transform_9, window_bounds = array<i64: 2, 10>}]} {
    %c0 = arith.constant 0 : index
    %c0_0 = arith.constant 0 : index
    %0 = vector.load %arg1[%c0, %c0_0] : memref<1536x32xf32, #tpu.memory_space<vmem>>, vector<1536x32xf32>
    %c0_1 = arith.constant 0 : index
    %c0_2 = arith.constant 0 : index
    %1 = vector.load %arg2[%c0_1, %c0_2] : memref<32x16xf32, #tpu.memory_space<vmem>>, vector<32x16xf32>
    %cst = arith.constant dense<0.000000e+00> : vector<1536x16xf32>
    %2 = tpu.matmul %0, %1, %cst {dimension_numbers = #tpu.dot_dimension_numbers<[1], [0], [0], [1], [0, 0, 1, 1], [], []>} : vector<1536x32xf32>, vector<32x16xf32>, vector<1536x16xf32> -> vector<1536x16xf32>
    %3 = vector.shape_cast %2 : vector<1536x16xf32> to vector<2x4x192x16xf32>
    %4 = vector.extract_strided_slice %3 {offsets = [0, 0, 0, 0], sizes = [2, 1, 192, 16], strides = [1, 1, 1, 1]} : vector<2x4x192x16xf32> to vector<2x1x192x16xf32>
    %5 = vector.shape_cast %4 : vector<2x1x192x16xf32> to vector<2x192x16xf32>
    %6 = vector.extract_strided_slice %3 {offsets = [0, 1, 0, 0], sizes = [2, 1, 192, 16], strides = [1, 1, 1, 1]} : vector<2x4x192x16xf32> to vector<2x1x192x16xf32>
    %7 = vector.shape_cast %6 : vector<2x1x192x16xf32> to vector<2x192x16xf32>
    %8 = arith.maximumf %5, %7 : vector<2x192x16xf32>
    %9 = vector.extract_strided_slice %3 {offsets = [0, 2, 0, 0], sizes = [2, 1, 192, 16], strides = [1, 1, 1, 1]} : vector<2x4x192x16xf32> to vector<2x1x192x16xf32>
    %10 = vector.shape_cast %9 : vector<2x1x192x16xf32> to vector<2x192x16xf32>
    %11 = vector.extract_strided_slice %3 {offsets = [0, 3, 0, 0], sizes = [2, 1, 192, 16], strides = [1, 1, 1, 1]} : vector<2x4x192x16xf32> to vector<2x1x192x16xf32>
    %12 = vector.shape_cast %11 : vector<2x1x192x16xf32> to vector<2x192x16xf32>
    %13 = arith.maximumf %10, %12 : vector<2x192x16xf32>
    %14 = arith.maximumf %8, %13 : vector<2x192x16xf32>
    %c0_3 = arith.constant 0 : index
    %c0_4 = arith.constant 0 : index
    %15 = vector.load %arg3[%c0_3, %c0_4] : memref<1x16xf32, #tpu.memory_space<vmem>>, vector<1x16xf32>
    %16 = vector.shape_cast %15 : vector<1x16xf32> to vector<1x1x16xf32>
    %17 = vector.broadcast %16 : vector<1x1x16xf32> to vector<2x192x16xf32>
    %18 = arith.addf %14, %17 : vector<2x192x16xf32>
    %cst_5 = arith.constant 0.000000e+00 : f32
    %19 = vector.broadcast %cst_5 : f32 to vector<2x192x16xf32>
    %20 = arith.maximumf %18, %19 : vector<2x192x16xf32>
    %21 = vector.shape_cast %20 : vector<2x192x16xf32> to vector<2x12x16x16xf32>
    %c0_6 = arith.constant 0 : index
    %c0_7 = arith.constant 0 : index
    %c0_8 = arith.constant 0 : index
    %c0_9 = arith.constant 0 : index
    %22 = vector.load %arg11[%c0_6, %c0_7, %c0_8, %c0_9] : memref<2x12x16x16xf32, #tpu.memory_space<vmem>>, vector<2x12x16x16xf32>
    tpu.vector_store %arg11[%c0_6, %c0_7, %c0_8, %c0_9], %21 {strides = array<i32>} : memref<2x12x16x16xf32, #tpu.memory_space<vmem>>, vector<2x12x16x16xf32>,
    %c0_10 = arith.constant 0 : index
    %c0_11 = arith.constant 0 : index
    %c0_12 = arith.constant 0 : index
    %c0_13 = arith.constant 0 : index
    %23 = vector.load %arg11[%c0_10, %c0_11, %c0_12, %c0_13] : memref<2x12x16x16xf32, #tpu.memory_space<vmem>>, vector<2x8x8x16xf32>
    %c0_14 = arith.constant 0 : index
    %c0_15 = arith.constant 0 : index
    %c0_16 = arith.constant 0 : index
    %c0_17 = arith.constant 0 : index
    %24 = vector.load %arg12[%c0_14, %c0_15, %c0_16, %c0_17] : memref<2x8x8x400xf32, #tpu.memory_space<vmem>>, vector<2x8x8x16xf32>
    tpu.vector_store %arg12[%c0_14, %c0_15, %c0_16, %c0_17], %23 {strides = array<i32>} : memref<2x8x8x400xf32, #tpu.memory_space<vmem>>, vector<2x8x8x16xf32>,
    %c0_18 = arith.constant 0 : index
    %c0_19 = arith.constant 0 : index
    %c1 = arith.constant 1 : index
    %c0_20 = arith.constant 0 : index
    %25 = vector.load %arg11[%c0_18, %c0_19, %c1, %c0_20] : memref<2x12x16x16xf32, #tpu.memory_space<vmem>>, vector<2x8x8x16xf32>
    %c0_21 = arith.constant 0 : index
    %c0_22 = arith.constant 0 : index
    %c0_23 = arith.constant 0 : index
    %c16 = arith.constant 16 : index
    %26 = vector.load %arg12[%c0_21, %c0_22, %c0_23, %c16] : memref<2x8x8x400xf32, #tpu.memory_space<vmem>>, vector<2x8x8x16xf32>
    tpu.vector_store %arg12[%c0_21, %c0_22, %c0_23, %c16], %25 {strides = array<i32>} : memref<2x8x8x400xf32, #tpu.memory_space<vmem>>, vector<2x8x8x16xf32>,
    %c0_24 = arith.constant 0 : index
    %c0_25 = arith.constant 0 : index
    %c2 = arith.constant 2 : index
    %c0_26 = arith.constant 0 : index
    %27 = vector.load %arg11[%c0_24, %c0_25, %c2, %c0_26] : memref<2x12x16x16xf32, #tpu.memory_space<vmem>>, vector<2x8x8x16xf32>
    %c0_27 = arith.constant 0 : index
    %c0_28 = arith.constant 0 : index
    %c0_29 = arith.constant 0 : index
    %c32 = arith.constant 32 : index
    %28 = vector.load %arg12[%c0_27, %c0_28, %c0_29, %c32] : memref<2x8x8x400xf32, #tpu.memory_space<vmem>>, vector<2x8x8x16xf32>
    tpu.vector_store %arg12[%c0_27, %c0_28, %c0_29, %c32], %27 {strides = array<i32>} : memref<2x8x8x400xf32, #tpu.memory_space<vmem>>, vector<2x8x8x16xf32>,
    %c0_30 = arith.constant 0 : index
    %c0_31 = arith.constant 0 : index
    %c3 = arith.constant 3 : index
    %c0_32 = arith.constant 0 : index
    %29 = vector.load %arg11[%c0_30, %c0_31, %c3, %c0_32] : memref<2x12x16x16xf32, #tpu.memory_space<vmem>>, vector<2x8x8x16xf32>
    %c0_33 = arith.constant 0 : index
    %c0_34 = arith.constant 0 : index
    %c0_35 = arith.constant 0 : index
    %c48 = arith.constant 48 : index
    %30 = vector.load %arg12[%c0_33, %c0_34, %c0_35, %c48] : memref<2x8x8x400xf32, #tpu.memory_space<vmem>>, vector<2x8x8x16xf32>
    tpu.vector_store %arg12[%c0_33, %c0_34, %c0_35, %c48], %29 {strides = array<i32>} : memref<2x8x8x400xf32, #tpu.memory_space<vmem>>, vector<2x8x8x16xf32>,
    %c0_36 = arith.constant 0 : index
    %c0_37 = arith.constant 0 : index
    %c4 = arith.constant 4 : index
    %c0_38 = arith.constant 0 : index
    %31 = vector.load %arg11[%c0_36, %c0_37, %c4, %c0_38] : memref<2x12x16x16xf32, #tpu.memory_space<vmem>>, vector<2x8x8x16xf32>
    %c0_39 = arith.constant 0 : index
    %c0_40 = arith.constant 0 : index
    %c0_41 = arith.constant 0 : index
    %c64 = arith.constant 64 : index
    %32 = vector.load %arg12[%c0_39, %c0_40, %c0_41, %c64] : memref<2x8x8x400xf32, #tpu.memory_space<vmem>>, vector<2x8x8x16xf32>
    tpu.vector_store %arg12[%c0_39, %c0_40, %c0_41, %c64], %31 {strides = array<i32>} : memref<2x8x8x400xf32, #tpu.memory_space<vmem>>, vector<2x8x8x16xf32>,
    %c0_42 = arith.constant 0 : index
    %c1_43 = arith.constant 1 : index
    %c0_44 = arith.constant 0 : index
    %c0_45 = arith.constant 0 : index
    %33 = vector.load %arg11[%c0_42, %c1_43, %c0_44, %c0_45] : memref<2x12x16x16xf32, #tpu.memory_space<vmem>>, vector<2x8x8x16xf32>
    %c0_46 = arith.constant 0 : index
    %c0_47 = arith.constant 0 : index
    %c0_48 = arith.constant 0 : index
    %c80 = arith.constant 80 : index
    %34 = vector.load %arg12[%c0_46, %c0_47, %c0_48, %c80] : memref<2x8x8x400xf32, #tpu.memory_space<vmem>>, vector<2x8x8x16xf32>
    tpu.vector_store %arg12[%c0_46, %c0_47, %c0_48, %c80], %33 {strides = array<i32>} : memref<2x8x8x400xf32, #tpu.memory_space<vmem>>, vector<2x8x8x16xf32>,
    %c0_49 = arith.constant 0 : index
    %c1_50 = arith.constant 1 : index
    %c1_51 = arith.constant 1 : index
    %c0_52 = arith.constant 0 : index
    %35 = vector.load %arg11[%c0_49, %c1_50, %c1_51, %c0_52] : memref<2x12x16x16xf32, #tpu.memory_space<vmem>>, vector<2x8x8x16xf32>
    %c0_53 = arith.constant 0 : index
    %c0_54 = arith.constant 0 : index
    %c0_55 = arith.constant 0 : index
    %c96 = arith.constant 96 : index
    %36 = vector.load %arg12[%c0_53, %c0_54, %c0_55, %c96] : memref<2x8x8x400xf32, #tpu.memory_space<vmem>>, vector<2x8x8x16xf32>
    tpu.vector_store %arg12[%c0_53, %c0_54, %c0_55, %c96], %35 {strides = array<i32>} : memref<2x8x8x400xf32, #tpu.memory_space<vmem>>, vector<2x8x8x16xf32>,
    %c0_56 = arith.constant 0 : index
    %c1_57 = arith.constant 1 : index
    %c2_58 = arith.constant 2 : index
    %c0_59 = arith.constant 0 : index
    %37 = vector.load %arg11[%c0_56, %c1_57, %c2_58, %c0_59] : memref<2x12x16x16xf32, #tpu.memory_space<vmem>>, vector<2x8x8x16xf32>
    %c0_60 = arith.constant 0 : index
    %c0_61 = arith.constant 0 : index
    %c0_62 = arith.constant 0 : index
    %c112 = arith.constant 112 : index
    %38 = vector.load %arg12[%c0_60, %c0_61, %c0_62, %c112] : memref<2x8x8x400xf32, #tpu.memory_space<vmem>>, vector<2x8x8x16xf32>
    tpu.vector_store %arg12[%c0_60, %c0_61, %c0_62, %c112], %37 {strides = array<i32>} : memref<2x8x8x400xf32, #tpu.memory_space<vmem>>, vector<2x8x8x16xf32>,
    %c0_63 = arith.constant 0 : index
    %c1_64 = arith.constant 1 : index
    %c3_65 = arith.constant 3 : index
    %c0_66 = arith.constant 0 : index
    %39 = vector.load %arg11[%c0_63, %c1_64, %c3_65, %c0_66] : memref<2x12x16x16xf32, #tpu.memory_space<vmem>>, vector<2x8x8x16xf32>
    %c0_67 = arith.constant 0 : index
    %c0_68 = arith.constant 0 : index
    %c0_69 = arith.constant 0 : index
    %c128 = arith.constant 128 : index
    %40 = vector.load %arg12[%c0_67, %c0_68, %c0_69, %c128] : memref<2x8x8x400xf32, #tpu.memory_space<vmem>>, vector<2x8x8x16xf32>
    tpu.vector_store %arg12[%c0_67, %c0_68, %c0_69, %c128], %39 {strides = array<i32>} : memref<2x8x8x400xf32, #tpu.memory_space<vmem>>, vector<2x8x8x16xf32>,
    %c0_70 = arith.constant 0 : index
    %c1_71 = arith.constant 1 : index
    %c4_72 = arith.constant 4 : index
    %c0_73 = arith.constant 0 : index
    %41 = vector.load %arg11[%c0_70, %c1_71, %c4_72, %c0_73] : memref<2x12x16x16xf32, #tpu.memory_space<vmem>>, vector<2x8x8x16xf32>
    %c0_74 = arith.constant 0 : index
    %c0_75 = arith.constant 0 : index
    %c0_76 = arith.constant 0 : index
    %c144 = arith.constant 144 : index
    %42 = vector.load %arg12[%c0_74, %c0_75, %c0_76, %c144] : memref<2x8x8x400xf32, #tpu.memory_space<vmem>>, vector<2x8x8x16xf32>
    tpu.vector_store %arg12[%c0_74, %c0_75, %c0_76, %c144], %41 {strides = array<i32>} : memref<2x8x8x400xf32, #tpu.memory_space<vmem>>, vector<2x8x8x16xf32>,
    %c0_77 = arith.constant 0 : index
    %c2_78 = arith.constant 2 : index
    %c0_79 = arith.constant 0 : index
    %c0_80 = arith.constant 0 : index
    %43 = vector.load %arg11[%c0_77, %c2_78, %c0_79, %c0_80] : memref<2x12x16x16xf32, #tpu.memory_space<vmem>>, vector<2x8x8x16xf32>
    %c0_81 = arith.constant 0 : index
    %c0_82 = arith.constant 0 : index
    %c0_83 = arith.constant 0 : index
    %c160 = arith.constant 160 : index
    %44 = vector.load %arg12[%c0_81, %c0_82, %c0_83, %c160] : memref<2x8x8x400xf32, #tpu.memory_space<vmem>>, vector<2x8x8x16xf32>
    tpu.vector_store %arg12[%c0_81, %c0_82, %c0_83, %c160], %43 {strides = array<i32>} : memref<2x8x8x400xf32, #tpu.memory_space<vmem>>, vector<2x8x8x16xf32>,
    %c0_84 = arith.constant 0 : index
    %c2_85 = arith.constant 2 : index
    %c1_86 = arith.constant 1 : index
    %c0_87 = arith.constant 0 : index
    %45 = vector.load %arg11[%c0_84, %c2_85, %c1_86, %c0_87] : memref<2x12x16x16xf32, #tpu.memory_space<vmem>>, vector<2x8x8x16xf32>
    %c0_88 = arith.constant 0 : index
    %c0_89 = arith.constant 0 : index
    %c0_90 = arith.constant 0 : index
    %c176 = arith.constant 176 : index
    %46 = vector.load %arg12[%c0_88, %c0_89, %c0_90, %c176] : memref<2x8x8x400xf32, #tpu.memory_space<vmem>>, vector<2x8x8x16xf32>
    tpu.vector_store %arg12[%c0_88, %c0_89, %c0_90, %c176], %45 {strides = array<i32>} : memref<2x8x8x400xf32, #tpu.memory_space<vmem>>, vector<2x8x8x16xf32>,
    %c0_91 = arith.constant 0 : index
    %c2_92 = arith.constant 2 : index
    %c2_93 = arith.constant 2 : index
    %c0_94 = arith.constant 0 : index
    %47 = vector.load %arg11[%c0_91, %c2_92, %c2_93, %c0_94] : memref<2x12x16x16xf32, #tpu.memory_space<vmem>>, vector<2x8x8x16xf32>
    %c0_95 = arith.constant 0 : index
    %c0_96 = arith.constant 0 : index
    %c0_97 = arith.constant 0 : index
    %c192 = arith.constant 192 : index
    %48 = vector.load %arg12[%c0_95, %c0_96, %c0_97, %c192] : memref<2x8x8x400xf32, #tpu.memory_space<vmem>>, vector<2x8x8x16xf32>
    tpu.vector_store %arg12[%c0_95, %c0_96, %c0_97, %c192], %47 {strides = array<i32>} : memref<2x8x8x400xf32, #tpu.memory_space<vmem>>, vector<2x8x8x16xf32>,
    %c0_98 = arith.constant 0 : index
    %c2_99 = arith.constant 2 : index
    %c3_100 = arith.constant 3 : index
    %c0_101 = arith.constant 0 : index
    %49 = vector.load %arg11[%c0_98, %c2_99, %c3_100, %c0_101] : memref<2x12x16x16xf32, #tpu.memory_space<vmem>>, vector<2x8x8x16xf32>
    %c0_102 = arith.constant 0 : index
    %c0_103 = arith.constant 0 : index
    %c0_104 = arith.constant 0 : index
    %c208 = arith.constant 208 : index
    %50 = vector.load %arg12[%c0_102, %c0_103, %c0_104, %c208] : memref<2x8x8x400xf32, #tpu.memory_space<vmem>>, vector<2x8x8x16xf32>
    tpu.vector_store %arg12[%c0_102, %c0_103, %c0_104, %c208], %49 {strides = array<i32>} : memref<2x8x8x400xf32, #tpu.memory_space<vmem>>, vector<2x8x8x16xf32>,
    %c0_105 = arith.constant 0 : index
    %c2_106 = arith.constant 2 : index
    %c4_107 = arith.constant 4 : index
    %c0_108 = arith.constant 0 : index
    %51 = vector.load %arg11[%c0_105, %c2_106, %c4_107, %c0_108] : memref<2x12x16x16xf32, #tpu.memory_space<vmem>>, vector<2x8x8x16xf32>
    %c0_109 = arith.constant 0 : index
    %c0_110 = arith.constant 0 : index
    %c0_111 = arith.constant 0 : index
    %c224 = arith.constant 224 : index
    %52 = vector.load %arg12[%c0_109, %c0_110, %c0_111, %c224] : memref<2x8x8x400xf32, #tpu.memory_space<vmem>>, vector<2x8x8x16xf32>
    tpu.vector_store %arg12[%c0_109, %c0_110, %c0_111, %c224], %51 {strides = array<i32>} : memref<2x8x8x400xf32, #tpu.memory_space<vmem>>, vector<2x8x8x16xf32>,
    %c0_112 = arith.constant 0 : index
    %c3_113 = arith.constant 3 : index
    %c0_114 = arith.constant 0 : index
    %c0_115 = arith.constant 0 : index
    %53 = vector.load %arg11[%c0_112, %c3_113, %c0_114, %c0_115] : memref<2x12x16x16xf32, #tpu.memory_space<vmem>>, vector<2x8x8x16xf32>
    %c0_116 = arith.constant 0 : index
    %c0_117 = arith.constant 0 : index
    %c0_118 = arith.constant 0 : index
    %c240 = arith.constant 240 : index
    %54 = vector.load %arg12[%c0_116, %c0_117, %c0_118, %c240] : memref<2x8x8x400xf32, #tpu.memory_space<vmem>>, vector<2x8x8x16xf32>
    tpu.vector_store %arg12[%c0_116, %c0_117, %c0_118, %c240], %53 {strides = array<i32>} : memref<2x8x8x400xf32, #tpu.memory_space<vmem>>, vector<2x8x8x16xf32>,
    %c0_119 = arith.constant 0 : index
    %c3_120 = arith.constant 3 : index
    %c1_121 = arith.constant 1 : index
    %c0_122 = arith.constant 0 : index
    %55 = vector.load %arg11[%c0_119, %c3_120, %c1_121, %c0_122] : memref<2x12x16x16xf32, #tpu.memory_space<vmem>>, vector<2x8x8x16xf32>
    %c0_123 = arith.constant 0 : index
    %c0_124 = arith.constant 0 : index
    %c0_125 = arith.constant 0 : index
    %c256 = arith.constant 256 : index
    %56 = vector.load %arg12[%c0_123, %c0_124, %c0_125, %c256] : memref<2x8x8x400xf32, #tpu.memory_space<vmem>>, vector<2x8x8x16xf32>
    tpu.vector_store %arg12[%c0_123, %c0_124, %c0_125, %c256], %55 {strides = array<i32>} : memref<2x8x8x400xf32, #tpu.memory_space<vmem>>, vector<2x8x8x16xf32>,
    %c0_126 = arith.constant 0 : index
    %c3_127 = arith.constant 3 : index
    %c2_128 = arith.constant 2 : index
    %c0_129 = arith.constant 0 : index
    %57 = vector.load %arg11[%c0_126, %c3_127, %c2_128, %c0_129] : memref<2x12x16x16xf32, #tpu.memory_space<vmem>>, vector<2x8x8x16xf32>
    %c0_130 = arith.constant 0 : index
    %c0_131 = arith.constant 0 : index
    %c0_132 = arith.constant 0 : index
    %c272 = arith.constant 272 : index
    %58 = vector.load %arg12[%c0_130, %c0_131, %c0_132, %c272] : memref<2x8x8x400xf32, #tpu.memory_space<vmem>>, vector<2x8x8x16xf32>
    tpu.vector_store %arg12[%c0_130, %c0_131, %c0_132, %c272], %57 {strides = array<i32>} : memref<2x8x8x400xf32, #tpu.memory_space<vmem>>, vector<2x8x8x16xf32>,
    %c0_133 = arith.constant 0 : index
    %c3_134 = arith.constant 3 : index
    %c3_135 = arith.constant 3 : index
    %c0_136 = arith.constant 0 : index
    %59 = vector.load %arg11[%c0_133, %c3_134, %c3_135, %c0_136] : memref<2x12x16x16xf32, #tpu.memory_space<vmem>>, vector<2x8x8x16xf32>
    %c0_137 = arith.constant 0 : index
    %c0_138 = arith.constant 0 : index
    %c0_139 = arith.constant 0 : index
    %c288 = arith.constant 288 : index
    %60 = vector.load %arg12[%c0_137, %c0_138, %c0_139, %c288] : memref<2x8x8x400xf32, #tpu.memory_space<vmem>>, vector<2x8x8x16xf32>
    tpu.vector_store %arg12[%c0_137, %c0_138, %c0_139, %c288], %59 {strides = array<i32>} : memref<2x8x8x400xf32, #tpu.memory_space<vmem>>, vector<2x8x8x16xf32>,
    %c0_140 = arith.constant 0 : index
    %c3_141 = arith.constant 3 : index
    %c4_142 = arith.constant 4 : index
    %c0_143 = arith.constant 0 : index
    %61 = vector.load %arg11[%c0_140, %c3_141, %c4_142, %c0_143] : memref<2x12x16x16xf32, #tpu.memory_space<vmem>>, vector<2x8x8x16xf32>
    %c0_144 = arith.constant 0 : index
    %c0_145 = arith.constant 0 : index
    %c0_146 = arith.constant 0 : index
    %c304 = arith.constant 304 : index
    %62 = vector.load %arg12[%c0_144, %c0_145, %c0_146, %c304] : memref<2x8x8x400xf32, #tpu.memory_space<vmem>>, vector<2x8x8x16xf32>
    tpu.vector_store %arg12[%c0_144, %c0_145, %c0_146, %c304], %61 {strides = array<i32>} : memref<2x8x8x400xf32, #tpu.memory_space<vmem>>, vector<2x8x8x16xf32>,
    %c0_147 = arith.constant 0 : index
    %c4_148 = arith.constant 4 : index
    %c0_149 = arith.constant 0 : index
    %c0_150 = arith.constant 0 : index
    %63 = vector.load %arg11[%c0_147, %c4_148, %c0_149, %c0_150] : memref<2x12x16x16xf32, #tpu.memory_space<vmem>>, vector<2x8x8x16xf32>
    %c0_151 = arith.constant 0 : index
    %c0_152 = arith.constant 0 : index
    %c0_153 = arith.constant 0 : index
    %c320 = arith.constant 320 : index
    %64 = vector.load %arg12[%c0_151, %c0_152, %c0_153, %c320] : memref<2x8x8x400xf32, #tpu.memory_space<vmem>>, vector<2x8x8x16xf32>
    tpu.vector_store %arg12[%c0_151, %c0_152, %c0_153, %c320], %63 {strides = array<i32>} : memref<2x8x8x400xf32, #tpu.memory_space<vmem>>, vector<2x8x8x16xf32>,
    %c0_154 = arith.constant 0 : index
    %c4_155 = arith.constant 4 : index
    %c1_156 = arith.constant 1 : index
    %c0_157 = arith.constant 0 : index
    %65 = vector.load %arg11[%c0_154, %c4_155, %c1_156, %c0_157] : memref<2x12x16x16xf32, #tpu.memory_space<vmem>>, vector<2x8x8x16xf32>
    %c0_158 = arith.constant 0 : index
    %c0_159 = arith.constant 0 : index
    %c0_160 = arith.constant 0 : index
    %c336 = arith.constant 336 : index
    %66 = vector.load %arg12[%c0_158, %c0_159, %c0_160, %c336] : memref<2x8x8x400xf32, #tpu.memory_space<vmem>>, vector<2x8x8x16xf32>
    tpu.vector_store %arg12[%c0_158, %c0_159, %c0_160, %c336], %65 {strides = array<i32>} : memref<2x8x8x400xf32, #tpu.memory_space<vmem>>, vector<2x8x8x16xf32>,
    %c0_161 = arith.constant 0 : index
    %c4_162 = arith.constant 4 : index
    %c2_163 = arith.constant 2 : index
    %c0_164 = arith.constant 0 : index
    %67 = vector.load %arg11[%c0_161, %c4_162, %c2_163, %c0_164] : memref<2x12x16x16xf32, #tpu.memory_space<vmem>>, vector<2x8x8x16xf32>
    %c0_165 = arith.constant 0 : index
    %c0_166 = arith.constant 0 : index
    %c0_167 = arith.constant 0 : index
    %c352 = arith.constant 352 : index
    %68 = vector.load %arg12[%c0_165, %c0_166, %c0_167, %c352] : memref<2x8x8x400xf32, #tpu.memory_space<vmem>>, vector<2x8x8x16xf32>
    tpu.vector_store %arg12[%c0_165, %c0_166, %c0_167, %c352], %67 {strides = array<i32>} : memref<2x8x8x400xf32, #tpu.memory_space<vmem>>, vector<2x8x8x16xf32>,
    %c0_168 = arith.constant 0 : index
    %c4_169 = arith.constant 4 : index
    %c3_170 = arith.constant 3 : index
    %c0_171 = arith.constant 0 : index
    %69 = vector.load %arg11[%c0_168, %c4_169, %c3_170, %c0_171] : memref<2x12x16x16xf32, #tpu.memory_space<vmem>>, vector<2x8x8x16xf32>
    %c0_172 = arith.constant 0 : index
    %c0_173 = arith.constant 0 : index
    %c0_174 = arith.constant 0 : index
    %c368 = arith.constant 368 : index
    %70 = vector.load %arg12[%c0_172, %c0_173, %c0_174, %c368] : memref<2x8x8x400xf32, #tpu.memory_space<vmem>>, vector<2x8x8x16xf32>
    tpu.vector_store %arg12[%c0_172, %c0_173, %c0_174, %c368], %69 {strides = array<i32>} : memref<2x8x8x400xf32, #tpu.memory_space<vmem>>, vector<2x8x8x16xf32>,
    %c0_175 = arith.constant 0 : index
    %c4_176 = arith.constant 4 : index
    %c4_177 = arith.constant 4 : index
    %c0_178 = arith.constant 0 : index
    %71 = vector.load %arg11[%c0_175, %c4_176, %c4_177, %c0_178] : memref<2x12x16x16xf32, #tpu.memory_space<vmem>>, vector<2x8x8x16xf32>
    %c0_179 = arith.constant 0 : index
    %c0_180 = arith.constant 0 : index
    %c0_181 = arith.constant 0 : index
    %c384 = arith.constant 384 : index
    %72 = vector.load %arg12[%c0_179, %c0_180, %c0_181, %c384] : memref<2x8x8x400xf32, #tpu.memory_space<vmem>>, vector<2x8x8x16xf32>
    tpu.vector_store %arg12[%c0_179, %c0_180, %c0_181, %c384], %71 {strides = array<i32>} : memref<2x8x8x400xf32, #tpu.memory_space<vmem>>, vector<2x8x8x16xf32>,
    %c0_182 = arith.constant 0 : index
    %c0_183 = arith.constant 0 : index
    %c0_184 = arith.constant 0 : index
    %c0_185 = arith.constant 0 : index
    %73 = vector.load %arg12[%c0_182, %c0_183, %c0_184, %c0_185] : memref<2x8x8x400xf32, #tpu.memory_space<vmem>>, vector<2x8x8x400xf32>
    %74 = vector.shape_cast %73 : vector<2x8x8x400xf32> to vector<128x400xf32>
    %c0_186 = arith.constant 0 : index
    %c0_187 = arith.constant 0 : index
    %75 = vector.load %arg4[%c0_186, %c0_187] : memref<400x32xf32, #tpu.memory_space<vmem>>, vector<400x32xf32>
    %cst_188 = arith.constant dense<0.000000e+00> : vector<128x32xf32>
    %76 = tpu.matmul %74, %75, %cst_188 {dimension_numbers = #tpu.dot_dimension_numbers<[1], [0], [0], [1], [0, 0, 1, 1], [], []>} : vector<128x400xf32>, vector<400x32xf32>, vector<128x32xf32> -> vector<128x32xf32>
    %77 = vector.shape_cast %76 : vector<128x32xf32> to vector<2x8x8x32xf32>
    %78 = vector.extract_strided_slice %77 {offsets = [0, 0, 0, 0], sizes = [2, 1, 8, 32], strides = [1, 1, 1, 1]} : vector<2x8x8x32xf32> to vector<2x1x8x32xf32>
    %79 = vector.shape_cast %78 : vector<2x1x8x32xf32> to vector<2x8x32xf32>
    %80 = vector.extract_strided_slice %77 {offsets = [0, 1, 0, 0], sizes = [2, 1, 8, 32], strides = [1, 1, 1, 1]} : vector<2x8x8x32xf32> to vector<2x1x8x32xf32>
    %81 = vector.shape_cast %80 : vector<2x1x8x32xf32> to vector<2x8x32xf32>
    %82 = arith.maximumf %79, %81 : vector<2x8x32xf32>
    %83 = vector.extract_strided_slice %82 {offsets = [0, 0, 0], sizes = [2, 1, 32], strides = [1, 1, 1]} : vector<2x8x32xf32> to vector<2x1x32xf32>
    %84 = vector.shape_cast %83 : vector<2x1x32xf32> to vector<2x32xf32>
    %85 = vector.extract_strided_slice %82 {offsets = [0, 1, 0], sizes = [2, 1, 32], strides = [1, 1, 1]} : vector<2x8x32xf32> to vector<2x1x32xf32>
    %86 = vector.shape_cast %85 : vector<2x1x32xf32> to vector<2x32xf32>
    %87 = arith.maximumf %84, %86 : vector<2x32xf32>
    %c0_189 = arith.constant 0 : index
    %c0_190 = arith.constant 0 : index
    %88 = vector.load %arg5[%c0_189, %c0_190] : memref<1x32xf32, #tpu.memory_space<vmem>>, vector<1x32xf32>
    %89 = vector.broadcast %88 : vector<1x32xf32> to vector<2x32xf32>
    %90 = arith.addf %87, %89 : vector<2x32xf32>
    %cst_191 = arith.constant 0.000000e+00 : f32
    %91 = vector.broadcast %cst_191 : f32 to vector<2x32xf32>
    %92 = arith.maximumf %90, %91 : vector<2x32xf32>
    %c0_192 = arith.constant 0 : index
    %c0_193 = arith.constant 0 : index
    %93 = vector.load %arg13[%c0_192, %c0_193] : memref<2x512xf32, #tpu.memory_space<vmem>>, vector<2x32xf32>
    tpu.vector_store %arg13[%c0_192, %c0_193], %92 {strides = array<i32>} : memref<2x512xf32, #tpu.memory_space<vmem>>, vector<2x32xf32>,
    %94 = vector.extract_strided_slice %82 {offsets = [0, 2, 0], sizes = [2, 1, 32], strides = [1, 1, 1]} : vector<2x8x32xf32> to vector<2x1x32xf32>
    %95 = vector.shape_cast %94 : vector<2x1x32xf32> to vector<2x32xf32>
    %96 = vector.extract_strided_slice %82 {offsets = [0, 3, 0], sizes = [2, 1, 32], strides = [1, 1, 1]} : vector<2x8x32xf32> to vector<2x1x32xf32>
    %97 = vector.shape_cast %96 : vector<2x1x32xf32> to vector<2x32xf32>
    %98 = arith.maximumf %95, %97 : vector<2x32xf32>
    %c0_194 = arith.constant 0 : index
    %c0_195 = arith.constant 0 : index
    %99 = vector.load %arg5[%c0_194, %c0_195] : memref<1x32xf32, #tpu.memory_space<vmem>>, vector<1x32xf32>
    %100 = vector.broadcast %99 : vector<1x32xf32> to vector<2x32xf32>
    %101 = arith.addf %98, %100 : vector<2x32xf32>
    %cst_196 = arith.constant 0.000000e+00 : f32
    %102 = vector.broadcast %cst_196 : f32 to vector<2x32xf32>
    %103 = arith.maximumf %101, %102 : vector<2x32xf32>
    %c0_197 = arith.constant 0 : index
    %c32_198 = arith.constant 32 : index
    %104 = vector.load %arg13[%c0_197, %c32_198] : memref<2x512xf32, #tpu.memory_space<vmem>>, vector<2x32xf32>
    tpu.vector_store %arg13[%c0_197, %c32_198], %103 {strides = array<i32>} : memref<2x512xf32, #tpu.memory_space<vmem>>, vector<2x32xf32>,
    %105 = vector.extract_strided_slice %82 {offsets = [0, 4, 0], sizes = [2, 1, 32], strides = [1, 1, 1]} : vector<2x8x32xf32> to vector<2x1x32xf32>
    %106 = vector.shape_cast %105 : vector<2x1x32xf32> to vector<2x32xf32>
    %107 = vector.extract_strided_slice %82 {offsets = [0, 5, 0], sizes = [2, 1, 32], strides = [1, 1, 1]} : vector<2x8x32xf32> to vector<2x1x32xf32>
    %108 = vector.shape_cast %107 : vector<2x1x32xf32> to vector<2x32xf32>
    %109 = arith.maximumf %106, %108 : vector<2x32xf32>
    %c0_199 = arith.constant 0 : index
    %c0_200 = arith.constant 0 : index
    %110 = vector.load %arg5[%c0_199, %c0_200] : memref<1x32xf32, #tpu.memory_space<vmem>>, vector<1x32xf32>
    %111 = vector.broadcast %110 : vector<1x32xf32> to vector<2x32xf32>
    %112 = arith.addf %109, %111 : vector<2x32xf32>
    %cst_201 = arith.constant 0.000000e+00 : f32
    %113 = vector.broadcast %cst_201 : f32 to vector<2x32xf32>
    %114 = arith.maximumf %112, %113 : vector<2x32xf32>
    %c0_202 = arith.constant 0 : index
    %c64_203 = arith.constant 64 : index
    %115 = vector.load %arg13[%c0_202, %c64_203] : memref<2x512xf32, #tpu.memory_space<vmem>>, vector<2x32xf32>
    tpu.vector_store %arg13[%c0_202, %c64_203], %114 {strides = array<i32>} : memref<2x512xf32, #tpu.memory_space<vmem>>, vector<2x32xf32>,
    %116 = vector.extract_strided_slice %82 {offsets = [0, 6, 0], sizes = [2, 1, 32], strides = [1, 1, 1]} : vector<2x8x32xf32> to vector<2x1x32xf32>
    %117 = vector.shape_cast %116 : vector<2x1x32xf32> to vector<2x32xf32>
    %118 = vector.extract_strided_slice %82 {offsets = [0, 7, 0], sizes = [2, 1, 32], strides = [1, 1, 1]} : vector<2x8x32xf32> to vector<2x1x32xf32>
    %119 = vector.shape_cast %118 : vector<2x1x32xf32> to vector<2x32xf32>
    %120 = arith.maximumf %117, %119 : vector<2x32xf32>
    %c0_204 = arith.constant 0 : index
    %c0_205 = arith.constant 0 : index
    %121 = vector.load %arg5[%c0_204, %c0_205] : memref<1x32xf32, #tpu.memory_space<vmem>>, vector<1x32xf32>
    %122 = vector.broadcast %121 : vector<1x32xf32> to vector<2x32xf32>
    %123 = arith.addf %120, %122 : vector<2x32xf32>
    %cst_206 = arith.constant 0.000000e+00 : f32
    %124 = vector.broadcast %cst_206 : f32 to vector<2x32xf32>
    %125 = arith.maximumf %123, %124 : vector<2x32xf32>
    %c0_207 = arith.constant 0 : index
    %c96_208 = arith.constant 96 : index
    %126 = vector.load %arg13[%c0_207, %c96_208] : memref<2x512xf32, #tpu.memory_space<vmem>>, vector<2x32xf32>
    tpu.vector_store %arg13[%c0_207, %c96_208], %125 {strides = array<i32>} : memref<2x512xf32, #tpu.memory_space<vmem>>, vector<2x32xf32>,
    %127 = vector.extract_strided_slice %77 {offsets = [0, 2, 0, 0], sizes = [2, 1, 8, 32], strides = [1, 1, 1, 1]} : vector<2x8x8x32xf32> to vector<2x1x8x32xf32>
    %128 = vector.shape_cast %127 : vector<2x1x8x32xf32> to vector<2x8x32xf32>
    %129 = vector.extract_strided_slice %77 {offsets = [0, 3, 0, 0], sizes = [2, 1, 8, 32], strides = [1, 1, 1, 1]} : vector<2x8x8x32xf32> to vector<2x1x8x32xf32>
    %130 = vector.shape_cast %129 : vector<2x1x8x32xf32> to vector<2x8x32xf32>
    %131 = arith.maximumf %128, %130 : vector<2x8x32xf32>
    %132 = vector.extract_strided_slice %131 {offsets = [0, 0, 0], sizes = [2, 1, 32], strides = [1, 1, 1]} : vector<2x8x32xf32> to vector<2x1x32xf32>
    %133 = vector.shape_cast %132 : vector<2x1x32xf32> to vector<2x32xf32>
    %134 = vector.extract_strided_slice %131 {offsets = [0, 1, 0], sizes = [2, 1, 32], strides = [1, 1, 1]} : vector<2x8x32xf32> to vector<2x1x32xf32>
    %135 = vector.shape_cast %134 : vector<2x1x32xf32> to vector<2x32xf32>
    %136 = arith.maximumf %133, %135 : vector<2x32xf32>
    %c0_209 = arith.constant 0 : index
    %c0_210 = arith.constant 0 : index
    %137 = vector.load %arg5[%c0_209, %c0_210] : memref<1x32xf32, #tpu.memory_space<vmem>>, vector<1x32xf32>
    %138 = vector.broadcast %137 : vector<1x32xf32> to vector<2x32xf32>
    %139 = arith.addf %136, %138 : vector<2x32xf32>
    %cst_211 = arith.constant 0.000000e+00 : f32
    %140 = vector.broadcast %cst_211 : f32 to vector<2x32xf32>
    %141 = arith.maximumf %139, %140 : vector<2x32xf32>
    %c0_212 = arith.constant 0 : index
    %c128_213 = arith.constant 128 : index
    %142 = vector.load %arg13[%c0_212, %c128_213] : memref<2x512xf32, #tpu.memory_space<vmem>>, vector<2x32xf32>
    tpu.vector_store %arg13[%c0_212, %c128_213], %141 {strides = array<i32>} : memref<2x512xf32, #tpu.memory_space<vmem>>, vector<2x32xf32>,
    %143 = vector.extract_strided_slice %131 {offsets = [0, 2, 0], sizes = [2, 1, 32], strides = [1, 1, 1]} : vector<2x8x32xf32> to vector<2x1x32xf32>
    %144 = vector.shape_cast %143 : vector<2x1x32xf32> to vector<2x32xf32>
    %145 = vector.extract_strided_slice %131 {offsets = [0, 3, 0], sizes = [2, 1, 32], strides = [1, 1, 1]} : vector<2x8x32xf32> to vector<2x1x32xf32>
    %146 = vector.shape_cast %145 : vector<2x1x32xf32> to vector<2x32xf32>
    %147 = arith.maximumf %144, %146 : vector<2x32xf32>
    %c0_214 = arith.constant 0 : index
    %c0_215 = arith.constant 0 : index
    %148 = vector.load %arg5[%c0_214, %c0_215] : memref<1x32xf32, #tpu.memory_space<vmem>>, vector<1x32xf32>
    %149 = vector.broadcast %148 : vector<1x32xf32> to vector<2x32xf32>
    %150 = arith.addf %147, %149 : vector<2x32xf32>
    %cst_216 = arith.constant 0.000000e+00 : f32
    %151 = vector.broadcast %cst_216 : f32 to vector<2x32xf32>
    %152 = arith.maximumf %150, %151 : vector<2x32xf32>
    %c0_217 = arith.constant 0 : index
    %c160_218 = arith.constant 160 : index
    %153 = vector.load %arg13[%c0_217, %c160_218] : memref<2x512xf32, #tpu.memory_space<vmem>>, vector<2x32xf32>
    tpu.vector_store %arg13[%c0_217, %c160_218], %152 {strides = array<i32>} : memref<2x512xf32, #tpu.memory_space<vmem>>, vector<2x32xf32>,
    %154 = vector.extract_strided_slice %131 {offsets = [0, 4, 0], sizes = [2, 1, 32], strides = [1, 1, 1]} : vector<2x8x32xf32> to vector<2x1x32xf32>
    %155 = vector.shape_cast %154 : vector<2x1x32xf32> to vector<2x32xf32>
    %156 = vector.extract_strided_slice %131 {offsets = [0, 5, 0], sizes = [2, 1, 32], strides = [1, 1, 1]} : vector<2x8x32xf32> to vector<2x1x32xf32>
    %157 = vector.shape_cast %156 : vector<2x1x32xf32> to vector<2x32xf32>
    %158 = arith.maximumf %155, %157 : vector<2x32xf32>
    %c0_219 = arith.constant 0 : index
    %c0_220 = arith.constant 0 : index
    %159 = vector.load %arg5[%c0_219, %c0_220] : memref<1x32xf32, #tpu.memory_space<vmem>>, vector<1x32xf32>
    %160 = vector.broadcast %159 : vector<1x32xf32> to vector<2x32xf32>
    %161 = arith.addf %158, %160 : vector<2x32xf32>
    %cst_221 = arith.constant 0.000000e+00 : f32
    %162 = vector.broadcast %cst_221 : f32 to vector<2x32xf32>
    %163 = arith.maximumf %161, %162 : vector<2x32xf32>
    %c0_222 = arith.constant 0 : index
    %c192_223 = arith.constant 192 : index
    %164 = vector.load %arg13[%c0_222, %c192_223] : memref<2x512xf32, #tpu.memory_space<vmem>>, vector<2x32xf32>
    tpu.vector_store %arg13[%c0_222, %c192_223], %163 {strides = array<i32>} : memref<2x512xf32, #tpu.memory_space<vmem>>, vector<2x32xf32>,
    %165 = vector.extract_strided_slice %131 {offsets = [0, 6, 0], sizes = [2, 1, 32], strides = [1, 1, 1]} : vector<2x8x32xf32> to vector<2x1x32xf32>
    %166 = vector.shape_cast %165 : vector<2x1x32xf32> to vector<2x32xf32>
    %167 = vector.extract_strided_slice %131 {offsets = [0, 7, 0], sizes = [2, 1, 32], strides = [1, 1, 1]} : vector<2x8x32xf32> to vector<2x1x32xf32>
    %168 = vector.shape_cast %167 : vector<2x1x32xf32> to vector<2x32xf32>
    %169 = arith.maximumf %166, %168 : vector<2x32xf32>
    %c0_224 = arith.constant 0 : index
    %c0_225 = arith.constant 0 : index
    %170 = vector.load %arg5[%c0_224, %c0_225] : memref<1x32xf32, #tpu.memory_space<vmem>>, vector<1x32xf32>
    %171 = vector.broadcast %170 : vector<1x32xf32> to vector<2x32xf32>
    %172 = arith.addf %169, %171 : vector<2x32xf32>
    %cst_226 = arith.constant 0.000000e+00 : f32
    %173 = vector.broadcast %cst_226 : f32 to vector<2x32xf32>
    %174 = arith.maximumf %172, %173 : vector<2x32xf32>
    %c0_227 = arith.constant 0 : index
    %c224_228 = arith.constant 224 : index
    %175 = vector.load %arg13[%c0_227, %c224_228] : memref<2x512xf32, #tpu.memory_space<vmem>>, vector<2x32xf32>
    tpu.vector_store %arg13[%c0_227, %c224_228], %174 {strides = array<i32>} : memref<2x512xf32, #tpu.memory_space<vmem>>, vector<2x32xf32>,
    %176 = vector.extract_strided_slice %77 {offsets = [0, 4, 0, 0], sizes = [2, 1, 8, 32], strides = [1, 1, 1, 1]} : vector<2x8x8x32xf32> to vector<2x1x8x32xf32>
    %177 = vector.shape_cast %176 : vector<2x1x8x32xf32> to vector<2x8x32xf32>
    %178 = vector.extract_strided_slice %77 {offsets = [0, 5, 0, 0], sizes = [2, 1, 8, 32], strides = [1, 1, 1, 1]} : vector<2x8x8x32xf32> to vector<2x1x8x32xf32>
    %179 = vector.shape_cast %178 : vector<2x1x8x32xf32> to vector<2x8x32xf32>
    %180 = arith.maximumf %177, %179 : vector<2x8x32xf32>
    %181 = vector.extract_strided_slice %180 {offsets = [0, 0, 0], sizes = [2, 1, 32], strides = [1, 1, 1]} : vector<2x8x32xf32> to vector<2x1x32xf32>
    %182 = vector.shape_cast %181 : vector<2x1x32xf32> to vector<2x32xf32>
    %183 = vector.extract_strided_slice %180 {offsets = [0, 1, 0], sizes = [2, 1, 32], strides = [1, 1, 1]} : vector<2x8x32xf32> to vector<2x1x32xf32>
    %184 = vector.shape_cast %183 : vector<2x1x32xf32> to vector<2x32xf32>
    %185 = arith.maximumf %182, %184 : vector<2x32xf32>
    %c0_229 = arith.constant 0 : index
    %c0_230 = arith.constant 0 : index
    %186 = vector.load %arg5[%c0_229, %c0_230] : memref<1x32xf32, #tpu.memory_space<vmem>>, vector<1x32xf32>
    %187 = vector.broadcast %186 : vector<1x32xf32> to vector<2x32xf32>
    %188 = arith.addf %185, %187 : vector<2x32xf32>
    %cst_231 = arith.constant 0.000000e+00 : f32
    %189 = vector.broadcast %cst_231 : f32 to vector<2x32xf32>
    %190 = arith.maximumf %188, %189 : vector<2x32xf32>
    %c0_232 = arith.constant 0 : index
    %c256_233 = arith.constant 256 : index
    %191 = vector.load %arg13[%c0_232, %c256_233] : memref<2x512xf32, #tpu.memory_space<vmem>>, vector<2x32xf32>
    tpu.vector_store %arg13[%c0_232, %c256_233], %190 {strides = array<i32>} : memref<2x512xf32, #tpu.memory_space<vmem>>, vector<2x32xf32>,
    %192 = vector.extract_strided_slice %180 {offsets = [0, 2, 0], sizes = [2, 1, 32], strides = [1, 1, 1]} : vector<2x8x32xf32> to vector<2x1x32xf32>
    %193 = vector.shape_cast %192 : vector<2x1x32xf32> to vector<2x32xf32>
    %194 = vector.extract_strided_slice %180 {offsets = [0, 3, 0], sizes = [2, 1, 32], strides = [1, 1, 1]} : vector<2x8x32xf32> to vector<2x1x32xf32>
    %195 = vector.shape_cast %194 : vector<2x1x32xf32> to vector<2x32xf32>
    %196 = arith.maximumf %193, %195 : vector<2x32xf32>
    %c0_234 = arith.constant 0 : index
    %c0_235 = arith.constant 0 : index
    %197 = vector.load %arg5[%c0_234, %c0_235] : memref<1x32xf32, #tpu.memory_space<vmem>>, vector<1x32xf32>
    %198 = vector.broadcast %197 : vector<1x32xf32> to vector<2x32xf32>
    %199 = arith.addf %196, %198 : vector<2x32xf32>
    %cst_236 = arith.constant 0.000000e+00 : f32
    %200 = vector.broadcast %cst_236 : f32 to vector<2x32xf32>
    %201 = arith.maximumf %199, %200 : vector<2x32xf32>
    %c0_237 = arith.constant 0 : index
    %c288_238 = arith.constant 288 : index
    %202 = vector.load %arg13[%c0_237, %c288_238] : memref<2x512xf32, #tpu.memory_space<vmem>>, vector<2x32xf32>
    tpu.vector_store %arg13[%c0_237, %c288_238], %201 {strides = array<i32>} : memref<2x512xf32, #tpu.memory_space<vmem>>, vector<2x32xf32>,
    %203 = vector.extract_strided_slice %180 {offsets = [0, 4, 0], sizes = [2, 1, 32], strides = [1, 1, 1]} : vector<2x8x32xf32> to vector<2x1x32xf32>
    %204 = vector.shape_cast %203 : vector<2x1x32xf32> to vector<2x32xf32>
    %205 = vector.extract_strided_slice %180 {offsets = [0, 5, 0], sizes = [2, 1, 32], strides = [1, 1, 1]} : vector<2x8x32xf32> to vector<2x1x32xf32>
    %206 = vector.shape_cast %205 : vector<2x1x32xf32> to vector<2x32xf32>
    %207 = arith.maximumf %204, %206 : vector<2x32xf32>
    %c0_239 = arith.constant 0 : index
    %c0_240 = arith.constant 0 : index
    %208 = vector.load %arg5[%c0_239, %c0_240] : memref<1x32xf32, #tpu.memory_space<vmem>>, vector<1x32xf32>
    %209 = vector.broadcast %208 : vector<1x32xf32> to vector<2x32xf32>
    %210 = arith.addf %207, %209 : vector<2x32xf32>
    %cst_241 = arith.constant 0.000000e+00 : f32
    %211 = vector.broadcast %cst_241 : f32 to vector<2x32xf32>
    %212 = arith.maximumf %210, %211 : vector<2x32xf32>
    %c0_242 = arith.constant 0 : index
    %c320_243 = arith.constant 320 : index
    %213 = vector.load %arg13[%c0_242, %c320_243] : memref<2x512xf32, #tpu.memory_space<vmem>>, vector<2x32xf32>
    tpu.vector_store %arg13[%c0_242, %c320_243], %212 {strides = array<i32>} : memref<2x512xf32, #tpu.memory_space<vmem>>, vector<2x32xf32>,
    %214 = vector.extract_strided_slice %180 {offsets = [0, 6, 0], sizes = [2, 1, 32], strides = [1, 1, 1]} : vector<2x8x32xf32> to vector<2x1x32xf32>
    %215 = vector.shape_cast %214 : vector<2x1x32xf32> to vector<2x32xf32>
    %216 = vector.extract_strided_slice %180 {offsets = [0, 7, 0], sizes = [2, 1, 32], strides = [1, 1, 1]} : vector<2x8x32xf32> to vector<2x1x32xf32>
    %217 = vector.shape_cast %216 : vector<2x1x32xf32> to vector<2x32xf32>
    %218 = arith.maximumf %215, %217 : vector<2x32xf32>
    %c0_244 = arith.constant 0 : index
    %c0_245 = arith.constant 0 : index
    %219 = vector.load %arg5[%c0_244, %c0_245] : memref<1x32xf32, #tpu.memory_space<vmem>>, vector<1x32xf32>
    %220 = vector.broadcast %219 : vector<1x32xf32> to vector<2x32xf32>
    %221 = arith.addf %218, %220 : vector<2x32xf32>
    %cst_246 = arith.constant 0.000000e+00 : f32
    %222 = vector.broadcast %cst_246 : f32 to vector<2x32xf32>
    %223 = arith.maximumf %221, %222 : vector<2x32xf32>
    %c0_247 = arith.constant 0 : index
    %c352_248 = arith.constant 352 : index
    %224 = vector.load %arg13[%c0_247, %c352_248] : memref<2x512xf32, #tpu.memory_space<vmem>>, vector<2x32xf32>
    tpu.vector_store %arg13[%c0_247, %c352_248], %223 {strides = array<i32>} : memref<2x512xf32, #tpu.memory_space<vmem>>, vector<2x32xf32>,
    %225 = vector.extract_strided_slice %77 {offsets = [0, 6, 0, 0], sizes = [2, 1, 8, 32], strides = [1, 1, 1, 1]} : vector<2x8x8x32xf32> to vector<2x1x8x32xf32>
    %226 = vector.shape_cast %225 : vector<2x1x8x32xf32> to vector<2x8x32xf32>
    %227 = vector.extract_strided_slice %77 {offsets = [0, 7, 0, 0], sizes = [2, 1, 8, 32], strides = [1, 1, 1, 1]} : vector<2x8x8x32xf32> to vector<2x1x8x32xf32>
    %228 = vector.shape_cast %227 : vector<2x1x8x32xf32> to vector<2x8x32xf32>
    %229 = arith.maximumf %226, %228 : vector<2x8x32xf32>
    %230 = vector.extract_strided_slice %229 {offsets = [0, 0, 0], sizes = [2, 1, 32], strides = [1, 1, 1]} : vector<2x8x32xf32> to vector<2x1x32xf32>
    %231 = vector.shape_cast %230 : vector<2x1x32xf32> to vector<2x32xf32>
    %232 = vector.extract_strided_slice %229 {offsets = [0, 1, 0], sizes = [2, 1, 32], strides = [1, 1, 1]} : vector<2x8x32xf32> to vector<2x1x32xf32>
    %233 = vector.shape_cast %232 : vector<2x1x32xf32> to vector<2x32xf32>
    %234 = arith.maximumf %231, %233 : vector<2x32xf32>
    %c0_249 = arith.constant 0 : index
    %c0_250 = arith.constant 0 : index
    %235 = vector.load %arg5[%c0_249, %c0_250] : memref<1x32xf32, #tpu.memory_space<vmem>>, vector<1x32xf32>
    %236 = vector.broadcast %235 : vector<1x32xf32> to vector<2x32xf32>
    %237 = arith.addf %234, %236 : vector<2x32xf32>
    %cst_251 = arith.constant 0.000000e+00 : f32
    %238 = vector.broadcast %cst_251 : f32 to vector<2x32xf32>
    %239 = arith.maximumf %237, %238 : vector<2x32xf32>
    %c0_252 = arith.constant 0 : index
    %c384_253 = arith.constant 384 : index
    %240 = vector.load %arg13[%c0_252, %c384_253] : memref<2x512xf32, #tpu.memory_space<vmem>>, vector<2x32xf32>
    tpu.vector_store %arg13[%c0_252, %c384_253], %239 {strides = array<i32>} : memref<2x512xf32, #tpu.memory_space<vmem>>, vector<2x32xf32>,
    %241 = vector.extract_strided_slice %229 {offsets = [0, 2, 0], sizes = [2, 1, 32], strides = [1, 1, 1]} : vector<2x8x32xf32> to vector<2x1x32xf32>
    %242 = vector.shape_cast %241 : vector<2x1x32xf32> to vector<2x32xf32>
    %243 = vector.extract_strided_slice %229 {offsets = [0, 3, 0], sizes = [2, 1, 32], strides = [1, 1, 1]} : vector<2x8x32xf32> to vector<2x1x32xf32>
    %244 = vector.shape_cast %243 : vector<2x1x32xf32> to vector<2x32xf32>
    %245 = arith.maximumf %242, %244 : vector<2x32xf32>
    %c0_254 = arith.constant 0 : index
    %c0_255 = arith.constant 0 : index
    %246 = vector.load %arg5[%c0_254, %c0_255] : memref<1x32xf32, #tpu.memory_space<vmem>>, vector<1x32xf32>
    %247 = vector.broadcast %246 : vector<1x32xf32> to vector<2x32xf32>
    %248 = arith.addf %245, %247 : vector<2x32xf32>
    %cst_256 = arith.constant 0.000000e+00 : f32
    %249 = vector.broadcast %cst_256 : f32 to vector<2x32xf32>
    %250 = arith.maximumf %248, %249 : vector<2x32xf32>
    %c0_257 = arith.constant 0 : index
    %c416 = arith.constant 416 : index
    %251 = vector.load %arg13[%c0_257, %c416] : memref<2x512xf32, #tpu.memory_space<vmem>>, vector<2x32xf32>
    tpu.vector_store %arg13[%c0_257, %c416], %250 {strides = array<i32>} : memref<2x512xf32, #tpu.memory_space<vmem>>, vector<2x32xf32>,
    %252 = vector.extract_strided_slice %229 {offsets = [0, 4, 0], sizes = [2, 1, 32], strides = [1, 1, 1]} : vector<2x8x32xf32> to vector<2x1x32xf32>
    %253 = vector.shape_cast %252 : vector<2x1x32xf32> to vector<2x32xf32>
    %254 = vector.extract_strided_slice %229 {offsets = [0, 5, 0], sizes = [2, 1, 32], strides = [1, 1, 1]} : vector<2x8x32xf32> to vector<2x1x32xf32>
    %255 = vector.shape_cast %254 : vector<2x1x32xf32> to vector<2x32xf32>
    %256 = arith.maximumf %253, %255 : vector<2x32xf32>
    %c0_258 = arith.constant 0 : index
    %c0_259 = arith.constant 0 : index
    %257 = vector.load %arg5[%c0_258, %c0_259] : memref<1x32xf32, #tpu.memory_space<vmem>>, vector<1x32xf32>
    %258 = vector.broadcast %257 : vector<1x32xf32> to vector<2x32xf32>
    %259 = arith.addf %256, %258 : vector<2x32xf32>
    %cst_260 = arith.constant 0.000000e+00 : f32
    %260 = vector.broadcast %cst_260 : f32 to vector<2x32xf32>
    %261 = arith.maximumf %259, %260 : vector<2x32xf32>
    %c0_261 = arith.constant 0 : index
    %c448 = arith.constant 448 : index
    %262 = vector.load %arg13[%c0_261, %c448] : memref<2x512xf32, #tpu.memory_space<vmem>>, vector<2x32xf32>
    tpu.vector_store %arg13[%c0_261, %c448], %261 {strides = array<i32>} : memref<2x512xf32, #tpu.memory_space<vmem>>, vector<2x32xf32>,
    %263 = vector.extract_strided_slice %229 {offsets = [0, 6, 0], sizes = [2, 1, 32], strides = [1, 1, 1]} : vector<2x8x32xf32> to vector<2x1x32xf32>
    %264 = vector.shape_cast %263 : vector<2x1x32xf32> to vector<2x32xf32>
    %265 = vector.extract_strided_slice %229 {offsets = [0, 7, 0], sizes = [2, 1, 32], strides = [1, 1, 1]} : vector<2x8x32xf32> to vector<2x1x32xf32>
    %266 = vector.shape_cast %265 : vector<2x1x32xf32> to vector<2x32xf32>
    %267 = arith.maximumf %264, %266 : vector<2x32xf32>
    %c0_262 = arith.constant 0 : index
    %c0_263 = arith.constant 0 : index
    %268 = vector.load %arg5[%c0_262, %c0_263] : memref<1x32xf32, #tpu.memory_space<vmem>>, vector<1x32xf32>
    %269 = vector.broadcast %268 : vector<1x32xf32> to vector<2x32xf32>
    %270 = arith.addf %267, %269 : vector<2x32xf32>
    %cst_264 = arith.constant 0.000000e+00 : f32
    %271 = vector.broadcast %cst_264 : f32 to vector<2x32xf32>
    %272 = arith.maximumf %270, %271 : vector<2x32xf32>
    %c0_265 = arith.constant 0 : index
    %c480 = arith.constant 480 : index
    %273 = vector.load %arg13[%c0_265, %c480] : memref<2x512xf32, #tpu.memory_space<vmem>>, vector<2x32xf32>
    tpu.vector_store %arg13[%c0_265, %c480], %272 {strides = array<i32>} : memref<2x512xf32, #tpu.memory_space<vmem>>, vector<2x32xf32>,
    %c0_266 = arith.constant 0 : index
    %c0_267 = arith.constant 0 : index
    %274 = vector.load %arg13[%c0_266, %c0_267] : memref<2x512xf32, #tpu.memory_space<vmem>>, vector<2x512xf32>
    %c0_268 = arith.constant 0 : index
    %c0_269 = arith.constant 0 : index
    %275 = vector.load %arg6[%c0_268, %c0_269] : memref<512x50xf32, #tpu.memory_space<vmem>>, vector<512x50xf32>
    %cst_270 = arith.constant dense<0.000000e+00> : vector<2x50xf32>
    %276 = tpu.matmul %274, %275, %cst_270 {dimension_numbers = #tpu.dot_dimension_numbers<[1], [0], [0], [1], [0, 0, 1, 1], [], []>} : vector<2x512xf32>, vector<512x50xf32>, vector<2x50xf32> -> vector<2x50xf32>
    %c0_271 = arith.constant 0 : index
    %c0_272 = arith.constant 0 : index
    %277 = vector.load %arg7[%c0_271, %c0_272] : memref<1x50xf32, #tpu.memory_space<vmem>>, vector<1x50xf32>
    %278 = vector.broadcast %277 : vector<1x50xf32> to vector<2x50xf32>
    %279 = arith.addf %276, %278 : vector<2x50xf32>
    %c0_273 = arith.constant 0 : index
    %c0_274 = arith.constant 0 : index
    %280 = vector.load %arg8[%c0_273, %c0_274] : memref<50x10xf32, #tpu.memory_space<vmem>>, vector<50x10xf32>
    %cst_275 = arith.constant dense<0.000000e+00> : vector<2x10xf32>
    %281 = tpu.matmul %279, %280, %cst_275 {dimension_numbers = #tpu.dot_dimension_numbers<[1], [0], [0], [1], [0, 0, 1, 1], [], []>} : vector<2x50xf32>, vector<50x10xf32>, vector<2x10xf32> -> vector<2x10xf32>
    %c0_276 = arith.constant 0 : index
    %c0_277 = arith.constant 0 : index
    %282 = vector.load %arg9[%c0_276, %c0_277] : memref<1x10xf32, #tpu.memory_space<vmem>>, vector<1x10xf32>
    %283 = vector.broadcast %282 : vector<1x10xf32> to vector<2x10xf32>
    %284 = arith.addf %281, %283 : vector<2x10xf32>
    %cst_278 = arith.constant dense<0xFF800000> : vector<2xf32>
    %285 = vector.multi_reduction <maximumf>, %284, %cst_278 [1] : vector<2x10xf32> to vector<2xf32>
    %286 = vector.shape_cast %285 : vector<2xf32> to vector<2x1xf32>
    %287 = vector.broadcast %286 : vector<2x1xf32> to vector<2x10xf32>
    %288 = arith.subf %284, %287 : vector<2x10xf32>
    %289 = math.exp %288 : vector<2x10xf32>
    %cst_279 = arith.constant dense<0.000000e+00> : vector<2xf32>
    %290 = vector.multi_reduction <add>, %289, %cst_279 [1] : vector<2x10xf32> to vector<2xf32>
    %291 = vector.shape_cast %290 : vector<2xf32> to vector<2x1xf32>
    %292 = math.log %291 : vector<2x1xf32>
    %293 = vector.broadcast %292 : vector<2x1xf32> to vector<2x10xf32>
    %294 = arith.subf %288, %293 : vector<2x10xf32>
    %c0_280 = arith.constant 0 : index
    %c0_281 = arith.constant 0 : index
    %295 = vector.load %arg10[%c0_280, %c0_281] : memref<2x10xf32, #tpu.memory_space<vmem>>, vector<2x10xf32>
    tpu.vector_store %arg10[%c0_280, %c0_281], %294 {strides = array<i32>} : memref<2x10xf32, #tpu.memory_space<vmem>>, vector<2x10xf32>,
    return
  }
  func.func @transform_0(%arg0: i32) -> (i32, i32) {
    %c0_i32 = arith.constant 0 : i32
    %c0_i32_0 = arith.constant 0 : i32
    return %arg0, %c0_i32 : i32, i32
  }
  func.func @transform_1(%arg0: i32) -> (i32, i32) {
    %c0_i32 = arith.constant 0 : i32
    %c0_i32_0 = arith.constant 0 : i32
    %c0_i32_1 = arith.constant 0 : i32
    return %c0_i32, %c0_i32_0 : i32, i32
  }
  func.func @transform_2(%arg0: i32) -> (i32, i32) {
    %c0_i32 = arith.constant 0 : i32
    %c0_i32_0 = arith.constant 0 : i32
    %c0_i32_1 = arith.constant 0 : i32
    return %c0_i32, %c0_i32_0 : i32, i32
  }
  func.func @transform_3(%arg0: i32) -> (i32, i32) {
    %c0_i32 = arith.constant 0 : i32
    %c0_i32_0 = arith.constant 0 : i32
    %c0_i32_1 = arith.constant 0 : i32
    return %c0_i32, %c0_i32_0 : i32, i32
  }
  func.func @transform_4(%arg0: i32) -> (i32, i32) {
    %c0_i32 = arith.constant 0 : i32
    %c0_i32_0 = arith.constant 0 : i32
    %c0_i32_1 = arith.constant 0 : i32
    return %c0_i32, %c0_i32_0 : i32, i32
  }
  func.func @transform_5(%arg0: i32) -> (i32, i32) {
    %c0_i32 = arith.constant 0 : i32
    %c0_i32_0 = arith.constant 0 : i32
    %c0_i32_1 = arith.constant 0 : i32
    return %c0_i32, %c0_i32_0 : i32, i32
  }
  func.func @transform_6(%arg0: i32) -> (i32, i32) {
    %c0_i32 = arith.constant 0 : i32
    %c0_i32_0 = arith.constant 0 : i32
    %c0_i32_1 = arith.constant 0 : i32
    return %c0_i32, %c0_i32_0 : i32, i32
  }
  func.func @transform_7(%arg0: i32) -> (i32, i32) {
    %c0_i32 = arith.constant 0 : i32
    %c0_i32_0 = arith.constant 0 : i32
    %c0_i32_1 = arith.constant 0 : i32
    return %c0_i32, %c0_i32_0 : i32, i32
  }
  func.func @transform_8(%arg0: i32) -> (i32, i32) {
    %c0_i32 = arith.constant 0 : i32
    %c0_i32_0 = arith.constant 0 : i32
    %c0_i32_1 = arith.constant 0 : i32
    return %c0_i32, %c0_i32_0 : i32, i32
  }
  func.func @transform_9(%arg0: i32) -> (i32, i32) {
    %c0_i32 = arith.constant 0 : i32
    %c0_i32_0 = arith.constant 0 : i32
    return %arg0, %c0_i32 : i32, i32
  }
}

</mosaic_0001>

<bundles_post_ra>
// kernel: net_forward.1
= control target key start
LH: loop header
LB: loop body
LE: loop exit
PB: predicated region body
PF: predicated region fallthrough
CT: control target
= control target key end

     0   :  { %vm229_vm0 = vcmask 261120   ;;  %s10097_s0 = inlined_call_operand.vmem [shape: f32[1536,32], index: 0, kind: input, shape index: {}]   ;;  %s10098_s1 = inlined_call_operand.vmem [shape: f32[32,16], index: 1, kind: input, shape index: {}]   ;;  %s10099_s2 = inlined_call_operand.vmem [shape: f32[1,16], index: 2, kind: input, shape index: {}]   ;;  %s10100_s3 = inlined_call_operand.vmem [shape: f32[400,32], index: 3, kind: input, shape index: {}]   ;;  %s10101_s4 = inlined_call_operand.vmem [shape: f32[1,32], index: 4, kind: input, shape index: {}]   ;;  %s10102_s5 = inlined_call_operand.vmem [shape: f32[512,50], index: 5, kind: input, shape index: {}]   ;;  %s10103_s6 = inlined_call_operand.vmem [shape: f32[1,50], index: 6, kind: input, shape index: {}]   ;;  %s10104_s7 = inlined_call_operand.vmem [shape: f32[50,10], index: 7, kind: input, shape index: {}]   ;;  %s10105_s8 = inlined_call_operand.vmem [shape: f32[1,10], index: 8, kind: input, shape index: {}]   ;;  %s10106_s9 = inlined_call_operand.hbm [shape: f32[2,10], index: 9, kind: output, shape index: {}]  }
   0x1   :  { %v225_v0 = vld [vmem:[%s10098_s1] sm:$0xff]  ;;  %v226_v1 = vld [vmem:[%s10098_s1 + $0x8] sm:$0xff]  ;;  %v227_v2 = vld [vmem:[%s10098_s1 + $0x10] sm:$0xff] }
   0x2   :  { %v6666_v3 = vpack.c.bf16 %v226_v1, %v225_v0  ;;  %v228_v4 = vld [vmem:[%s10098_s1 + $0x18] sm:$0xff]  ;;  %v33_v5 = vld [vmem:[%s10097_s0] sm:$0xff]  ;;  %v34_v7 = vld [vmem:[%s10097_s0 + $0x8] sm:$0xff] }
   0x3   :  { %v6670_v6 = vpack.c.bf16 %v228_v4, %v227_v2  ;;  %6361 = vmatprep.mubr.msk.f32.mxu0 %vm229_vm0, %v33_v5  ;;  %v35_v8 = vld [vmem:[%s10097_s0 + $0x10] sm:$0xff]  ;;  %v36_v9 = vld [vmem:[%s10097_s0 + $0x18] sm:$0xff]  ;;  %v37_v10 = vld [vmem:[%s10097_s0 + $0x20] sm:$0xff] }
   0x4   :  { %6667 = vmatprep.subr.bf16.mxu0 %v6666_v3  ;;  %6806 = vmatprep.subr.bf16.mxu1 %v6666_v3  ;;  %v38_v11 = vld [vmem:[%s10097_s0 + $0x28] sm:$0xff]  ;;  %v39_v12 = vld [vmem:[%s10097_s0 + $0x30] sm:$0xff]  ;;  %v40_v13 = vld [vmem:[%s10097_s0 + $0x38] sm:$0xff] }
   0x5   :  { %6669 = vmatpush3.bf16.msra.mxu0 %v6666_v3  ;;  %6808 = vmatpush3.bf16.msra.mxu1 %v6666_v3  ;;  %v41_v14 = vld [vmem:[%s10097_s0 + $0x40] sm:$0xff]  ;;  %v42_v15 = vld [vmem:[%s10097_s0 + $0x48] sm:$0xff]  ;;  %v43_v16 = vld [vmem:[%s10097_s0 + $0x50] sm:$0xff] }
   0x6   :  { %6671 = vmatprep.subr.bf16.mxu0 %v6670_v6  ;;  %6807 = vmatprep.subr.bf16.mxu1 %v6670_v6 }
   0x9   :  { %6673 = vmatpush3.bf16.msra.mxu0 %v6670_v6  ;;  %6809 = vmatpush3.bf16.msra.mxu1 %v6670_v6 }
   0xc   :  { %6362 = vmatmul.mubr.msk.f32.vlgmr.msra.gmra.mrb[0].mxu0 %vm229_vm0, %v34_v7 }
   0xd   :  { %6364 = vmatprep.mubr.msk.f32.mxu0 %vm229_vm0, %v35_v8 }
  0x10   :  { %6365 = vmatmul.mubr.msk.f32.gmra.mrb[2].mxu0 %vm229_vm0, %v36_v9 }
  0x11   :  { %6367 = vmatprep.mubr.msk.f32.mxu0 %vm229_vm0, %v37_v10 }
  0x14   :  { %6368 = vmatmul.mubr.msk.f32.gmra.mrb[4].mxu0 %vm229_vm0, %v38_v11 }
  0x15   :  { %6370 = vmatprep.mubr.msk.f32.mxu0 %vm229_vm0, %v39_v12 }
  0x18   :  { %6371 = vmatmul.mubr.msk.f32.gmra.mrb[6].mxu0 %vm229_vm0, %v40_v13 }
  0x19   :  { %6373 = vmatprep.mubr.msk.f32.mxu0 %vm229_vm0, %v41_v14 }
  0x1a   :  { %14 = vsyncpa [#allocation6], 0  ;;  %v44_v17 = vld [vmem:[%s10097_s0 + $0x58] sm:$0xff]  ;;  %v45_v18 = vld [vmem:[%s10097_s0 + $0x60] sm:$0xff]  ;;  %vm2078_vm1 = vcmask 130048   ;;  %s6852_s27 = smov 32  }
  0x1b   :  { %v46_v19 = vld [vmem:[%s10097_s0 + $0x68] sm:$0xff]  ;;  %v47_v20 = vld [vmem:[%s10097_s0 + $0x70] sm:$0xff]  ;;  %v48_v21 = vld [vmem:[%s10097_s0 + $0x78] sm:$0xff]  ;;  %s6853_s28 = smov 16   ;;  %s6854_s29 = smov 48   ;;  %vm2239_vm2 = vcmask 261248  }
  0x1c   :  { %6374 = vmatmul.mubr.msk.f32.gmra.mrb[8].mxu0 %vm229_vm0, %v42_v15  ;;  %v49_v22 = vld [vmem:[%s10097_s0 + $0x80] sm:$0xff]  ;;  %v50_v23 = vld [vmem:[%s10097_s0 + $0x88] sm:$0xff]  ;;  %v51_v24 = vld [vmem:[%s10097_s0 + $0x90] sm:$0xff]  ;;  %s6855_s30 = smov 64   ;;  %s6856_s10 = smov 80   ;;  %vm2336_vm3 = vcmask 392448  }
  0x1d   :  { %6376 = vmatprep.mubr.msk.f32.mxu0 %vm229_vm0, %v43_v16  ;;  %v52_v25 = vld [vmem:[%s10097_s0 + $0x98] sm:$0xff]  ;;  %v53_v26 = vld [vmem:[%s10097_s0 + $0xa0] sm:$0xff]  ;;  %v54_v27 = vld [vmem:[%s10097_s0 + $0xa8] sm:$0xff]  ;;  %s6857_s11 = smov 96   ;;  %s6858_s16 = smov 112   ;;  %vm2433_vm4 = vcmask 523648  }
  0x1e   :  { %v55_v28 = vld [vmem:[%s10097_s0 + $0xb0] sm:$0xff]  ;;  %v56_v29 = vld [vmem:[%s10097_s0 + $0xb8] sm:$0xff]  ;;  %v57_v30 = vld [vmem:[%s10097_s0 + $0xc0] sm:$0xff]  ;;  %vm2530_vm5 = vcmask 654848   ;;  %vm2628_vm6 = vcmask 786048   ;;  %vm2725_vm7 = vcmask 917248  }
  0x1f   :  { %v58_v31 = vld [vmem:[%s10097_s0 + $0xc8] sm:$0xff]  ;;  %v59_v32 = vld [vmem:[%s10097_s0 + $0xd0] sm:$0xff]  ;;  %v60_v33 = vld [vmem:[%s10097_s0 + $0xd8] sm:$0xff]  ;;  %vm2822_vm8 = vcmask 1048448   ;;  %vm4776_vm9 = vcmask 1041409   ;;  %vm4778_vm10 = vcmask 1043459  }
  0x20   :  { %6377 = vmatmul.mubr.msk.f32.gmra.mrb[10].mxu0 %vm229_vm0, %v44_v17  ;;  %v61_v34 = vld [vmem:[%s10097_s0 + $0xe0] sm:$0xff]  ;;  %v62_v35 = vld [vmem:[%s10097_s0 + $0xe8] sm:$0xff]  ;;  %v63_v36 = vld [vmem:[%s10097_s0 + $0xf0] sm:$0xff]  ;;  %vm4780_vm11 = vcmask 1045509   ;;  %vm4782_vm12 = vcmask 1047559   ;;  %vm4785_vm13 = vcmask 254976  }
  0x21   :  { %6379 = vmatprep.mubr.msk.f32.mxu0 %vm229_vm0, %v45_v18  ;;  %v64_v37 = vld [vmem:[%s10097_s0 + $0xf8] sm:$0xff]  ;;  %v65_v38 = vld [vmem:[%s10097_s0 + $0x100] sm:$0xff]  ;;  %v66_v39 = vld [vmem:[%s10097_s0 + $0x108] sm:$0xff]  ;;  %vm4826_vm14 = vcmask 517376   ;;  %vm4867_vm15 = vcmask 779776  }
  0x22   :  { %v67_v40 = vld [vmem:[%s10097_s0 + $0x110] sm:$0xff]  ;;  %v68_v41 = vld [vmem:[%s10097_s0 + $0x118] sm:$0xff]  ;;  %v69_v42 = vld [vmem:[%s10097_s0 + $0x120] sm:$0xff] }
  0x23   :  { %v70_v43 = vld [vmem:[%s10097_s0 + $0x128] sm:$0xff]  ;;  %v71_v44 = vld [vmem:[%s10097_s0 + $0x130] sm:$0xff]  ;;  %v72_v45 = vld [vmem:[%s10097_s0 + $0x138] sm:$0xff] }
  0x24   :  { %6380 = vmatmul.mubr.msk.f32.gmra.mrb[12].mxu0 %vm229_vm0, %v46_v19  ;;  %v73_v46 = vld [vmem:[%s10097_s0 + $0x140] sm:$0xff]  ;;  %v74_v47 = vld [vmem:[%s10097_s0 + $0x148] sm:$0xff]  ;;  %v75_v48 = vld [vmem:[%s10097_s0 + $0x150] sm:$0xff] }
  0x25   :  { %6382 = vmatprep.mubr.msk.f32.mxu0 %vm229_vm0, %v47_v20  ;;  %v76_v49 = vld [vmem:[%s10097_s0 + $0x158] sm:$0xff]  ;;  %v77_v50 = vld [vmem:[%s10097_s0 + $0x160] sm:$0xff]  ;;  %v78_v51 = vld [vmem:[%s10097_s0 + $0x168] sm:$0xff] }
  0x26   :  { %v79_v52 = vld [vmem:[%s10097_s0 + $0x170] sm:$0xff]  ;;  %v80_v53 = vld [vmem:[%s10097_s0 + $0x178] sm:$0xff]  ;;  %v81_v54 = vld [vmem:[%s10097_s0 + $0x180] sm:$0xff] }
  0x27   :  { %v82_v55 = vld [vmem:[%s10097_s0 + $0x188] sm:$0xff]  ;;  %v83_v56 = vld [vmem:[%s10097_s0 + $0x190] sm:$0xff]  ;;  %v84_v57 = vld [vmem:[%s10097_s0 + $0x198] sm:$0xff] }
  0x28   :  { %6383 = vmatmul.mubr.msk.f32.gmra.mrb[14].mxu0 %vm229_vm0, %v48_v21  ;;  %v85_v58 = vld [vmem:[%s10097_s0 + $0x1a0] sm:$0xff]  ;;  %v86_v59 = vld [vmem:[%s10097_s0 + $0x1a8] sm:$0xff]  ;;  %v87_v60 = vld [vmem:[%s10097_s0 + $0x1b0] sm:$0xff] }
  0x29   :  { %6385 = vmatprep.mubr.msk.f32.mxu0 %vm229_vm0, %v49_v22  ;;  %v88_v61 = vld [vmem:[%s10097_s0 + $0x1b8] sm:$0xff]  ;;  %v89_v62 = vld [vmem:[%s10097_s0 + $0x1c0] sm:$0xff]  ;;  %v90_v63 = vld [vmem:[%s10097_s0 + $0x1c8] sm:$0xff] }
  0x2a   :  { %v91_v0 = vld [vmem:[%s10097_s0 + $0x1d0] sm:$0xff]  ;;  %v92_v1 = vld [vmem:[%s10097_s0 + $0x1d8] sm:$0xff]  ;;  %v93_v2 = vld [vmem:[%s10097_s0 + $0x1e0] sm:$0xff] }
  0x2b   :  { %v94_v3 = vld [vmem:[%s10097_s0 + $0x1e8] sm:$0xff]  ;;  %v95_v4 = vld [vmem:[%s10097_s0 + $0x1f0] sm:$0xff]  ;;  %v96_v5 = vld [vmem:[%s10097_s0 + $0x1f8] sm:$0xff] }
  0x2c   :  { %6386 = vmatmul.mubr.msk.f32.gmra.mrb[16].mxu0 %vm229_vm0, %v50_v23  ;;  %v97_v6 = vld [vmem:[%s10097_s0 + $0x200] sm:$0xff]  ;;  %v98_v7 = vld [vmem:[%s10097_s0 + $0x208] sm:$0xff]  ;;  %v99_v8 = vld [vmem:[%s10097_s0 + $0x210] sm:$0xff] }
  0x2d   :  { %6388 = vmatprep.mubr.msk.f32.mxu0 %vm229_vm0, %v51_v24  ;;  %v100_v9 = vld [vmem:[%s10097_s0 + $0x218] sm:$0xff]  ;;  %v101_v10 = vld [vmem:[%s10097_s0 + $0x220] sm:$0xff]  ;;  %v102_v11 = vld [vmem:[%s10097_s0 + $0x228] sm:$0xff] }
  0x2e   :  { %v103_v12 = vld [vmem:[%s10097_s0 + $0x230] sm:$0xff]  ;;  %v104_v13 = vld [vmem:[%s10097_s0 + $0x238] sm:$0xff]  ;;  %v105_v14 = vld [vmem:[%s10097_s0 + $0x240] sm:$0xff] }
  0x2f   :  { %v106_v15 = vld [vmem:[%s10097_s0 + $0x248] sm:$0xff]  ;;  %v107_v16 = vld [vmem:[%s10097_s0 + $0x250] sm:$0xff]  ;;  %v108_v17 = vld [vmem:[%s10097_s0 + $0x258] sm:$0xff] }
  0x30   :  { %6389 = vmatmul.mubr.msk.f32.gmra.mrb[18].mxu0 %vm229_vm0, %v52_v25  ;;  %v109_v18 = vld [vmem:[%s10097_s0 + $0x260] sm:$0xff]  ;;  %v110_v19 = vld [vmem:[%s10097_s0 + $0x268] sm:$0xff]  ;;  %v175_v20 = vld [vmem:[%s10097_s0 + $0x470] sm:$0xff] }
  0x31   :  { %6391 = vmatprep.mubr.msk.f32.mxu0 %vm229_vm0, %v53_v26  ;;  %v111_v21 = vld [vmem:[%s10097_s0 + $0x270] sm:$0xff]  ;;  %6574 = vmatprep.mubr.msk.f32.mxu1 %vm229_vm0, %v175_v20  ;;  %v176_v22 = vld [vmem:[%s10097_s0 + $0x478] sm:$0xff]  ;;  %v177_v24 = vld [vmem:[%s10097_s0 + $0x480] sm:$0xff] }
  0x32   :  { %6575 = vmatmul.mubr.msk.f32.vlgmr.msra.gmra.mrb[0].mxu1 %vm229_vm0, %v176_v22  ;;  %v112_v23 = vld [vmem:[%s10097_s0 + $0x278] sm:$0xff]  ;;  %v113_v25 = vld [vmem:[%s10097_s0 + $0x280] sm:$0xff]  ;;  %v178_v26 = vld [vmem:[%s10097_s0 + $0x488] sm:$0xff] }
  0x33   :  { %6577 = vmatprep.mubr.msk.f32.mxu1 %vm229_vm0, %v177_v24  ;;  %v137_v20 = vld [vmem:[%s10097_s0 + $0x340] sm:$0xff]  ;;  %v138_v22 = vld [vmem:[%s10097_s0 + $0x348] sm:$0xff] }
  0x34   :  { %6392 = vmatmul.mubr.msk.f32.gmra.mrb[20].mxu0 %vm229_vm0, %v54_v27  ;;  %v114_v27 = vld [vmem:[%s10097_s0 + $0x288] sm:$0xff] }
  0x35   :  { %6394 = vmatprep.mubr.msk.f32.mxu0 %vm229_vm0, %v55_v28  ;;  %v179_v28 = vld [vmem:[%s10097_s0 + $0x490] sm:$0xff] }
  0x36   :  { %6578 = vmatmul.mubr.msk.f32.gmra.mrb[2].mxu1 %vm229_vm0, %v178_v26  ;;  %v139_v26 = vld [vmem:[%s10097_s0 + $0x350] sm:$0xff] }
  0x37   :  { %6580 = vmatprep.mubr.msk.f32.mxu1 %vm229_vm0, %v179_v28  ;;  %v140_v28 = vld [vmem:[%s10097_s0 + $0x358] sm:$0xff] }
  0x38   :  { %6395 = vmatmul.mubr.msk.f32.gmra.mrb[22].mxu0 %vm229_vm0, %v56_v29  ;;  %v115_v29 = vld [vmem:[%s10097_s0 + $0x290] sm:$0xff] }
  0x39   :  { %6397 = vmatprep.mubr.msk.f32.mxu0 %vm229_vm0, %v57_v30  ;;  %v180_v30 = vld [vmem:[%s10097_s0 + $0x498] sm:$0xff] }
  0x3a   :  { %6581 = vmatmul.mubr.msk.f32.gmra.mrb[4].mxu1 %vm229_vm0, %v180_v30 }
  0x3c   :  { %6398 = vmatmul.mubr.msk.f32.gmra.mrb[24].mxu0 %vm229_vm0, %v58_v31  ;;  %v116_v31 = vld [vmem:[%s10097_s0 + $0x298] sm:$0xff] }
  0x3d   :  { %6400 = vmatprep.mubr.msk.f32.mxu0 %vm229_vm0, %v59_v32  ;;  %v181_v32 = vld [vmem:[%s10097_s0 + $0x4a0] sm:$0xff] }
  0x3e   :  { %6583 = vmatprep.mubr.msk.f32.mxu1 %vm229_vm0, %v181_v32  ;;  %v141_v32 = vld [vmem:[%s10097_s0 + $0x360] sm:$0xff] }
  0x40   :  { %6401 = vmatmul.mubr.msk.f32.gmra.mrb[26].mxu0 %vm229_vm0, %v60_v33  ;;  %v117_v33 = vld [vmem:[%s10097_s0 + $0x2a0] sm:$0xff] }
  0x41   :  { %6403 = vmatprep.mubr.msk.f32.mxu0 %vm229_vm0, %v61_v34  ;;  %v182_v34 = vld [vmem:[%s10097_s0 + $0x4a8] sm:$0xff] }
  0x42   :  { %6584 = vmatmul.mubr.msk.f32.gmra.mrb[6].mxu1 %vm229_vm0, %v182_v34  ;;  %v142_v34 = vld [vmem:[%s10097_s0 + $0x368] sm:$0xff] }
  0x44   :  { %6404 = vmatmul.mubr.msk.f32.gmra.mrb[28].mxu0 %vm229_vm0, %v62_v35  ;;  %v118_v35 = vld [vmem:[%s10097_s0 + $0x2a8] sm:$0xff] }
  0x45   :  { %6406 = vmatprep.mubr.msk.f32.mxu0 %vm229_vm0, %v63_v36  ;;  %v183_v36 = vld [vmem:[%s10097_s0 + $0x4b0] sm:$0xff] }
  0x46   :  { %6586 = vmatprep.mubr.msk.f32.mxu1 %vm229_vm0, %v183_v36 }
  0x48   :  { %6407 = vmatmul.mubr.msk.f32.gmra.mrb[30].mxu0 %vm229_vm0, %v64_v37  ;;  %v119_v37 = vld [vmem:[%s10097_s0 + $0x2b0] sm:$0xff] }
  0x49   :  { %6409 = vmatprep.mubr.msk.f32.mxu0 %vm229_vm0, %v65_v38  ;;  %v184_v38 = vld [vmem:[%s10097_s0 + $0x4b8] sm:$0xff] }
  0x4a   :  { %6587 = vmatmul.mubr.msk.f32.gmra.mrb[8].mxu1 %vm229_vm0, %v184_v38  ;;  %v143_v38 = vld [vmem:[%s10097_s0 + $0x370] sm:$0xff] }
  0x4c   :  { %6410 = vmatmul.mubr.msk.f32.gmra.mrb[32].mxu0 %vm229_vm0, %v66_v39  ;;  %v120_v39 = vld [vmem:[%s10097_s0 + $0x2b8] sm:$0xff] }
  0x4d   :  { %6412 = vmatprep.mubr.msk.f32.mxu0 %vm229_vm0, %v67_v40  ;;  %v185_v40 = vld [vmem:[%s10097_s0 + $0x4c0] sm:$0xff] }
  0x4e   :  { %6589 = vmatprep.mubr.msk.f32.mxu1 %vm229_vm0, %v185_v40  ;;  %v144_v40 = vld [vmem:[%s10097_s0 + $0x378] sm:$0xff] }
  0x50   :  { %6413 = vmatmul.mubr.msk.f32.gmra.mrb[34].mxu0 %vm229_vm0, %v68_v41  ;;  %v121_v41 = vld [vmem:[%s10097_s0 + $0x2c0] sm:$0xff] }
  0x51   :  { %6415 = vmatprep.mubr.msk.f32.mxu0 %vm229_vm0, %v69_v42  ;;  %v186_v42 = vld [vmem:[%s10097_s0 + $0x4c8] sm:$0xff] }
  0x52   :  { %6590 = vmatmul.mubr.msk.f32.gmra.mrb[10].mxu1 %vm229_vm0, %v186_v42 }
  0x54   :  { %6416 = vmatmul.mubr.msk.f32.gmra.mrb[36].mxu0 %vm229_vm0, %v70_v43  ;;  %v122_v43 = vld [vmem:[%s10097_s0 + $0x2c8] sm:$0xff] }
  0x55   :  { %6418 = vmatprep.mubr.msk.f32.mxu0 %vm229_vm0, %v71_v44  ;;  %v187_v44 = vld [vmem:[%s10097_s0 + $0x4d0] sm:$0xff] }
  0x56   :  { %6592 = vmatprep.mubr.msk.f32.mxu1 %vm229_vm0, %v187_v44  ;;  %v145_v44 = vld [vmem:[%s10097_s0 + $0x380] sm:$0xff] }
  0x58   :  { %6419 = vmatmul.mubr.msk.f32.gmra.mrb[38].mxu0 %vm229_vm0, %v72_v45  ;;  %v123_v45 = vld [vmem:[%s10097_s0 + $0x2d0] sm:$0xff] }
  0x59   :  { %6421 = vmatprep.mubr.msk.f32.mxu0 %vm229_vm0, %v73_v46  ;;  %v188_v46 = vld [vmem:[%s10097_s0 + $0x4d8] sm:$0xff] }
  0x5a   :  { %6593 = vmatmul.mubr.msk.f32.gmra.mrb[12].mxu1 %vm229_vm0, %v188_v46  ;;  %v146_v46 = vld [vmem:[%s10097_s0 + $0x388] sm:$0xff] }
  0x5c   :  { %6422 = vmatmul.mubr.msk.f32.gmra.mrb[40].mxu0 %vm229_vm0, %v74_v47  ;;  %v124_v47 = vld [vmem:[%s10097_s0 + $0x2d8] sm:$0xff] }
  0x5d   :  { %6424 = vmatprep.mubr.msk.f32.mxu0 %vm229_vm0, %v75_v48  ;;  %v189_v48 = vld [vmem:[%s10097_s0 + $0x4e0] sm:$0xff] }
  0x5e   :  { %6595 = vmatprep.mubr.msk.f32.mxu1 %vm229_vm0, %v189_v48 }
  0x60   :  { %6425 = vmatmul.mubr.msk.f32.gmra.mrb[42].mxu0 %vm229_vm0, %v76_v49  ;;  %v125_v49 = vld [vmem:[%s10097_s0 + $0x2e0] sm:$0xff] }
  0x61   :  { %6427 = vmatprep.mubr.msk.f32.mxu0 %vm229_vm0, %v77_v50  ;;  %v190_v50 = vld [vmem:[%s10097_s0 + $0x4e8] sm:$0xff] }
  0x62   :  { %6596 = vmatmul.mubr.msk.f32.gmra.mrb[14].mxu1 %vm229_vm0, %v190_v50  ;;  %v147_v50 = vld [vmem:[%s10097_s0 + $0x390] sm:$0xff] }
  0x64   :  { %6428 = vmatmul.mubr.msk.f32.gmra.mrb[44].mxu0 %vm229_vm0, %v78_v51  ;;  %v191_v51 = vld [vmem:[%s10097_s0 + $0x4f0] sm:$0xff] }
  0x65   :  { %6430 = vmatprep.mubr.msk.f32.mxu0 %vm229_vm0, %v79_v52  ;;  %v126_v52 = vld [vmem:[%s10097_s0 + $0x2e8] sm:$0xff]  ;;  %6598 = vmatprep.mubr.msk.f32.mxu1 %vm229_vm0, %v191_v51  ;;  %v219_v51 = vld [vmem:[%s10097_s0 + $0x5d0] sm:$0xff] }
  0x68   :  { %6431 = vmatmul.mubr.msk.f32.gmra.mrb[46].mxu0 %vm229_vm0, %v80_v53  ;;  %v127_v53 = vld [vmem:[%s10097_s0 + $0x2f0] sm:$0xff] }
  0x69   :  { %6433 = vmatprep.mubr.msk.f32.mxu0 %vm229_vm0, %v81_v54  ;;  %v192_v54 = vld [vmem:[%s10097_s0 + $0x4f8] sm:$0xff] }
  0x6a   :  { %6599 = vmatmul.mubr.msk.f32.gmra.mrb[16].mxu1 %vm229_vm0, %v192_v54 }
  0x6c   :  { %6434 = vmatmul.mubr.msk.f32.gmra.mrb[48].mxu0 %vm229_vm0, %v82_v55  ;;  %v193_v55 = vld [vmem:[%s10097_s0 + $0x500] sm:$0xff] }
  0x6d   :  { %6436 = vmatprep.mubr.msk.f32.mxu0 %vm229_vm0, %v83_v56  ;;  %v128_v56 = vld [vmem:[%s10097_s0 + $0x2f8] sm:$0xff]  ;;  %6601 = vmatprep.mubr.msk.f32.mxu1 %vm229_vm0, %v193_v55 }
  0x70   :  { %6437 = vmatmul.mubr.msk.f32.gmra.mrb[50].mxu0 %vm229_vm0, %v84_v57  ;;  %v194_v57 = vld [vmem:[%s10097_s0 + $0x508] sm:$0xff] }
  0x71   :  { %6439 = vmatprep.mubr.msk.f32.mxu0 %vm229_vm0, %v85_v58  ;;  %6602 = vmatmul.mubr.msk.f32.gmra.mrb[18].mxu1 %vm229_vm0, %v194_v57  ;;  %v195_v58 = vld [vmem:[%s10097_s0 + $0x510] sm:$0xff]  ;;  %v221_v57 = vld [vmem:[%s10097_s0 + $0x5e0] sm:$0xff] }
  0x72   :  { %6604 = vmatprep.mubr.msk.f32.mxu1 %vm229_vm0, %v195_v58  ;;  %v150_v58 = vld [vmem:[%s10097_s0 + $0x3a8] sm:$0xff] }
  0x74   :  { %6440 = vmatmul.mubr.msk.f32.gmra.mrb[52].mxu0 %vm229_vm0, %v86_v59  ;;  %v196_v59 = vld [vmem:[%s10097_s0 + $0x518] sm:$0xff] }
  0x75   :  { %6442 = vmatprep.mubr.msk.f32.mxu0 %vm229_vm0, %v87_v60  ;;  %6605 = vmatmul.mubr.msk.f32.gmra.mrb[20].mxu1 %vm229_vm0, %v196_v59  ;;  %v197_v60 = vld [vmem:[%s10097_s0 + $0x520] sm:$0xff]  ;;  %v222_v59 = vld [vmem:[%s10097_s0 + $0x5e8] sm:$0xff] }
  0x76   :  { %6607 = vmatprep.mubr.msk.f32.mxu1 %vm229_vm0, %v197_v60 }
  0x78   :  { %6443 = vmatmul.mubr.msk.f32.gmra.mrb[54].mxu0 %vm229_vm0, %v88_v61  ;;  %v198_v61 = vld [vmem:[%s10097_s0 + $0x528] sm:$0xff] }
  0x79   :  { %6445 = vmatprep.mubr.msk.f32.mxu0 %vm229_vm0, %v89_v62  ;;  %6608 = vmatmul.mubr.msk.f32.gmra.mrb[22].mxu1 %vm229_vm0, %v198_v61  ;;  %v199_v62 = vld [vmem:[%s10097_s0 + $0x530] sm:$0xff] }
  0x7a   :  { %6610 = vmatprep.mubr.msk.f32.mxu1 %vm229_vm0, %v199_v62  ;;  %v151_v62 = vld [vmem:[%s10097_s0 + $0x3b0] sm:$0xff] }
  0x7c   :  { %6446 = vmatmul.mubr.msk.f32.gmra.mrb[56].mxu0 %vm229_vm0, %v90_v63  ;;  %v200_v63 = vld [vmem:[%s10097_s0 + $0x538] sm:$0xff] }
  0x7d   :  { %6448 = vmatprep.mubr.msk.f32.mxu0 %vm229_vm0, %v91_v0  ;;  %6611 = vmatmul.mubr.msk.f32.gmra.mrb[24].mxu1 %vm229_vm0, %v200_v63  ;;  %v129_v0 = vld [vmem:[%s10097_s0 + $0x300] sm:$0xff]  ;;  %v223_v63 = vld [vmem:[%s10097_s0 + $0x5f0] sm:$0xff] }
  0x80   :  { %6449 = vmatmul.mubr.msk.f32.gmra.mrb[58].mxu0 %vm229_vm0, %v92_v1  ;;  %v201_v1 = vld [vmem:[%s10097_s0 + $0x540] sm:$0xff] }
  0x81   :  { %6451 = vmatprep.mubr.msk.f32.mxu0 %vm229_vm0, %v93_v2  ;;  %6613 = vmatprep.mubr.msk.f32.mxu1 %vm229_vm0, %v201_v1  ;;  %v130_v2 = vld [vmem:[%s10097_s0 + $0x308] sm:$0xff]  ;;  %v224_v1 = vld [vmem:[%s10097_s0 + $0x5f8] sm:$0xff] }
  0x84   :  { %6452 = vmatmul.mubr.msk.f32.gmra.mrb[60].mxu0 %vm229_vm0, %v94_v3  ;;  %v202_v3 = vld [vmem:[%s10097_s0 + $0x548] sm:$0xff] }
  0x85   :  { %6454 = vmatprep.mubr.msk.f32.mxu0 %vm229_vm0, %v95_v4  ;;  %6614 = vmatmul.mubr.msk.f32.gmra.mrb[26].mxu1 %vm229_vm0, %v202_v3  ;;  %v131_v4 = vld [vmem:[%s10097_s0 + $0x310] sm:$0xff] }
  0x88   :  { %6455 = vmatmul.mubr.msk.f32.gmra.mrb[62].mxu0 %vm229_vm0, %v96_v5  ;;  %v203_v5 = vld [vmem:[%s10097_s0 + $0x550] sm:$0xff] }
  0x89   :  { %6457 = vmatprep.mubr.msk.f32.mxu0 %vm229_vm0, %v97_v6  ;;  %6616 = vmatprep.mubr.msk.f32.mxu1 %vm229_vm0, %v203_v5  ;;  %v132_v6 = vld [vmem:[%s10097_s0 + $0x318] sm:$0xff]  ;;  %v154_v5 = vld [vmem:[%s10097_s0 + $0x3c8] sm:$0xff] }
  0x8c   :  { %6458 = vmatmul.mubr.msk.f32.gmra.mrb[64].mxu0 %vm229_vm0, %v98_v7  ;;  %v204_v7 = vld [vmem:[%s10097_s0 + $0x558] sm:$0xff] }
  0x8d   :  { %6460 = vmatprep.mubr.msk.f32.mxu0 %vm229_vm0, %v99_v8  ;;  %6617 = vmatmul.mubr.msk.f32.gmra.mrb[28].mxu1 %vm229_vm0, %v204_v7  ;;  %v133_v8 = vld [vmem:[%s10097_s0 + $0x320] sm:$0xff] }
  0x90   :  { %6461 = vmatmul.mubr.msk.f32.gmra.mrb[66].mxu0 %vm229_vm0, %v100_v9  ;;  %v205_v9 = vld [vmem:[%s10097_s0 + $0x560] sm:$0xff] }
  0x91   :  { %6463 = vmatprep.mubr.msk.f32.mxu0 %vm229_vm0, %v101_v10  ;;  %6619 = vmatprep.mubr.msk.f32.mxu1 %vm229_vm0, %v205_v9  ;;  %v134_v10 = vld [vmem:[%s10097_s0 + $0x328] sm:$0xff] }
  0x94   :  { %6464 = vmatmul.mubr.msk.f32.gmra.mrb[68].mxu0 %vm229_vm0, %v102_v11  ;;  %v206_v11 = vld [vmem:[%s10097_s0 + $0x568] sm:$0xff] }
  0x95   :  { %6466 = vmatprep.mubr.msk.f32.mxu0 %vm229_vm0, %v103_v12  ;;  %6620 = vmatmul.mubr.msk.f32.gmra.mrb[30].mxu1 %vm229_vm0, %v206_v11 }
  0x98   :  { %6467 = vmatmul.mubr.msk.f32.gmra.mrb[70].mxu0 %vm229_vm0, %v104_v13 }
  0x99   :  { %6469 = vmatprep.mubr.msk.f32.mxu0 %vm229_vm0, %v105_v14  ;;  %v135_v14 = vld [vmem:[%s10097_s0 + $0x330] sm:$0xff] }
  0x9c   :  { %6470 = vmatmul.mubr.msk.f32.gmra.mrb[72].mxu0 %vm229_vm0, %v106_v15  ;;  %v207_v15 = vld [vmem:[%s10097_s0 + $0x570] sm:$0xff] }
  0x9d   :  { %6472 = vmatprep.mubr.msk.f32.mxu0 %vm229_vm0, %v107_v16  ;;  %6622 = vmatprep.mubr.msk.f32.mxu1 %vm229_vm0, %v207_v15  ;;  %v136_v16 = vld [vmem:[%s10097_s0 + $0x338] sm:$0xff] }
  0xa0   :  { %6473 = vmatmul.mubr.msk.f32.gmra.mrb[74].mxu0 %vm229_vm0, %v108_v17  ;;  %v208_v17 = vld [vmem:[%s10097_s0 + $0x578] sm:$0xff] }
  0xa1   :  { %6475 = vmatprep.mubr.msk.f32.mxu0 %vm229_vm0, %v109_v18  ;;  %6623 = vmatmul.mubr.msk.f32.gmra.mrb[32].mxu1 %vm229_vm0, %v208_v17 }
  0xa4   :  { %6476 = vmatmul.mubr.msk.f32.gmra.mrb[76].mxu0 %vm229_vm0, %v110_v19 }
  0xa5   :  { %6478 = vmatprep.mubr.msk.f32.mxu0 %vm229_vm0, %v111_v21  ;;  %v209_v21 = vld [vmem:[%s10097_s0 + $0x580] sm:$0xff] }
  0xa6   :  { %6625 = vmatprep.mubr.msk.f32.mxu1 %vm229_vm0, %v209_v21 }
  0xa8   :  { %6479 = vmatmul.mubr.msk.f32.gmra.mrb[78].mxu0 %vm229_vm0, %v112_v23  ;;  %v210_v23 = vld [vmem:[%s10097_s0 + $0x588] sm:$0xff] }
  0xa9   :  { %6481 = vmatprep.mubr.msk.f32.mxu0 %vm229_vm0, %v113_v25  ;;  %6626 = vmatmul.mubr.msk.f32.gmra.mrb[34].mxu1 %vm229_vm0, %v210_v23 }
  0xac   :  { %6482 = vmatmul.mubr.msk.f32.gmra.mrb[80].mxu0 %vm229_vm0, %v114_v27  ;;  %v211_v27 = vld [vmem:[%s10097_s0 + $0x590] sm:$0xff] }
  0xad   :  { %6484 = vmatprep.mubr.msk.f32.mxu0 %vm229_vm0, %v115_v29  ;;  %6628 = vmatprep.mubr.msk.f32.mxu1 %vm229_vm0, %v211_v27  ;;  %v212_v29 = vld [vmem:[%s10097_s0 + $0x598] sm:$0xff] }
  0xae   :  { %6629 = vmatmul.mubr.msk.f32.gmra.mrb[36].mxu1 %vm229_vm0, %v212_v29 }
  0xb0   :  { %6485 = vmatmul.mubr.msk.f32.gmra.mrb[82].mxu0 %vm229_vm0, %v116_v31 }
  0xb1   :  { %6487 = vmatprep.mubr.msk.f32.mxu0 %vm229_vm0, %v117_v33  ;;  %v213_v33 = vld [vmem:[%s10097_s0 + $0x5a0] sm:$0xff] }
  0xb2   :  { %6631 = vmatprep.mubr.msk.f32.mxu1 %vm229_vm0, %v213_v33 }
  0xb4   :  { %6488 = vmatmul.mubr.msk.f32.gmra.mrb[84].mxu0 %vm229_vm0, %v118_v35  ;;  %v214_v35 = vld [vmem:[%s10097_s0 + $0x5a8] sm:$0xff] }
  0xb5   :  { %6490 = vmatprep.mubr.msk.f32.mxu0 %vm229_vm0, %v119_v37  ;;  %6632 = vmatmul.mubr.msk.f32.gmra.mrb[38].mxu1 %vm229_vm0, %v214_v35 }
  0xb8   :  { %6491 = vmatmul.mubr.msk.f32.gmra.mrb[86].mxu0 %vm229_vm0, %v120_v39  ;;  %v215_v39 = vld [vmem:[%s10097_s0 + $0x5b0] sm:$0xff] }
  0xb9   :  { %6493 = vmatprep.mubr.msk.f32.mxu0 %vm229_vm0, %v121_v41  ;;  %6634 = vmatprep.mubr.msk.f32.mxu1 %vm229_vm0, %v215_v39  ;;  %v216_v41 = vld [vmem:[%s10097_s0 + $0x5b8] sm:$0xff] }
  0xba   :  { %6635 = vmatmul.mubr.msk.f32.gmra.mrb[40].mxu1 %vm229_vm0, %v216_v41 }
  0xbc   :  { %6494 = vmatmul.mubr.msk.f32.gmra.mrb[88].mxu0 %vm229_vm0, %v122_v43 }
  0xbd   :  { %6496 = vmatprep.mubr.msk.f32.mxu0 %vm229_vm0, %v123_v45  ;;  %v217_v45 = vld [vmem:[%s10097_s0 + $0x5c0] sm:$0xff] }
  0xbe   :  { %6637 = vmatprep.mubr.msk.f32.mxu1 %vm229_vm0, %v217_v45 }
  0xc0   :  { %6497 = vmatmul.mubr.msk.f32.gmra.mrb[90].mxu0 %vm229_vm0, %v124_v47  ;;  %v218_v47 = vld [vmem:[%s10097_s0 + $0x5c8] sm:$0xff] }
  0xc1   :  { %6499 = vmatprep.mubr.msk.f32.mxu0 %vm229_vm0, %v125_v49  ;;  %6638 = vmatmul.mubr.msk.f32.gmra.mrb[42].mxu1 %vm229_vm0, %v218_v47 }
  0xc2   :  { %6640 = vmatprep.mubr.msk.f32.mxu1 %vm229_vm0, %v219_v51 }
  0xc4   :  { %6500 = vmatmul.mubr.msk.f32.gmra.mrb[92].mxu0 %vm229_vm0, %v126_v52  ;;  %v148_v52 = vld [vmem:[%s10097_s0 + $0x398] sm:$0xff] }
  0xc5   :  { %6502 = vmatprep.mubr.msk.f32.mxu0 %vm229_vm0, %v127_v53  ;;  %v220_v53 = vld [vmem:[%s10097_s0 + $0x5d8] sm:$0xff] }
  0xc6   :  { %6641 = vmatmul.mubr.msk.f32.gmra.mrb[44].mxu1 %vm229_vm0, %v220_v53 }
  0xc7   :  { %6643 = vmatprep.mubr.msk.f32.mxu1 %vm229_vm0, %v221_v57 }
  0xc8   :  { %6503 = vmatmul.mubr.msk.f32.gmra.mrb[94].mxu0 %vm229_vm0, %v128_v56  ;;  %v149_v56 = vld [vmem:[%s10097_s0 + $0x3a0] sm:$0xff] }
  0xc9   :  { %6505 = vmatprep.mubr.msk.f32.mxu0 %vm229_vm0, %v129_v0  ;;  %v152_v0 = vld [vmem:[%s10097_s0 + $0x3b8] sm:$0xff] }
  0xca   :  { %6644 = vmatmul.mubr.msk.f32.gmra.mrb[46].mxu1 %vm229_vm0, %v222_v59 }
  0xcb   :  { %6646 = vmatprep.mubr.msk.f32.mxu1 %vm229_vm0, %v223_v63 }
  0xcc   :  { %6506 = vmatmul.mubr.msk.f32.gmra.mrb[96].mxu0 %vm229_vm0, %v130_v2 }
  0xcd   :  { %6508 = vmatprep.mubr.msk.f32.mxu0 %vm229_vm0, %v131_v4  ;;  %v153_v4 = vld [vmem:[%s10097_s0 + $0x3c0] sm:$0xff] }
  0xce   :  { %6647 = vmatmul.mubr.msk.f32.gmra.mrb[48].mxu1 %vm229_vm0, %v224_v1 }
  0xd0   :  { %6509 = vmatmul.mubr.msk.f32.gmra.mrb[98].mxu0 %vm229_vm0, %v132_v6 }
  0xd1   :  { %6511 = vmatprep.mubr.msk.f32.mxu0 %vm229_vm0, %v133_v8  ;;  %v155_v8 = vld [vmem:[%s10097_s0 + $0x3d0] sm:$0xff] }
  0xd4   :  { %6512 = vmatmul.mubr.msk.f32.gmra.mrb[100].mxu0 %vm229_vm0, %v134_v10  ;;  %v156_v10 = vld [vmem:[%s10097_s0 + $0x3d8] sm:$0xff] }
  0xd5   :  { %6514 = vmatprep.mubr.msk.f32.mxu0 %vm229_vm0, %v135_v14  ;;  %v157_v14 = vld [vmem:[%s10097_s0 + $0x3e0] sm:$0xff] }
  0xd8   :  { %6515 = vmatmul.mubr.msk.f32.gmra.mrb[102].mxu0 %vm229_vm0, %v136_v16  ;;  %v158_v16 = vld [vmem:[%s10097_s0 + $0x3e8] sm:$0xff] }
  0xd9   :  { %6517 = vmatprep.mubr.msk.f32.mxu0 %vm229_vm0, %v137_v20 }
  0xdc   :  { %6518 = vmatmul.mubr.msk.f32.gmra.mrb[104].mxu0 %vm229_vm0, %v138_v22  ;;  %v159_v22 = vld [vmem:[%s10097_s0 + $0x3f0] sm:$0xff] }
  0xdd   :  { %6520 = vmatprep.mubr.msk.f32.mxu0 %vm229_vm0, %v139_v26  ;;  %v160_v26 = vld [vmem:[%s10097_s0 + $0x3f8] sm:$0xff] }
  0xdf   :  { %v7460_v12 = vpop.f32.mrb[0].mxu0 }
  0xe0   :  { %v7464_v13 = vpop.f32.mrb[1].mxu0  ;;  %6521 = vmatmul.mubr.msk.f32.gmra.mrb[106].mxu0 %vm229_vm0, %v140_v28 }
  0xe1   :  { %6523 = vmatprep.mubr.msk.f32.mxu0 %vm229_vm0, %v141_v32  ;;  %v161_v32 = vld [vmem:[%s10097_s0 + $0x400] sm:$0xff] }
  0xe3   :  { %v7480_v18 = vpop.f32.mrb[2].mxu0 }
  0xe4   :  { %v7484_v19 = vpop.f32.mrb[3].mxu0  ;;  %6524 = vmatmul.mubr.msk.f32.gmra.mrb[108].mxu0 %vm229_vm0, %v142_v34  ;;  %v162_v34 = vld [vmem:[%s10097_s0 + $0x408] sm:$0xff] }
  0xe5   :  { %6526 = vmatprep.mubr.msk.f32.mxu0 %vm229_vm0, %v143_v38 }
  0xe7   :  { %v7500_v24 = vpop.f32.mrb[4].mxu0 }
  0xe8   :  { %v7504_v25 = vpop.f32.mrb[5].mxu0  ;;  %6527 = vmatmul.mubr.msk.f32.gmra.mrb[110].mxu0 %vm229_vm0, %v144_v40  ;;  %v163_v40 = vld [vmem:[%s10097_s0 + $0x410] sm:$0xff] }
  0xe9   :  { %6529 = vmatprep.mubr.msk.f32.mxu0 %vm229_vm0, %v145_v44  ;;  %v164_v44 = vld [vmem:[%s10097_s0 + $0x418] sm:$0xff] }
  0xeb   :  { %v7520_v30 = vpop.f32.mrb[6].mxu0 }
  0xec   :  { %v7524_v31 = vpop.f32.mrb[7].mxu0  ;;  %6530 = vmatmul.mubr.msk.f32.gmra.mrb[112].mxu0 %vm229_vm0, %v146_v46 }
  0xed   :  { %6532 = vmatprep.mubr.msk.f32.mxu0 %vm229_vm0, %v147_v50  ;;  %v165_v50 = vld [vmem:[%s10097_s0 + $0x420] sm:$0xff] }
  0xef   :  { %v7540_v36 = vpop.f32.mrb[8].mxu0 }
  0xf0   :  { %v7544_v37 = vpop.f32.mrb[9].mxu0  ;;  %6533 = vmatmul.mubr.msk.f32.gmra.mrb[114].mxu0 %vm229_vm0, %v148_v52  ;;  %v166_v52 = vld [vmem:[%s10097_s0 + $0x428] sm:$0xff] }
  0xf1   :  { %6535 = vmatprep.mubr.msk.f32.mxu0 %vm229_vm0, %v149_v56 }
  0xf3   :  { %v7560_v42 = vpop.f32.mrb[10].mxu0 }
  0xf4   :  { %v7564_v43 = vpop.f32.mrb[11].mxu0  ;;  %6536 = vmatmul.mubr.msk.f32.gmra.mrb[116].mxu0 %vm229_vm0, %v150_v58  ;;  %v167_v58 = vld [vmem:[%s10097_s0 + $0x430] sm:$0xff] }
  0xf5   :  { %6538 = vmatprep.mubr.msk.f32.mxu0 %vm229_vm0, %v151_v62  ;;  %v168_v62 = vld [vmem:[%s10097_s0 + $0x438] sm:$0xff] }
  0xf7   :  { %v7580_v48 = vpop.f32.mrb[12].mxu0 }
  0xf8   :  { %v7584_v49 = vpop.f32.mrb[13].mxu0  ;;  %6539 = vmatmul.mubr.msk.f32.gmra.mrb[118].mxu0 %vm229_vm0, %v152_v0 }
  0xf9   :  { %6541 = vmatprep.mubr.msk.f32.mxu0 %vm229_vm0, %v153_v4  ;;  %v169_v4 = vld [vmem:[%s10097_s0 + $0x440] sm:$0xff] }
  0xfb   :  { %v7600_v54 = vpop.f32.mrb[14].mxu0 }
  0xfc   :  { %v7604_v55 = vpop.f32.mrb[15].mxu0  ;;  %6542 = vmatmul.mubr.msk.f32.gmra.mrb[120].mxu0 %vm229_vm0, %v154_v5  ;;  %v170_v5 = vld [vmem:[%s10097_s0 + $0x448] sm:$0xff] }
  0xfd   :  { %6544 = vmatprep.mubr.msk.f32.mxu0 %vm229_vm0, %v155_v8 }
  0xff   :  { %v7620_v60 = vpop.f32.mrb[16].mxu0 }
 0x100   :  { %10161 = vst [vmem:[#allocation8_spill] sm:$0xff] %v7620_v60  ;;  %v7624_v61 = vpop.f32.mrb[17].mxu0  ;;  %6545 = vmatmul.mubr.msk.f32.gmra.mrb[122].mxu0 %vm229_vm0, %v156_v10 }
 0x101   :  { %10162 = vst [vmem:[#allocation9_spill] sm:$0xff] %v7624_v61  ;;  %6547 = vmatprep.mubr.msk.f32.mxu0 %vm229_vm0, %v157_v14 }
 0x103   :  { %v7640_v2 = vpop.f32.mrb[18].mxu0 }
 0x104   :  { %10163 = vst [vmem:[#allocation10_spill] sm:$0xff] %v7640_v2  ;;  %v7644_v3 = vpop.f32.mrb[19].mxu0  ;;  %6548 = vmatmul.mubr.msk.f32.gmra.mrb[124].mxu0 %vm229_vm0, %v158_v16  ;;  %v7873_v2 = vld [vmem:[%s10099_s2] ss:$0 sm:$0xff] }
 0x105   :  { %10164 = vst [vmem:[#allocation11_spill] sm:$0xff] %v7644_v3  ;;  %6550 = vmatprep.mubr.msk.f32.mxu0 %vm229_vm0, %v159_v22  ;;  %v171_v22 = vld [vmem:[%s10097_s0 + $0x450] sm:$0xff] }
 0x107   :  { %v7653_v6 = vpop.f32.mrb[20].mxu0 }
 0x108   :  { %10165 = vst [vmem:[#allocation12_spill] sm:$0xff] %v7653_v6  ;;  %v7656_v7 = vpop.f32.mrb[21].mxu0  ;;  %6551 = vmatmul.mubr.msk.f32.gmra.mrb[126].mxu0 %vm229_vm0, %v160_v26  ;;  %v172_v26 = vld [vmem:[%s10097_s0 + $0x458] sm:$0xff] }
 0x109   :  { %10166 = vst [vmem:[#allocation13_spill] sm:$0xff] %v7656_v7  ;;  %6553 = vmatprep.mubr.msk.f32.mxu0 %vm229_vm0, %v161_v32 }
 0x10b   :  { %v7661_v9 = vpop.f32.mrb[22].mxu0 }
 0x10c   :  { %10167 = vst [vmem:[#allocation14_spill] sm:$0xff] %v7661_v9  ;;  %v7667_v11 = vpop.f32.mrb[23].mxu0  ;;  %6554 = vmatmul.mubr.msk.f32.gmra.mrb[128].mxu0 %vm229_vm0, %v162_v34 }
 0x10d   :  { %10168 = vst [vmem:[#allocation15_spill] sm:$0xff] %v7667_v11  ;;  %6556 = vmatprep.mubr.msk.f32.mxu0 %vm229_vm0, %v163_v40 }
 0x10f   :  { %v7673_v15 = vpop.f32.mrb[24].mxu0 }
 0x110   :  { %v7681_v20 = vpop.f32.mrb[25].mxu0  ;;  %6557 = vmatmul.mubr.msk.f32.gmra.mrb[130].mxu0 %vm229_vm0, %v164_v44 }
 0x111   :  { %6559 = vmatprep.mubr.msk.f32.mxu0 %vm229_vm0, %v165_v50  ;;  %v173_v50 = vld [vmem:[%s10097_s0 + $0x460] sm:$0xff] }
 0x113   :  { %v7689_v23 = vpop.f32.mrb[26].mxu0 }
 0x114   :  { %v7697_v28 = vpop.f32.mrb[27].mxu0  ;;  %6560 = vmatmul.mubr.msk.f32.gmra.mrb[132].mxu0 %vm229_vm0, %v166_v52  ;;  %v174_v52 = vld [vmem:[%s10097_s0 + $0x468] sm:$0xff] }
 0x115   :  { %6562 = vmatprep.mubr.msk.f32.mxu0 %vm229_vm0, %v167_v58 }
 0x117   :  { %v7705_v33 = vpop.f32.mrb[28].mxu0 }
 0x118   :  { %v7713_v38 = vpop.f32.mrb[29].mxu0  ;;  %6563 = vmatmul.mubr.msk.f32.gmra.mrb[134].mxu0 %vm229_vm0, %v168_v62 }
 0x119   :  { %6565 = vmatprep.mubr.msk.f32.mxu0 %vm229_vm0, %v169_v4 }
 0x11b   :  { %v7721_v41 = vpop.f32.mrb[30].mxu0 }
 0x11c   :  { %v7729_v46 = vpop.f32.mrb[31].mxu0  ;;  %6566 = vmatmul.mubr.msk.f32.gmra.mrb[136].mxu0 %vm229_vm0, %v170_v5 }
 0x11d   :  { %6568 = vmatprep.mubr.msk.f32.mxu0 %vm229_vm0, %v171_v22 }
 0x11f   :  { %v7737_v51 = vpop.f32.mrb[32].mxu0 }
 0x120   :  { %v7745_v56 = vpop.f32.mrb[33].mxu0  ;;  %6569 = vmatmul.mubr.msk.f32.gmra.mrb[138].mxu0 %vm229_vm0, %v172_v26 }
 0x121   :  { %6571 = vmatprep.mubr.msk.f32.mxu0 %vm229_vm0, %v173_v50 }
 0x123   :  { %v7753_v59 = vpop.f32.mrb[34].mxu0 }
 0x124   :  { %v7761_v0 = vpop.f32.mrb[35].mxu0  ;;  %6572 = vmatmul.mubr.msk.f32.gmra.mrb[140].mxu0 %vm229_vm0, %v174_v52  ;;  %vm4910_vm0 = vcmask 1042176  }
 0x127   :  { %v7773_v8 = vpop.f32.mrb[36].mxu0 }
 0x128   :  { %v7777_v14 = vpop.f32.mrb[37].mxu0 }
 0x12b   :  { %v7789_v32 = vpop.f32.mrb[38].mxu0 }
 0x12c   :  { %v7793_v40 = vpop.f32.mrb[39].mxu0 }
 0x12f   :  { %v7805_v58 = vpop.f32.mrb[40].mxu0 }
 0x130   :  { %10169 = vst [vmem:[#allocation16_spill] sm:$0xff] %v7805_v58  ;;  %v7809_v4 = vpop.f32.mrb[41].mxu0 }
 0x131   :  { %10170 = vst [vmem:[#allocation17_spill] sm:$0xff] %v7809_v4 }
 0x133   :  { %v7814_v22 = vpop.f32.mrb[42].mxu0 }
 0x134   :  { %10171 = vst [vmem:[#allocation18_spill] sm:$0xff] %v7814_v22  ;;  %v7818_v44 = vpop.f32.mrb[43].mxu0 }
 0x135   :  { %10172 = vst [vmem:[#allocation19_spill] sm:$0xff] %v7818_v44 }
 0x137   :  { %v7822_v34 = vpop.f32.mrb[44].mxu0 }
 0x138   :  { %10173 = vst [vmem:[#allocation20_spill] sm:$0xff] %v7822_v34  ;;  %v7826_v16 = vpop.f32.mrb[45].mxu0 }
 0x139   :  { %10174 = vst [vmem:[#allocation21_spill] sm:$0xff] %v7826_v16 }
 0x13b   :  { %v7830_v5 = vpop.f32.mrb[46].mxu0 }
 0x13c   :  { %10175 = vst [vmem:[#allocation22_spill] sm:$0xff] %v7830_v5  ;;  %v7834_v10 = vpop.f32.mrb[47].mxu0 }
 0x13d   :  { %10176 = vst [vmem:[#allocation23_spill] sm:$0xff] %v7834_v10 }
 0x13f   :  { %v6435_v1 = vpop.f32.mrb[48].mxu0 }
 0x140   :  { %v1112_v63 = vpop.f32.mrb[49].mxu0 }
 0x143   :  { %v6438_v57 = vpop.f32.mrb[50].mxu0 }
 0x144   :  { %v1122_v53 = vpop.f32.mrb[51].mxu0 }
 0x147   :  { %v6441_v62 = vpop.f32.mrb[52].mxu0 }
 0x148   :  { %v1132_v47 = vpop.f32.mrb[53].mxu0 }
 0x14b   :  { %v6444_v45 = vpop.f32.mrb[54].mxu0 }
 0x14c   :  { %v1142_v39 = vpop.f32.mrb[55].mxu0 }
 0x14f   :  { %v7838_v35 = vpop.f32.mrb[56].mxu0 }
 0x150   :  { %v7840_v52 = vpop.f32.mrb[57].mxu0 }
 0x153   :  { %v7842_v29 = vpop.f32.mrb[58].mxu0 }
 0x154   :  { %v7844_v26 = vpop.f32.mrb[59].mxu0 }
 0x157   :  { %v7846_v27 = vpop.f32.mrb[60].mxu0 }
 0x158   :  { %v7848_v21 = vpop.f32.mrb[61].mxu0 }
 0x15b   :  { %v7850_v50 = vpop.f32.mrb[62].mxu0 }
 0x15c   :  { %v7852_v17 = vpop.f32.mrb[63].mxu0 }
 0x15f   :  { %v7854_v10 = vpop.f32.mrb[64].mxu0 }
 0x160   :  { %v7856_v11 = vpop.f32.mrb[65].mxu0 }
 0x163   :  { %v7858_v5 = vpop.f32.mrb[66].mxu0 }
 0x164   :  { %10177 = vst [vmem:[#allocation24_spill] sm:$0xff] %v7858_v5  ;;  %v7860_v9 = vpop.f32.mrb[67].mxu0 }
 0x165   :  { %10178 = vst [vmem:[#allocation25_spill] sm:$0xff] %v7860_v9  ;;  %v10183_v9 = vmax.f32 %v7460_v12, %v7673_v15 }
 0x167   :  { %v7862_v16 = vpop.f32.mrb[68].mxu0 }
 0x168   :  { %10179 = vst [vmem:[#allocation26_spill] sm:$0xff] %v7862_v16  ;;  %v7864_v7 = vpop.f32.mrb[69].mxu0 }
 0x169   :  { %10180 = vst [vmem:[#allocation27_spill] sm:$0xff] %v7864_v7  ;;  %v10184_v7 = vmax.f32 %v7464_v13, %v7681_v20 }
 0x16b   :  { %v7866_v34 = vpop.f32.mrb[70].mxu0 }
 0x16c   :  { %10181 = vst [vmem:[#allocation28_spill] sm:$0xff] %v7866_v34  ;;  %v7868_v6 = vpop.f32.mrb[71].mxu0 }
 0x16d   :  { %10182 = vst [vmem:[#allocation29_spill] sm:$0xff] %v7868_v6 }
 0x16f   :  { %v6471_v44 = vpop.f32.mrb[72].mxu0 }
 0x170   :  { %v1880_v3 = vmax.f32 %v6435_v1, %v6471_v44  ;;  %v1232_v22 = vpop.f32.mrb[73].mxu0 }
 0x171   :  { %v1879_v4 = vmax.f32 %v1112_v63, %v1232_v22  ;;  %v10185_v63 = vmax.f32 %v7480_v18, %v7689_v23  ;;  %v10187_v18 = vmax.f32 %v7500_v24, %v7705_v33  ;;  %v10189_v24 = vmax.f32 %v7520_v30, %v7721_v41 }
 0x172   :  { %v1928_v5 = vmax.f32 %v10183_v9, %v1880_v3  ;;  %v10186_v3 = vmax.f32 %v7484_v19, %v7697_v28  ;;  %v10188_v19 = vmax.f32 %v7504_v25, %v7713_v38  ;;  %v10190_v25 = vmax.f32 %v7524_v31, %v7729_v46 }
 0x173   :  { %v1927_v16 = vmax.f32 %v10184_v7, %v1879_v4  ;;  %v6474_v34 = vpop.f32.mrb[74].mxu0 }
 0x174   :  { %v1983_v6 = vadd.f32 %v7873_v2, %v1928_v5  ;;  %v1882_v61 = vmax.f32 %v6438_v57, %v6474_v34  ;;  %v1242_v1 = vpop.f32.mrb[75].mxu0 }
 0x175   :  { %v1982_v44 = vadd.f32 %v7873_v2, %v1927_v16  ;;  %v1881_v58 = vmax.f32 %v1122_v53, %v1242_v1 }
 0x176   :  { %v2031_v60 = vmax.f32 %v1983_v6, 0.0  ;;  %v1930_v22 = vmax.f32 %v10185_v63, %v1882_v61 }
 0x177   :  { %v2030_v12 = vmax.f32 %v1982_v44, 0.0  ;;  %v1929_v13 = vmax.f32 %v10186_v3, %v1881_v58  ;;  %v6477_v7 = vpop.f32.mrb[76].mxu0 }
 0x178   :  { %2080 = vst.msk [vmem:[#allocation2 + $0x8] sm:$0xff] %vm2078_vm1, %v2031_v60  ;;  %v1985_v9 = vadd.f32 %v7873_v2, %v1930_v22  ;;  %v1884_v15 = vmax.f32 %v6441_v62, %v6477_v7  ;;  %v1252_v20 = vpop.f32.mrb[77].mxu0 }
 0x179   :  { %2079 = vst.msk [vmem:[#allocation2] sm:$0xff] %vm2078_vm1, %v2030_v12  ;;  %v1984_v6 = vadd.f32 %v7873_v2, %v1929_v13  ;;  %v1883_v53 = vmax.f32 %v1132_v47, %v1252_v20  ;;  %v10192_v13 = vmax.f32 %v7544_v37, %v7745_v56  ;;  %v10193_v56 = vmax.f32 %v7560_v42, %v7753_v59 }
 0x17a   :  { %v2033_v57 = vmax.f32 %v1985_v9, 0.0  ;;  %v1932_v61 = vmax.f32 %v10187_v18, %v1884_v15 }
 0x17b   :  { %v2032_v23 = vmax.f32 %v1984_v6, 0.0  ;;  %v1931_v28 = vmax.f32 %v10188_v19, %v1883_v53  ;;  %v6480_v60 = vpop.f32.mrb[78].mxu0 }
 0x17c   :  { %2082 = vst.msk [vmem:[#allocation2 + $0x18] sm:$0xff] %vm2078_vm1, %v2033_v57  ;;  %v1987_v16 = vadd.f32 %v7873_v2, %v1932_v61  ;;  %v1886_v34 = vmax.f32 %v6444_v45, %v6480_v60  ;;  %v1262_v58 = vpop.f32.mrb[79].mxu0 }
 0x17d   :  { %2081 = vst.msk [vmem:[#allocation2 + $0x10] sm:$0xff] %vm2078_vm1, %v2032_v23  ;;  %v1986_v47 = vadd.f32 %v7873_v2, %v1931_v28  ;;  %v1885_v62 = vmax.f32 %v1142_v39, %v1262_v58 }
 0x17e   :  { %v2035_v4 = vmax.f32 %v1987_v16, 0.0  ;;  %v1934_v33 = vmax.f32 %v10189_v24, %v1886_v34 }
 0x17f   :  { %v2034_v5 = vmax.f32 %v1986_v47, 0.0  ;;  %v1933_v38 = vmax.f32 %v10190_v25, %v1885_v62  ;;  %v6483_v1 = vpop.f32.mrb[80].mxu0 }
 0x180   :  { %2084 = vst.msk [vmem:[#allocation2 + $0x28] sm:$0xff] %vm2078_vm1, %v2035_v4  ;;  %v1989_v45 = vadd.f32 %v7873_v2, %v1934_v33  ;;  %v1888_v44 = vmax.f32 %v7838_v35, %v6483_v1  ;;  %v1272_v63 = vpop.f32.mrb[81].mxu0  ;;  %v2256_v22 = vld [vmem:[#allocation2 + $0x2] sm:$0xff]  ;;  %v10191_v35 = vmax.f32 %v7540_v36, %v7737_v51 }
 0x181   :  { %v2159_v39 = vld [vmem:[#allocation2 + $0x1] sm:$0xff]  ;;  %2083 = vst.msk [vmem:[#allocation2 + $0x20] sm:$0xff] %vm2078_vm1, %v2034_v5  ;;  %v1988_v30 = vadd.f32 %v7873_v2, %v1933_v38  ;;  %v1887_v41 = vmax.f32 %v7840_v52, %v1272_v63  ;;  %2288 = vrot.lane.b32.xlu1 %v2256_v22, %s6852_s27  ;;  %v10198_v22 = vmax.f32 %v7604_v55, %v7793_v40 }
 0x182   :  { %2191 = vrot.lane.b32.xlu0 %v2159_v39, %s6853_s28  ;;  %v2127_v31 = vld [vmem:[#allocation2] sm:$0xff]  ;;  %v2037_v46 = vmax.f32 %v1989_v45, 0.0  ;;  %v1936_v12 = vmax.f32 %v10191_v35, %v1888_v44  ;;  %v10197_v44 = vmax.f32 %v7600_v54, %v7789_v32 }
 0x183   :  { %2143 = vst.msk [vmem:[#allocation3] sm:$0xff] %vm2078_vm1, %v2127_v31  ;;  %v2036_v3 = vmax.f32 %v1988_v30, 0.0  ;;  %v1935_v7 = vmax.f32 %v10192_v13, %v1887_v41  ;;  %v6486_v52 = vpop.f32.mrb[82].mxu0  ;;  %v2353_v6 = vld [vmem:[#allocation2 + $0x3] sm:$0xff] }
 0x184   :  { %2086 = vst.msk [vmem:[#allocation2 + $0x38] sm:$0xff] %vm2078_vm1, %v2037_v46  ;;  %v1991_v9 = vadd.f32 %v7873_v2, %v1936_v12  ;;  %v1890_v15 = vmax.f32 %v7842_v29, %v6486_v52  ;;  %v1282_v20 = vpop.f32.mrb[83].mxu0  ;;  %v7927_v53 = vld [vmem:[#allocation2 + $0x14] sm:$0xff]  ;;  %v2450_v34 = vld [vmem:[#allocation2 + $0x4] sm:$0xff] }
 0x185   :  { %v2548_v36 = vld [vmem:[#allocation2 + $0x10] sm:$0xff]  ;;  %2085 = vst.msk [vmem:[#allocation2 + $0x30] sm:$0xff] %vm2078_vm1, %v2036_v3  ;;  %v1990_v51 = vadd.f32 %v7873_v2, %v1935_v7  ;;  %v1889_v57 = vmax.f32 %v7844_v26, %v1282_v20  ;;  %2385 = vrot.lane.b32.xlu1 %v2353_v6, %s6854_s29  ;;  %v10194_v26 = vmax.f32 %v7564_v43, %v7761_v0 }
 0x186   :  { %2903 = vrot.lane.b32.xlu0 %v7927_v53, %s6853_s28  ;;  %v2354_v37 = vld [vmem:[#allocation2 + $0x13] sm:$0xff]  ;;  %2144 = vst.msk [vmem:[#allocation3 + $0x20] sm:$0xff] %vm2078_vm1, %v2548_v36  ;;  %v2039_v29 = vmax.f32 %v1991_v9, 0.0  ;;  %v1938_v18 = vmax.f32 %v10193_v56, %v1890_v15  ;;  %v10195_v0 = vmax.f32 %v7580_v48, %v7773_v8  ;;  %v10199_v3 = vld [vmem:[#allocation8_spill] sm:$0xff] }
 0x187   :  { %2855 = vst.msk [vmem:[#allocation3 + $0x8] sm:$0xff] %vm2078_vm1, %v2354_v37  ;;  %v2038_v61 = vmax.f32 %v1990_v51, 0.0  ;;  %v1937_v23 = vmax.f32 %v10194_v26, %v1889_v57  ;;  %v6489_v19 = vpop.f32.mrb[84].mxu0  ;;  %v2160_v58 = vld [vmem:[#allocation2 + $0x11] sm:$0xff]  ;;  %v4362_v51 = vld [vmem:[%s10100_s3 + $0x80] sm:$0xff]  ;;  %v4363_v57 = vld [vmem:[%s10100_s3 + $0x88] sm:$0xff] }
 0x188   :  { %2088 = vst.msk [vmem:[#allocation2 + $0x48] sm:$0xff] %vm2078_vm1, %v2039_v29  ;;  %v1993_v28 = vadd.f32 %v7873_v2, %v1938_v18  ;;  %v1892_v60 = vmax.f32 %v7846_v27, %v6489_v19  ;;  %v1292_v16 = vpop.f32.mrb[85].mxu0  ;;  %v7946_v47 = vld [vmem:[#allocation2 + $0x20] sm:$0xff]  ;;  %v2257_v1 = vld [vmem:[#allocation2 + $0x12] sm:$0xff]  ;;  %v10200_v13 = vld [vmem:[#allocation16_spill] sm:$0xff]  ;;  %v6674_v26 = vpack.c.bf16 %v4363_v57, %v4362_v51 }
 0x189   :  { %2087 = vst.msk [vmem:[#allocation2 + $0x40] sm:$0xff] %vm2078_vm1, %v2038_v61  ;;  %v1992_v42 = vadd.f32 %v7873_v2, %v1937_v23  ;;  %v1891_v59 = vmax.f32 %v7848_v21, %v1292_v16  ;;  %2482 = vrot.lane.b32.xlu1 %v2450_v34, %s6855_s30  ;;  %v7953_v43 = vld [vmem:[#allocation2 + $0x23] sm:$0xff]  ;;  %2145 = vst.msk [vmem:[#allocation3 + $0x40] sm:$0xff] %vm2078_vm1, %v7946_v47  ;;  %v10196_v21 = vmax.f32 %v7584_v49, %v7777_v14  ;;  %v10202_v9 = vld [vmem:[#allocation9_spill] sm:$0xff] }
 0x18a   :  { %2193 = vrot.lane.b32.xlu0 %v2160_v58, %s6853_s28  ;;  %v2041_v27 = vmax.f32 %v1993_v28, 0.0  ;;  %v1940_v62 = vmax.f32 %v10195_v0, %v1892_v60  ;;  %2856 = vst.msk [vmem:[#allocation3 + $0x28] sm:$0xff] %vm2078_vm1, %v7953_v43  ;;  %v10201_v7 = vmax.f32 %v10199_v3, %v10200_v13  ;;  %v10203_v15 = vld [vmem:[#allocation17_spill] sm:$0xff]  ;;  %v10205_v29 = vld [vmem:[#allocation24_spill] sm:$0xff]  ;;  %v8027_v61 = vld [vmem:[#allocation2 + $0x21] sm:$0xff]  ;;  %6675 = vmatprep.subr.bf16.mxu1 %v6674_v26 }
 0x18b   :  { %v2040_v4 = vmax.f32 %v1992_v42, 0.0  ;;  %v1939_v24 = vmax.f32 %v10196_v21, %v1891_v59  ;;  %v6492_v33 = vpop.f32.mrb[86].mxu0  ;;  %v10204_v20 = vmax.f32 %v10202_v9, %v10203_v15  ;;  %v10206_v19 = vld [vmem:[#allocation25_spill] sm:$0xff]  ;;  %v4346_v16 = vld [vmem:[%s10100_s3] sm:$0xff]  ;;  %v4347_v0 = vld [vmem:[%s10100_s3 + $0x8] sm:$0xff] }
 0x18c   :  { %2090 = vst.msk [vmem:[#allocation2 + $0x58] sm:$0xff] %vm2078_vm1, %v2041_v27  ;;  %v1995_v5 = vadd.f32 %v7873_v2, %v1940_v62  ;;  %v1894_v25 = vmax.f32 %v7850_v50, %v6492_v33  ;;  %v1302_v38 = vpop.f32.mrb[87].mxu0  ;;  %v7968_v45 = vld [vmem:[#allocation2 + $0x30] sm:$0xff]  ;;  %v10209_v42 = vld [vmem:[#allocation18_spill] sm:$0xff]  ;;  %v10212_v33 = vld [vmem:[#allocation19_spill] sm:$0xff] }
 0x18d   :  { %v7970_v48 = vld [vmem:[#allocation2 + $0x31] sm:$0xff]  ;;  %2089 = vst.msk [vmem:[#allocation2 + $0x50] sm:$0xff] %vm2078_vm1, %v2040_v4  ;;  %v1994_v8 = vadd.f32 %v7873_v2, %v1939_v24  ;;  %v1893_v49 = vmax.f32 %v7852_v17, %v1302_v38  ;;  %2580 = vrot.lane.b32.xlu1 %v2548_v36, %s6856_s10  ;;  %2146 = vst.msk [vmem:[#allocation3 + $0x60] sm:$0xff] %vm2078_vm1, %v7968_v45  ;;  %v10211_v24 = vld [vmem:[#allocation11_spill] sm:$0xff] }
 0x18e   :  { %2290 = vrot.lane.b32.xlu0 %v2257_v1, %s6852_s27  ;;  %v7977_v14 = vld [vmem:[#allocation2 + $0x33] sm:$0xff]  ;;  %3561 = vst.msk [vmem:[#allocation3 + $0x10] sm:$0xff] %vm2078_vm1, %v7970_v48  ;;  %v2043_v50 = vmax.f32 %v1995_v5, 0.0  ;;  %v1942_v63 = vmax.f32 %v10197_v44, %v1894_v25  ;;  %v10213_v5 = vmax.f32 %v10211_v24, %v10212_v33  ;;  %v10217_v3 = vld [vmem:[#allocation12_spill] sm:$0xff] }
 0x18f   :  { %2857 = vst.msk [vmem:[#allocation3 + $0x48] sm:$0xff] %vm2078_vm1, %v7977_v14  ;;  %v2042_v17 = vmax.f32 %v1994_v8, 0.0  ;;  %v1941_v39 = vmax.f32 %v10198_v22, %v1893_v49  ;;  %v6495_v30 = vpop.f32.mrb[88].mxu0  ;;  %v4364_v8 = vld [vmem:[%s10100_s3 + $0x90] sm:$0xff]  ;;  %v4365_v49 = vld [vmem:[%s10100_s3 + $0x98] sm:$0xff] }
 0x190   :  { %2092 = vst.msk [vmem:[#allocation2 + $0x68] sm:$0xff] %vm2078_vm1, %v2043_v50  ;;  %v1997_v41 = vadd.f32 %v7873_v2, %v1942_v63  ;;  %v1896_v31 = vmax.f32 %v7854_v10, %v6495_v30  ;;  %v1312_v46 = vpop.f32.mrb[89].mxu0  ;;  %v7994_v35 = vld [vmem:[#allocation2 + $0x40] sm:$0xff]  ;;  %v6678_v30 = vpack.c.bf16 %v4365_v49, %v4364_v8  ;;  %v10218_v13 = vld [vmem:[#allocation20_spill] sm:$0xff] }
 0x191   :  { %v7996_v54 = vld [vmem:[#allocation2 + $0x41] sm:$0xff]  ;;  %2091 = vst.msk [vmem:[#allocation2 + $0x60] sm:$0xff] %vm2078_vm1, %v2042_v17  ;;  %v1996_v32 = vadd.f32 %v7873_v2, %v1941_v39  ;;  %v1895_v12 = vmax.f32 %v7856_v11, %v1312_v46  ;;  %2677 = vrot.lane.b32.xlu1 %v2160_v58, %s6857_s11  ;;  %2147 = vst.msk [vmem:[#allocation3 + $0x80] sm:$0xff] %vm2078_vm1, %v7994_v35  ;;  %v10223_v26 = vld [vmem:[#allocation28_spill] sm:$0xff] }
 0x192   :  { %2387 = vrot.lane.b32.xlu0 %v2354_v37, %s6854_s29  ;;  %v8003_v55 = vld [vmem:[#allocation2 + $0x43] sm:$0xff]  ;;  %3562 = vst.msk [vmem:[#allocation3 + $0x30] sm:$0xff] %vm2078_vm1, %v7996_v54  ;;  %v2045_v40 = vmax.f32 %v1997_v41, 0.0  ;;  %v1944_v52 = vmax.f32 %v10201_v7, %v1896_v31  ;;  %v10208_v58 = vld [vmem:[#allocation10_spill] sm:$0xff]  ;;  %v4348_v41 = vld [vmem:[%s10100_s3 + $0x10] sm:$0xff]  ;;  %v10219_v7 = vmax.f32 %v10217_v3, %v10218_v13 }
 0x193   :  { %v4250_v10 = vld [vmem:[#allocation2 + $0x44] sm:$0xff]  ;;  %2858 = vst.msk [vmem:[#allocation3 + $0x68] sm:$0xff] %vm2078_vm1, %v8003_v55  ;;  %v2044_v11 = vmax.f32 %v1996_v32, 0.0  ;;  %v1943_v6 = vmax.f32 %v10204_v20, %v1895_v12  ;;  %v6498_v36 = vpop.f32.mrb[90].mxu0  ;;  %v10210_v59 = vmax.f32 %v10208_v58, %v10209_v42  ;;  %v10214_v63 = vld [vmem:[#allocation26_spill] sm:$0xff] }
 0x194   :  { %4266 = vst.msk [vmem:[#allocation3 + $0x18] sm:$0xff] %vm2078_vm1, %v4250_v10  ;;  %2094 = vst.msk [vmem:[#allocation2 + $0x78] sm:$0xff] %vm2078_vm1, %v2045_v40  ;;  %v1999_v37 = vadd.f32 %v7873_v2, %v1944_v52  ;;  %v1898_v56 = vmax.f32 %v10205_v29, %v6498_v36  ;;  %v1322_v18 = vpop.f32.mrb[91].mxu0  ;;  %v8035_v60 = vld [vmem:[#allocation2 + $0x53] sm:$0xff]  ;;  %v8062_v39 = vld [vmem:[#allocation2 + $0x22] sm:$0xff] }
 0x195   :  { %2093 = vst.msk [vmem:[#allocation2 + $0x70] sm:$0xff] %vm2078_vm1, %v2044_v11  ;;  %v1998_v23 = vadd.f32 %v7873_v2, %v1943_v6  ;;  %v1897_v28 = vmax.f32 %v10206_v19, %v1322_v18  ;;  %2774 = vrot.lane.b32.xlu1 %v2257_v1, %s6858_s16  ;;  %10207 = vst [vmem:[#allocation8_spill] sm:$0xff] %v8035_v60  ;;  %v2132_v62 = vld [vmem:[#allocation2 + $0x50] sm:$0xff]  ;;  %v6676_v1 = vpack.c.bf16 %v4347_v0, %v4346_v16  ;;  %v4349_v31 = vld [vmem:[%s10100_s3 + $0x18] sm:$0xff] }
 0x196   :  { %3096 = vrot.lane.b32.xlu0 %v8027_v61, %s6854_s29  ;;  %v2047_v34 = vmax.f32 %v1999_v37, 0.0  ;;  %v1946_v27 = vmax.f32 %v10210_v59, %v1898_v56  ;;  %2859 = vst.msk [vmem:[#allocation3 + $0x88] sm:$0xff] %vm2078_vm1, %v8035_v60  ;;  %v3547_v4 = vld [vmem:[#allocation2 + $0x51] sm:$0xff]  ;;  %2148 = vst.msk [vmem:[#allocation3 + $0xa0] sm:$0xff] %vm2078_vm1, %v2132_v62  ;;  %v10215_v32 = vld [vmem:[#allocation27_spill] sm:$0xff]  ;;  %v6680_v11 = vpack.c.bf16 %v4349_v31, %v4348_v41 }
 0x197   :  { %v2046_v21 = vmax.f32 %v1998_v23, 0.0  ;;  %v1945_v25 = vmax.f32 %v10213_v5, %v1897_v28  ;;  %v6501_v38 = vpop.f32.mrb[92].mxu0  ;;  %3563 = vst.msk [vmem:[#allocation3 + $0x50] sm:$0xff] %vm2078_vm1, %v3547_v4  ;;  %v4251_v50 = vld [vmem:[#allocation2 + $0x54] sm:$0xff]  ;;  %6677 = vmatpush3.bf16.msra.mxu1 %v6676_v1  ;;  %v8088_v37 = vld [vmem:[#allocation2 + $0x24] sm:$0xff] }
 0x198   :  { %2096 = vst.msk [vmem:[#allocation2 + $0x88] sm:$0xff] %vm2078_vm1, %v2047_v34  ;;  %v2001_v44 = vadd.f32 %v7873_v2, %v1946_v27  ;;  %v1900_v17 = vmax.f32 %v10214_v63, %v6501_v38  ;;  %v1332_v22 = vpop.f32.mrb[93].mxu0  ;;  %4267 = vst.msk [vmem:[#allocation3 + $0x38] sm:$0xff] %vm2078_vm1, %v4251_v50  ;;  %v8078_v10 = vld [vmem:[#allocation2 + $0x63] sm:$0xff]  ;;  %v10220_v6 = vld [vmem:[#allocation13_spill] sm:$0xff]  ;;  %6679 = vmatprep.subr.bf16.mxu1 %v6678_v30 }
 0x199   :  { %2095 = vst.msk [vmem:[#allocation2 + $0x80] sm:$0xff] %vm2078_vm1, %v2046_v21  ;;  %v2000_v46 = vadd.f32 %v7873_v2, %v1945_v25  ;;  %v1899_v12 = vmax.f32 %v10215_v32, %v1332_v22  ;;  %2484 = vrot.lane.b32.xlu1 %v7927_v53, %s6855_s30  ;;  %10216 = vst [vmem:[#allocation16_spill] sm:$0xff] %v8078_v10  ;;  %v2133_v9 = vld [vmem:[#allocation2 + $0x60] sm:$0xff]  ;;  %v10221_v53 = vld [vmem:[#allocation21_spill] sm:$0xff] }
 0x19a   :  { %3192 = vrot.lane.b32.xlu0 %v8062_v39, %s6855_s30  ;;  %v2049_v40 = vmax.f32 %v2001_v44, 0.0  ;;  %v1948_v52 = vmax.f32 %v10219_v7, %v1900_v17  ;;  %2860 = vst.msk [vmem:[#allocation3 + $0xa8] sm:$0xff] %vm2078_vm1, %v8078_v10  ;;  %v3548_v15 = vld [vmem:[#allocation2 + $0x61] sm:$0xff]  ;;  %v10222_v36 = vmax.f32 %v10220_v6, %v10221_v53  ;;  %2149 = vst.msk [vmem:[#allocation3 + $0xc0] sm:$0xff] %vm2078_vm1, %v2133_v9  ;;  %v10225_v59 = vld [vmem:[#allocation29_spill] sm:$0xff]  ;;  %v8184_v53 = vpop.f32.mrb[0].mxu1 }
 0x19b   :  { %v2048_v20 = vmax.f32 %v2000_v46, 0.0  ;;  %v6504_v57 = vpop.f32.mrb[94].mxu0  ;;  %v4366_v29 = vld [vmem:[%s10100_s3 + $0xa0] sm:$0xff]  ;;  %v4367_v56 = vld [vmem:[%s10100_s3 + $0xa8] sm:$0xff]  ;;  %3564 = vst.msk [vmem:[#allocation3 + $0x70] sm:$0xff] %vm2078_vm1, %v3548_v15  ;;  %6681 = vmatpush3.bf16.msra.mxu1 %v6680_v11  ;;  %v4368_v17 = vld [vmem:[%s10100_s3 + $0xb0] sm:$0xff] }
 0x19c   :  { %v1947_v51 = vmax.f32 %v10222_v36, %v1899_v12  ;;  %2098 = vst.msk [vmem:[#allocation2 + $0x98] sm:$0xff] %vm2078_vm1, %v2049_v40  ;;  %v2003_v18 = vadd.f32 %v7873_v2, %v1948_v52  ;;  %v1902_v23 = vmax.f32 %v10223_v26, %v6504_v57  ;;  %v1342_v19 = vpop.f32.mrb[95].mxu0  ;;  %v6682_v28 = vpack.c.bf16 %v4367_v56, %v4366_v29  ;;  %v4350_v16 = vld [vmem:[%s10100_s3 + $0x20] sm:$0xff]  ;;  %v4351_v34 = vld [vmem:[%s10100_s3 + $0x28] sm:$0xff]  ;;  %v8107_v58 = vld [vmem:[#allocation2 + $0x70] sm:$0xff] }
 0x19d   :  { %10224 = vst [vmem:[#allocation9_spill] sm:$0xff] %v8107_v58  ;;  %2097 = vst.msk [vmem:[#allocation2 + $0x90] sm:$0xff] %vm2078_vm1, %v2048_v20  ;;  %v1901_v27 = vmax.f32 %v10225_v59, %v1342_v19  ;;  %3000 = vrot.lane.b32.xlu1 %v7946_v47, %s6852_s27  ;;  %v8116_v0 = vld [vmem:[#allocation2 + $0x71] sm:$0xff]  ;;  %v10227_v4 = vld [vmem:[#allocation14_spill] sm:$0xff]  ;;  %v6684_v5 = vpack.c.bf16 %v4351_v34, %v4350_v16 }
 0x19e   :  { %v2002_v42 = vadd.f32 %v7873_v2, %v1947_v51  ;;  %2905 = vrot.lane.b32.xlu0 %v8088_v37, %s6853_s28  ;;  %10226 = vst [vmem:[#allocation17_spill] sm:$0xff] %v8116_v0  ;;  %2150 = vst.msk [vmem:[#allocation3 + $0xe0] sm:$0xff] %vm2078_vm1, %v8107_v58  ;;  %v2051_v62 = vmax.f32 %v2003_v18, 0.0  ;;  %v10228_v21 = vld [vmem:[#allocation22_spill] sm:$0xff]  ;;  %v4252_v38 = vld [vmem:[#allocation2 + $0x64] sm:$0xff]  ;;  %6683 = vmatprep.subr.bf16.mxu1 %v6682_v28  ;;  %v8186_v51 = vpop.f32.mrb[1].mxu1 }
 0x19f   :  { %v10229_v24 = vmax.f32 %v10227_v4, %v10228_v21  ;;  %v8123_v25 = vld [vmem:[#allocation2 + $0x73] sm:$0xff]  ;;  %3565 = vst.msk [vmem:[#allocation3 + $0x90] sm:$0xff] %vm2078_vm1, %v8116_v0  ;;  %v10231_v49 = vld [vmem:[#allocation15_spill] sm:$0xff]  ;;  %4268 = vst.msk [vmem:[#allocation3 + $0x58] sm:$0xff] %vm2078_vm1, %v4252_v38  ;;  %6685 = vmatpush3.bf16.msra.mxu1 %v6684_v5  ;;  %v8196_v18 = vpop.f32.mrb[2].mxu1 }
 0x1a0   :  { %10230 = vst [vmem:[#allocation24_spill] sm:$0xff] %v8123_v25  ;;  %v4253_v1 = vld [vmem:[#allocation2 + $0x74] sm:$0xff]  ;;  %v2050_v8 = vmax.f32 %v2002_v42, 0.0  ;;  %v10232_v50 = vld [vmem:[#allocation23_spill] sm:$0xff]  ;;  %2861 = vst.msk [vmem:[#allocation3 + $0xc8] sm:$0xff] %vm2078_vm1, %v8123_v25  ;;  %v8210_v28 = vpop.f32.mrb[3].mxu1 }
 0x1a1   :  { %v1950_v33 = vmax.f32 %v10229_v24, %v1902_v23  ;;  %v10233_v44 = vmax.f32 %v10231_v49, %v10232_v50  ;;  %v4369_v22 = vld [vmem:[%s10100_s3 + $0xb8] sm:$0xff]  ;;  %4269 = vst.msk [vmem:[#allocation3 + $0x78] sm:$0xff] %vm2078_vm1, %v4253_v1  ;;  %2100 = vst.msk [vmem:[#allocation2 + $0xa8] sm:$0xff] %vm2078_vm1, %v2051_v62  ;;  %v4352_v31 = vld [vmem:[%s10100_s3 + $0x30] sm:$0xff]  ;;  %3288 = vrot.lane.b32.xlu1 %v7953_v43, %s6856_s10  ;;  %v8214_v34 = vpop.f32.mrb[4].mxu1 }
 0x1a2   :  { %v6686_v41 = vpack.c.bf16 %v4369_v22, %v4368_v17  ;;  %v4353_v46 = vld [vmem:[%s10100_s3 + $0x38] sm:$0xff]  ;;  %2099 = vst.msk [vmem:[#allocation2 + $0xa0] sm:$0xff] %vm2078_vm1, %v2050_v8  ;;  %2195 = vrot.lane.b32.xlu0 %v8027_v61, %s6853_s28  ;;  %v8154_v12 = vld [vmem:[#allocation2 + $0x81] sm:$0xff]  ;;  %v4372_v57 = vld [vmem:[%s10100_s3 + $0xd0] sm:$0xff] }
 0x1a3   :  { %v1949_v63 = vmax.f32 %v10233_v44, %v1901_v27  ;;  %v2005_v30 = vadd.f32 %v7873_v2, %v1950_v33  ;;  %10234 = vst [vmem:[#allocation25_spill] sm:$0xff] %v8154_v12  ;;  %v8156_v40 = vld [vmem:[#allocation2 + $0x83] sm:$0xff]  ;;  %v6688_v13 = vpack.c.bf16 %v4353_v46, %v4352_v31  ;;  %3566 = vst.msk [vmem:[#allocation3 + $0xb0] sm:$0xff] %vm2078_vm1, %v8154_v12  ;;  %v4373_v29 = vld [vmem:[%s10100_s3 + $0xd8] sm:$0xff]  ;;  %v8220_v27 = vpop.f32.mrb[5].mxu1 }
 0x1a4   :  { %10235 = vst [vmem:[#allocation10_spill] sm:$0xff] %v8156_v40  ;;  %2862 = vst.msk [vmem:[#allocation3 + $0xe8] sm:$0xff] %vm2078_vm1, %v8156_v40  ;;  %v8162_v7 = vld [vmem:[#allocation2 + $0x84] sm:$0xff]  ;;  %6687 = vmatprep.subr.bf16.mxu1 %v6686_v41  ;;  %v8194_v56 = vld [vmem:[#allocation2 + $0x91] sm:$0xff]  ;;  %v6694_v26 = vpack.c.bf16 %v4373_v29, %v4372_v57  ;;  %v8232_v4 = vpop.f32.mrb[6].mxu1 }
 0x1a5   :  { %v2004_v32 = vadd.f32 %v7873_v2, %v1949_v63  ;;  %v2053_v3 = vmax.f32 %v2005_v30, 0.0  ;;  %10236 = vst [vmem:[#allocation18_spill] sm:$0xff] %v8162_v7  ;;  %v4370_v11 = vld [vmem:[%s10100_s3 + $0xc0] sm:$0xff]  ;;  %v4371_v9 = vld [vmem:[%s10100_s3 + $0xc8] sm:$0xff]  ;;  %4270 = vst.msk [vmem:[#allocation3 + $0x98] sm:$0xff] %vm2078_vm1, %v8162_v7  ;;  %3384 = vrot.lane.b32.xlu1 %v8088_v37, %s6857_s11  ;;  %6689 = vmatpush3.bf16.msra.mxu1 %v6688_v13  ;;  %v8246_v5 = vpop.f32.mrb[7].mxu1 }
 0x1a6   :  { %v6690_v15 = vpack.c.bf16 %v4371_v9, %v4370_v11  ;;  %v4354_v20 = vld [vmem:[%s10100_s3 + $0x40] sm:$0xff]  ;;  %v4355_v6 = vld [vmem:[%s10100_s3 + $0x48] sm:$0xff]  ;;  %2292 = vrot.lane.b32.xlu0 %v8062_v39, %s6852_s27  ;;  %10237 = vst [vmem:[#allocation11_spill] sm:$0xff] %v8194_v56  ;;  %v4356_v23 = vld [vmem:[%s10100_s3 + $0x50] sm:$0xff]  ;;  %v8248_v38 = vpop.f32.mrb[8].mxu1 }
 0x1a7   :  { %v2052_v52 = vmax.f32 %v2004_v32, 0.0  ;;  %2102 = vst.msk [vmem:[#allocation2 + $0xb8] sm:$0xff] %vm2078_vm1, %v2053_v3  ;;  %v6692_v36 = vpack.c.bf16 %v4355_v6, %v4354_v20  ;;  %v4357_v19 = vld [vmem:[%s10100_s3 + $0x58] sm:$0xff]  ;;  %3567 = vst.msk [vmem:[#allocation3 + $0xd0] sm:$0xff] %vm2078_vm1, %v8194_v56  ;;  %v4358_v24 = vld [vmem:[%s10100_s3 + $0x60] sm:$0xff]  ;;  %v8250_v8 = vpop.f32.mrb[9].mxu1 }
 0x1a8   :  { %6691 = vmatprep.subr.bf16.mxu1 %v6690_v15  ;;  %v8212_v16 = vld [vmem:[#allocation2 + $0x94] sm:$0xff]  ;;  %v6696_v42 = vpack.c.bf16 %v4357_v19, %v4356_v23  ;;  %v4359_v33 = vld [vmem:[%s10100_s3 + $0x68] sm:$0xff]  ;;  %v8258_v44 = vpop.f32.mrb[10].mxu1 }
 0x1a9   :  { %2101 = vst.msk [vmem:[#allocation2 + $0xb0] sm:$0xff] %vm2078_vm1, %v2052_v52  ;;  %2582 = vrot.lane.b32.xlu1 %v7946_v47, %s6856_s10  ;;  %10238 = vst [vmem:[#allocation19_spill] sm:$0xff] %v8212_v16  ;;  %6693 = vmatpush3.bf16.msra.mxu1 %v6692_v36  ;;  %v8216_v59 = vld [vmem:[#allocation2 + $0xa1] sm:$0xff]  ;;  %v6700_v1 = vpack.c.bf16 %v4359_v33, %v4358_v24  ;;  %v4376_v49 = vld [vmem:[%s10100_s3 + $0xf0] sm:$0xff]  ;;  %v8265_v17 = vpop.f32.mrb[11].mxu1 }
 0x1aa   :  { %2389 = vrot.lane.b32.xlu0 %v7953_v43, %s6854_s29  ;;  %10239 = vst [vmem:[#allocation26_spill] sm:$0xff] %v8216_v59  ;;  %4271 = vst.msk [vmem:[#allocation3 + $0xb8] sm:$0xff] %vm2078_vm1, %v8212_v16  ;;  %6695 = vmatprep.subr.bf16.mxu1 %v6694_v26  ;;  %v4374_v47 = vld [vmem:[%s10100_s3 + $0xe0] sm:$0xff]  ;;  %v4375_v43 = vld [vmem:[%s10100_s3 + $0xe8] sm:$0xff]  ;;  %v8273_v41 = vpop.f32.mrb[12].mxu1  ;;  %v8317_v26 = vpop.f32.mrb[96].mxu0 }
 0x1ab   :  { %v8228_v62 = vld [vmem:[#allocation2 + $0xa4] sm:$0xff]  ;;  %3568 = vst.msk [vmem:[#allocation3 + $0xf0] sm:$0xff] %vm2078_vm1, %v8216_v59  ;;  %v6698_v21 = vpack.c.bf16 %v4375_v43, %v4374_v47  ;;  %v4360_v22 = vld [vmem:[%s10100_s3 + $0x70] sm:$0xff]  ;;  %v4361_v30 = vld [vmem:[%s10100_s3 + $0x78] sm:$0xff]  ;;  %v8275_v46 = vpop.f32.mrb[13].mxu1  ;;  %v8331_v43 = vpop.f32.mrb[97].mxu0 }
 0x1ac   :  { %10240 = vst [vmem:[#allocation27_spill] sm:$0xff] %v8228_v62  ;;  %4272 = vst.msk [vmem:[#allocation3 + $0xd8] sm:$0xff] %vm2078_vm1, %v8228_v62  ;;  %v6704_v31 = vpack.c.bf16 %v4361_v30, %v4360_v22  ;;  %v8279_v32 = vpop.f32.mrb[14].mxu1  ;;  %v8291_v11 = vld [vmem:[#allocation2 + $0x34] sm:$0xff]  ;;  %v8335_v24 = vpop.f32.mrb[98].mxu0 }
 0x1ad   :  { %2679 = vrot.lane.b32.xlu1 %v8027_v61, %s6857_s11  ;;  %6697 = vmatpush3.bf16.msra.mxu1 %v6696_v42  ;;  %v4377_v61 = vld [vmem:[%s10100_s3 + $0xf8] sm:$0xff]  ;;  %10241 = vst [vmem:[#allocation12_spill] sm:$0xff] %v8279_v32  ;;  %v8285_v3 = vpop.f32.mrb[15].mxu1 }
 0x1ae   :  { %3002 = vrot.lane.b32.xlu0 %v7968_v45, %s6852_s27  ;;  %6699 = vmatprep.subr.bf16.mxu1 %v6698_v21  ;;  %v6702_v63 = vpack.c.bf16 %v4377_v61, %v4376_v49  ;;  %10242 = vst [vmem:[#allocation20_spill] sm:$0xff] %v8285_v3  ;;  %v8287_v13 = vpop.f32.mrb[16].mxu1  ;;  %v8343_v61 = vpop.f32.mrb[99].mxu0 }
 0x1af   :  { %10243 = vst [vmem:[#allocation13_spill] sm:$0xff] %v8287_v13  ;;  %v8289_v52 = vpop.f32.mrb[17].mxu1 }
 0x1b0   :  { %v4257_v50 = vld [vmem:[#allocation2 + $0xb4] sm:$0xff]  ;;  %v8293_v9 = vpop.f32.mrb[18].mxu1 }
 0x1b1   :  { %4273 = vst.msk [vmem:[#allocation3 + $0xf8] sm:$0xff] %vm2078_vm1, %v4257_v50  ;;  %2776 = vrot.lane.b32.xlu1 %v8062_v39, %s6858_s16  ;;  %6701 = vmatpush3.bf16.msra.mxu1 %v6700_v1  ;;  %v8277_v39 = vld [vmem:[#allocation2 + $0x32] sm:$0xff]  ;;  %10244 = vst [vmem:[#allocation21_spill] sm:$0xff] %v8293_v9 }
 0x1b2   :  { %3098 = vrot.lane.b32.xlu0 %v7970_v48, %s6854_s29  ;;  %6703 = vmatprep.subr.bf16.mxu1 %v6702_v63  ;;  %v8351_v63 = vpop.f32.mrb[100].mxu0 }
 0x1b3   :  { %v8359_v49 = vpop.f32.mrb[101].mxu0 }
 0x1b4   :  { %v8363_v47 = vpop.f32.mrb[102].mxu0 }
 0x1b5   :  { %2486 = vrot.lane.b32.xlu1 %v8088_v37, %s6855_s30  ;;  %6705 = vmatpush3.bf16.msra.mxu1 %v6704_v31  ;;  %v8299_v37 = vpop.f32.mrb[19].mxu1  ;;  %v8375_v31 = vpop.f32.mrb[103].mxu0 }
 0x1b6   :  { %3194 = vrot.lane.b32.xlu0 %v8277_v39, %s6855_s30  ;;  %10245 = vst [vmem:[#allocation28_spill] sm:$0xff] %v8299_v37  ;;  %v8301_v15 = vpop.f32.mrb[20].mxu1  ;;  %v8377_v22 = vpop.f32.mrb[104].mxu0 }
 0x1b7   :  { %10246 = vst [vmem:[#allocation29_spill] sm:$0xff] %v8301_v15  ;;  %v8303_v20 = vpop.f32.mrb[21].mxu1  ;;  %v8385_v56 = vpop.f32.mrb[105].mxu0 }
 0x1b8   :  { %10247 = vst [vmem:[#allocation14_spill] sm:$0xff] %v8303_v20  ;;  %v8305_v6 = vpop.f32.mrb[22].mxu1 }
 0x1b9   :  { %3481 = vrot.lane.b32.xlu1 %v7968_v45, %s6858_s16  ;;  %10248 = vst [vmem:[#allocation22_spill] sm:$0xff] %v8305_v6  ;;  %v8311_v36 = vpop.f32.mrb[23].mxu1 }
 0x1ba   :  { %2907 = vrot.lane.b32.xlu0 %v8291_v11, %s6853_s28  ;;  %10249 = vst [vmem:[#allocation15_spill] sm:$0xff] %v8311_v36  ;;  %v8313_v57 = vpop.f32.mrb[24].mxu1  ;;  %v8484_v36 = vld [vmem:[#allocation2 + $0x44] sm:$0xff] }
 0x1bb   :  { %v8315_v29 = vpop.f32.mrb[25].mxu1 }
 0x1bc   :  { %v8319_v23 = vpop.f32.mrb[26].mxu1 }
 0x1bd   :  { %3290 = vrot.lane.b32.xlu1 %v7977_v14, %s6856_s10  ;;  %v8327_v42 = vpop.f32.mrb[27].mxu1 }
 0x1be   :  { %2197 = vrot.lane.b32.xlu0 %v7970_v48, %s6853_s28  ;;  %v8333_v21 = vpop.f32.mrb[28].mxu1 }
 0x1bf   :  { %v8339_v1 = vpop.f32.mrb[29].mxu1 }
 0x1c0   :  { %v8345_v50 = vpop.f32.mrb[30].mxu1 }
 0x1c1   :  { %3386 = vrot.lane.b32.xlu1 %v8291_v11, %s6857_s11  ;;  %v8355_v30 = vpop.f32.mrb[31].mxu1 }
 0x1c2   :  { %2294 = vrot.lane.b32.xlu0 %v8277_v39, %s6852_s27  ;;  %v8361_v33 = vpop.f32.mrb[32].mxu1 }
 0x1c3   :  { %v8367_v19 = vpop.f32.mrb[33].mxu1 }
 0x1c4   :  { %v8379_v59 = vpop.f32.mrb[34].mxu1 }
 0x1c5   :  { %2584 = vrot.lane.b32.xlu1 %v7968_v45, %s6856_s10  ;;  %v8383_v16 = vpop.f32.mrb[35].mxu1 }
 0x1c6   :  { %2391 = vrot.lane.b32.xlu0 %v7977_v14, %s6854_s29  ;;  %v8391_v7 = vpop.f32.mrb[36].mxu1 }
 0x1c7   :  { %10250 = vst [vmem:[#allocation23_spill] sm:$0xff] %v8391_v7  ;;  %v8399_v45 = vpop.f32.mrb[37].mxu1 }
 0x1c8   :  { %v8407_v25 = vpop.f32.mrb[38].mxu1 }
 0x1c9   :  { %2681 = vrot.lane.b32.xlu1 %v7970_v48, %s6857_s11  ;;  %v8389_v48 = vpop.f32.mrb[106].mxu0  ;;  %10251 = vst [vmem:[#allocation30_spill] sm:$0xff] %v8407_v25  ;;  %v8411_v58 = vpop.f32.mrb[39].mxu1 }
 0x1ca   :  { %3705 = vrot.lane.b32.xlu0 %v7977_v14, %s6852_s27  ;;  %v8401_v40 = vpop.f32.mrb[107].mxu0  ;;  %10252 = vst [vmem:[#allocation31_spill] sm:$0xff] %v8411_v58  ;;  %v8419_v7 = vpop.f32.mrb[40].mxu1 }
 0x1cb   :  { %v8405_v12 = vpop.f32.mrb[108].mxu0  ;;  %10254 = vst [vmem:[#allocation33_spill] sm:$0xff] %v8419_v7  ;;  %v8427_v62 = vpop.f32.mrb[41].mxu1 }
 0x1cc   :  { %v8413_v10 = vpop.f32.mrb[109].mxu0 }
 0x1cd   :  { %2778 = vrot.lane.b32.xlu1 %v8277_v39, %s6858_s16  ;;  %v8417_v60 = vpop.f32.mrb[110].mxu0 }
 0x1ce   :  { %3801 = vrot.lane.b32.xlu0 %v8291_v11, %s6854_s29  ;;  %10253 = vst [vmem:[#allocation32_spill] sm:$0xff] %v8417_v60  ;;  %v8429_v25 = vpop.f32.mrb[111].mxu0  ;;  %v8435_v60 = vpop.f32.mrb[42].mxu1 }
 0x1cf   :  { %v8433_v58 = vpop.f32.mrb[112].mxu0  ;;  %10255 = vst [vmem:[#allocation34_spill] sm:$0xff] %v8435_v60  ;;  %v8439_v3 = vpop.f32.mrb[43].mxu1 }
 0x1d0   :  { %10256 = vst [vmem:[#allocation35_spill] sm:$0xff] %v8439_v3  ;;  %v8441_v32 = vpop.f32.mrb[113].mxu0  ;;  %v8447_v13 = vpop.f32.mrb[44].mxu1 }
 0x1d1   :  { %2488 = vrot.lane.b32.xlu1 %v8291_v11, %s6855_s30  ;;  %10257 = vst [vmem:[#allocation36_spill] sm:$0xff] %v8441_v32  ;;  %v8445_v7 = vpop.f32.mrb[114].mxu0  ;;  %10259 = vst [vmem:[#allocation38_spill] sm:$0xff] %v8447_v13  ;;  %v8455_v14 = vpop.f32.mrb[45].mxu1  ;;  %v8471_v32 = vld [vmem:[#allocation2 + $0x42] sm:$0xff] }
 0x1d2   :  { %3004 = vrot.lane.b32.xlu0 %v7994_v35, %s6852_s27  ;;  %10258 = vst [vmem:[#allocation37_spill] sm:$0xff] %v8445_v7  ;;  %10260 = vst [vmem:[#allocation39_spill] sm:$0xff] %v8455_v14  ;;  %v8457_v60 = vpop.f32.mrb[115].mxu0  ;;  %v8463_v7 = vpop.f32.mrb[46].mxu1 }
 0x1d3   :  { %10261 = vst [vmem:[#allocation40_spill] sm:$0xff] %v8457_v60  ;;  %v8461_v3 = vpop.f32.mrb[116].mxu0  ;;  %10263 = vst [vmem:[#allocation42_spill] sm:$0xff] %v8463_v7  ;;  %v8467_v37 = vpop.f32.mrb[47].mxu1 }
 0x1d4   :  { %10262 = vst [vmem:[#allocation41_spill] sm:$0xff] %v8461_v3  ;;  %10264 = vst [vmem:[#allocation43_spill] sm:$0xff] %v8467_v37  ;;  %v8469_v9 = vpop.f32.mrb[117].mxu0  ;;  %v6648_v15 = vpop.f32.mrb[48].mxu1 }
 0x1d5   :  { %3609 = vrot.lane.b32.xlu1 %v8277_v39, %s6853_s28  ;;  %10265 = vst [vmem:[#allocation44_spill] sm:$0xff] %v8469_v9  ;;  %v6540_v13 = vpop.f32.mrb[118].mxu0  ;;  %v1926_v39 = vmax.f32 %v8313_v57, %v6648_v15  ;;  %v1822_v7 = vpop.f32.mrb[49].mxu1 }
 0x1d6   :  { %3100 = vrot.lane.b32.xlu0 %v7996_v54, %s6854_s29  ;;  %v1878_v0 = vmax.f32 %v6540_v13, %v8184_v53  ;;  %v1462_v6 = vpop.f32.mrb[119].mxu0  ;;  %v1925_v9 = vmax.f32 %v8315_v29, %v1822_v7  ;;  %v10266_v7 = vmax.f32 %v8196_v18, %v8319_v23 }
 0x1d7   :  { %v1877_v3 = vmax.f32 %v1462_v6, %v8186_v51  ;;  %v6543_v14 = vpop.f32.mrb[120].mxu0 }
 0x1d8   :  { %v1974_v11 = vmax.f32 %v1878_v0, %v1926_v39  ;;  %v1856_v37 = vmax.f32 %v8317_v26, %v6543_v14  ;;  %v1472_v60 = vpop.f32.mrb[121].mxu0 }
 0x1d9   :  { %3483 = vrot.lane.b32.xlu1 %v7994_v35, %s6858_s16  ;;  %v1973_v20 = vmax.f32 %v1877_v3, %v1925_v9  ;;  %v1855_v0 = vmax.f32 %v8331_v43, %v1472_v60  ;;  %v10267_v9 = vmax.f32 %v8210_v28, %v8327_v42  ;;  %v6546_v57 = vpop.f32.mrb[122].mxu0  ;;  %v10268_v28 = vmax.f32 %v8214_v34, %v8333_v21 }
 0x1da   :  { %3196 = vrot.lane.b32.xlu0 %v8471_v32, %s6855_s30  ;;  %v2029_v53 = vadd.f32 %v7873_v2, %v1974_v11  ;;  %v1952_v51 = vmax.f32 %v1856_v37, %v10266_v7  ;;  %v1858_v26 = vmax.f32 %v8335_v24, %v6546_v57  ;;  %v1482_v14 = vpop.f32.mrb[123].mxu0  ;;  %v10269_v42 = vmax.f32 %v8220_v27, %v8339_v1 }
 0x1db   :  { %v2028_v13 = vadd.f32 %v7873_v2, %v1973_v20  ;;  %v1951_v6 = vmax.f32 %v1855_v0, %v10267_v9  ;;  %v1857_v37 = vmax.f32 %v8343_v61, %v1482_v14  ;;  %v6549_v24 = vpop.f32.mrb[124].mxu0  ;;  %v10270_v1 = vmax.f32 %v8232_v4, %v8345_v50 }
 0x1dc   :  { %v2077_v15 = vmax.f32 %v2029_v53, 0.0  ;;  %v2007_v3 = vadd.f32 %v7873_v2, %v1952_v51  ;;  %v1954_v20 = vmax.f32 %v1858_v26, %v10268_v28  ;;  %v1860_v39 = vmax.f32 %v8351_v63, %v6549_v24  ;;  %v1492_v53 = vpop.f32.mrb[125].mxu0 }
 0x1dd   :  { %3292 = vrot.lane.b32.xlu1 %v8003_v55, %s6856_s10  ;;  %v2076_v29 = vmax.f32 %v2028_v13, 0.0  ;;  %v2006_v18 = vadd.f32 %v7873_v2, %v1951_v6  ;;  %v1953_v43 = vmax.f32 %v1857_v37, %v10269_v42  ;;  %v1859_v21 = vmax.f32 %v8359_v49, %v1492_v53  ;;  %v6552_v0 = vpop.f32.mrb[126].mxu0 }
 0x1de   :  { %2909 = vrot.lane.b32.xlu0 %v8484_v36, %s6853_s28  ;;  %2126 = vst.msk [vmem:[#allocation2 + $0x178] sm:$0xff] %vm2078_vm1, %v2077_v15  ;;  %v2055_v60 = vmax.f32 %v2007_v3, 0.0  ;;  %v2009_v11 = vadd.f32 %v7873_v2, %v1954_v20  ;;  %v1956_v61 = vmax.f32 %v1860_v39, %v10270_v1  ;;  %v10271_v63 = vmax.f32 %v8246_v5, %v8355_v30  ;;  %v1502_v3 = vpop.f32.mrb[127].mxu0 }
 0x1df   :  { %2125 = vst.msk [vmem:[#allocation2 + $0x170] sm:$0xff] %vm2078_vm1, %v2076_v29  ;;  %v2054_v23 = vmax.f32 %v2006_v18, 0.0  ;;  %v2008_v34 = vadd.f32 %v7873_v2, %v1953_v43  ;;  %v1862_v15 = vmax.f32 %v8363_v47, %v6552_v0  ;;  %v1861_v5 = vmax.f32 %v8375_v31, %v1502_v3  ;;  %v6555_v57 = vpop.f32.mrb[128].mxu0  ;;  %v10279_v0 = vld [vmem:[#allocation12_spill] sm:$0xff] }
 0x1e0   :  { %2104 = vst.msk [vmem:[#allocation2 + $0xc8] sm:$0xff] %vm2078_vm1, %v2055_v60  ;;  %v2057_v27 = vmax.f32 %v2009_v11, 0.0  ;;  %v1955_v51 = vmax.f32 %v1859_v21, %v10271_v63  ;;  %v2011_v13 = vadd.f32 %v7873_v2, %v1956_v61  ;;  %v10272_v50 = vmax.f32 %v8248_v38, %v8361_v33  ;;  %v1512_v14 = vpop.f32.mrb[129].mxu0 }
 0x1e1   :  { %3388 = vrot.lane.b32.xlu1 %v8484_v36, %s6857_s11  ;;  %2103 = vst.msk [vmem:[#allocation2 + $0xc0] sm:$0xff] %vm2078_vm1, %v2054_v23  ;;  %v2056_v7 = vmax.f32 %v2008_v34, 0.0  ;;  %v10273_v47 = vmax.f32 %v8250_v8, %v8367_v19  ;;  %v1864_v26 = vmax.f32 %v8377_v22, %v6555_v57  ;;  %v1863_v8 = vmax.f32 %v8385_v56, %v1512_v14  ;;  %v10276_v23 = vld [vmem:[#allocation23_spill] sm:$0xff] }
 0x1e2   :  { %2199 = vrot.lane.b32.xlu0 %v7996_v54, %s6853_s28  ;;  %2106 = vst.msk [vmem:[#allocation2 + $0xd8] sm:$0xff] %vm2078_vm1, %v2057_v27  ;;  %v2010_v4 = vadd.f32 %v7873_v2, %v1955_v51  ;;  %v2059_v49 = vmax.f32 %v2011_v13, 0.0  ;;  %v1958_v30 = vmax.f32 %v1862_v15, %v10272_v50  ;;  %v10274_v33 = vmax.f32 %v8258_v44, %v8379_v59  ;;  %v10280_v13 = vld [vmem:[#allocation30_spill] sm:$0xff] }
 0x1e3   :  { %2105 = vst.msk [vmem:[#allocation2 + $0xd0] sm:$0xff] %vm2078_vm1, %v2056_v7  ;;  %v1957_v6 = vmax.f32 %v1861_v5, %v10273_v47  ;;  %v10275_v18 = vmax.f32 %v8265_v17, %v8383_v16  ;;  %v6558_v28 = vpop.f32.mrb[130].mxu0  ;;  %v10277_v42 = vmax.f32 %v8273_v41, %v10276_v23  ;;  %v10278_v34 = vmax.f32 %v8275_v46, %v8399_v45  ;;  %v10285_v47 = vld [vmem:[#allocation32_spill] sm:$0xff] }
 0x1e4   :  { %v2058_v9 = vmax.f32 %v2010_v4, 0.0  ;;  %2108 = vst.msk [vmem:[#allocation2 + $0xe8] sm:$0xff] %vm2078_vm1, %v2059_v49  ;;  %v2013_v29 = vadd.f32 %v7873_v2, %v1958_v30  ;;  %v1960_v31 = vmax.f32 %v1864_v26, %v10274_v33  ;;  %v1866_v59 = vmax.f32 %v8389_v48, %v6558_v28  ;;  %v1522_v44 = vpop.f32.mrb[131].mxu0  ;;  %v10283_v4 = vld [vmem:[#allocation31_spill] sm:$0xff]  ;;  %v10286_v33 = vld [vmem:[#allocation13_spill] sm:$0xff] }
 0x1e5   :  { %2586 = vrot.lane.b32.xlu1 %v7994_v35, %s6856_s10  ;;  %v2012_v38 = vadd.f32 %v7873_v2, %v1957_v6  ;;  %v1959_v37 = vmax.f32 %v1863_v8, %v10275_v18  ;;  %v8568_v2 = vld [vmem:[%s10099_s2] ss:$0 sm:$0xff]  ;;  %v1865_v17 = vmax.f32 %v8401_v40, %v1522_v44  ;;  %v10281_v15 = vmax.f32 %v10279_v0, %v10280_v13  ;;  %v10298_v13 = vld [vmem:[#allocation40_spill] sm:$0xff] }
 0x1e6   :  { %2296 = vrot.lane.b32.xlu0 %v8471_v32, %s6852_s27  ;;  %2107 = vst.msk [vmem:[#allocation2 + $0xe0] sm:$0xff] %vm2078_vm1, %v2058_v9  ;;  %v2061_v19 = vmax.f32 %v2013_v29, 0.0  ;;  %v2015_v56 = vadd.f32 %v8568_v2, %v1960_v31  ;;  %v1962_v48 = vmax.f32 %v1866_v59, %v10277_v42  ;;  %v4265_v30 = vld [vmem:[#allocation2 + $0x174] sm:$0xff] }
 0x1e7   :  { %v2060_v22 = vmax.f32 %v2012_v38, 0.0  ;;  %v2014_v16 = vadd.f32 %v8568_v2, %v1959_v37  ;;  %v1961_v21 = vmax.f32 %v1865_v17, %v10278_v34  ;;  %v6561_v41 = vpop.f32.mrb[132].mxu0  ;;  %4281 = vst.msk [vmem:[#allocation3 + $0x1f8] sm:$0xff] %vm2078_vm1, %v4265_v30  ;;  %v10287_v31 = vld [vmem:[#allocation33_spill] sm:$0xff]  ;;  %v10289_v37 = vmax.f32 %v8289_v52, %v8427_v62  ;;  %v10290_v52 = vld [vmem:[#allocation36_spill] sm:$0xff] }
 0x1e8   :  { %v2135_v60 = vld [vmem:[#allocation2 + $0xc0] sm:$0xff]  ;;  %2110 = vst.msk [vmem:[#allocation2 + $0xf8] sm:$0xff] %vm2078_vm1, %v2061_v19  ;;  %v2063_v20 = vmax.f32 %v2015_v56, 0.0  ;;  %v2017_v40 = vadd.f32 %v8568_v2, %v1962_v48  ;;  %v1868_v45 = vmax.f32 %v8405_v12, %v6561_v41  ;;  %v1532_v27 = vpop.f32.mrb[133].mxu0  ;;  %v10282_v12 = vld [vmem:[#allocation20_spill] sm:$0xff]  ;;  %v8675_v34 = vld [vmem:[#allocation2 + $0x52] sm:$0xff] }
 0x1e9   :  { %2683 = vrot.lane.b32.xlu1 %v7996_v54, %s6857_s11  ;;  %2151 = vst.msk [vmem:[#allocation3 + $0x100] sm:$0xff] %vm2078_vm1, %v2135_v60  ;;  %2109 = vst.msk [vmem:[#allocation2 + $0xf0] sm:$0xff] %vm2078_vm1, %v2060_v22  ;;  %v2062_v53 = vmax.f32 %v2014_v16, 0.0  ;;  %v2016_v46 = vadd.f32 %v8568_v2, %v1961_v21  ;;  %v1867_v7 = vmax.f32 %v8413_v10, %v1532_v27  ;;  %v8618_v10 = vld [vmem:[#allocation2 + $0x50] sm:$0xff]  ;;  %v10295_v41 = vld [vmem:[#allocation35_spill] sm:$0xff] }
 0x1ea   :  { %2393 = vrot.lane.b32.xlu0 %v8003_v55, %s6854_s29  ;;  %v8582_v43 = vld [vmem:[#allocation2 + $0xd3] sm:$0xff]  ;;  %2112 = vst.msk [vmem:[#allocation2 + $0x108] sm:$0xff] %vm2078_vm1, %v2063_v20  ;;  %v2065_v61 = vmax.f32 %v2017_v40, 0.0  ;;  %v1964_v3 = vmax.f32 %v1868_v45, %v10281_v15  ;;  %v10284_v5 = vmax.f32 %v10282_v12, %v10283_v4  ;;  %v10288_v60 = vmax.f32 %v10286_v33, %v10287_v31  ;;  %v10294_v40 = vld [vmem:[#allocation28_spill] sm:$0xff] }
 0x1eb   :  { %v8584_v24 = vld [vmem:[#allocation2 + $0xd0] sm:$0xff]  ;;  %2863 = vst.msk [vmem:[#allocation3 + $0x108] sm:$0xff] %vm2078_vm1, %v8582_v43  ;;  %2111 = vst.msk [vmem:[#allocation2 + $0x100] sm:$0xff] %vm2078_vm1, %v2062_v53  ;;  %v2064_v51 = vmax.f32 %v2016_v46, 0.0  ;;  %v6564_v50 = vpop.f32.mrb[134].mxu0  ;;  %v10296_v46 = vmax.f32 %v10294_v40, %v10295_v41 }
 0x1ec   :  { %2152 = vst.msk [vmem:[#allocation3 + $0x120] sm:$0xff] %vm2078_vm1, %v8584_v24  ;;  %2114 = vst.msk [vmem:[#allocation2 + $0x118] sm:$0xff] %vm2078_vm1, %v2065_v61  ;;  %v1963_v49 = vmax.f32 %v1867_v7, %v10284_v5  ;;  %v2019_v9 = vadd.f32 %v8568_v2, %v1964_v3  ;;  %v1870_v6 = vmax.f32 %v10285_v47, %v6564_v50  ;;  %v1542_v57 = vpop.f32.mrb[135].mxu0  ;;  %v10297_v7 = vld [vmem:[#allocation37_spill] sm:$0xff] }
 0x1ed   :  { %2780 = vrot.lane.b32.xlu1 %v8471_v32, %s6858_s16  ;;  %v8604_v1 = vld [vmem:[#allocation2 + $0xe0] sm:$0xff]  ;;  %2113 = vst.msk [vmem:[#allocation2 + $0x110] sm:$0xff] %vm2078_vm1, %v2064_v51  ;;  %v1869_v14 = vmax.f32 %v8429_v25, %v1542_v57  ;;  %v8647_v25 = vld [vmem:[#allocation2 + $0x51] sm:$0xff] }
 0x1ee   :  { %3611 = vrot.lane.b32.xlu0 %v8471_v32, %s6853_s28  ;;  %v8607_v63 = vld [vmem:[#allocation2 + $0xe3] sm:$0xff]  ;;  %2153 = vst.msk [vmem:[#allocation3 + $0x140] sm:$0xff] %vm2078_vm1, %v8604_v1  ;;  %v2018_v26 = vadd.f32 %v8568_v2, %v1963_v49  ;;  %v2067_v19 = vmax.f32 %v2019_v9, 0.0  ;;  %v1966_v22 = vmax.f32 %v1870_v6, %v10288_v60  ;;  %v10299_v5 = vld [vmem:[#allocation29_spill] sm:$0xff]  ;;  %v10300_v49 = vld [vmem:[#allocation38_spill] sm:$0xff] }
 0x1ef   :  { %2864 = vst.msk [vmem:[#allocation3 + $0x128] sm:$0xff] %vm2078_vm1, %v8607_v63  ;;  %v1965_v28 = vmax.f32 %v1869_v14, %v10289_v37  ;;  %v6567_v56 = vpop.f32.mrb[136].mxu0  ;;  %v10301_v50 = vmax.f32 %v10299_v5, %v10300_v49  ;;  %v8703_v9 = vld [vmem:[#allocation2 + $0x54] sm:$0xff]  ;;  %v10303_v57 = vld [vmem:[#allocation39_spill] sm:$0xff] }
 0x1f0   :  { %v8631_v29 = vld [vmem:[#allocation2 + $0xf0] sm:$0xff]  ;;  %v2066_v18 = vmax.f32 %v2018_v26, 0.0  ;;  %2116 = vst.msk [vmem:[#allocation2 + $0x128] sm:$0xff] %vm2078_vm1, %v2067_v19  ;;  %v2021_v59 = vadd.f32 %v8568_v2, %v1966_v22  ;;  %v1872_v44 = vmax.f32 %v8433_v58, %v6567_v56  ;;  %v1552_v16 = vpop.f32.mrb[137].mxu0  ;;  %v10302_v6 = vld [vmem:[#allocation14_spill] sm:$0xff] }
 0x1f1   :  { %2490 = vrot.lane.b32.xlu1 %v8484_v36, %s6855_s30  ;;  %2154 = vst.msk [vmem:[#allocation3 + $0x160] sm:$0xff] %vm2078_vm1, %v8631_v29  ;;  %v2020_v62 = vadd.f32 %v8568_v2, %v1965_v28  ;;  %v1871_v20 = vmax.f32 %v10290_v52, %v1552_v16  ;;  %v10304_v26 = vmax.f32 %v10302_v6, %v10303_v57  ;;  %v10305_v19 = vld [vmem:[#allocation41_spill] sm:$0xff]  ;;  %v10308_v52 = vld [vmem:[#allocation42_spill] sm:$0xff] }
 0x1f2   :  { %3707 = vrot.lane.b32.xlu0 %v8003_v55, %s6852_s27  ;;  %v8659_v17 = vld [vmem:[#allocation2 + $0x100] sm:$0xff]  ;;  %2115 = vst.msk [vmem:[#allocation2 + $0x120] sm:$0xff] %vm2078_vm1, %v2066_v18  ;;  %v2069_v48 = vmax.f32 %v2021_v59, 0.0  ;;  %v10306_v18 = vld [vmem:[#allocation44_spill] sm:$0xff] }
 0x1f3   :  { %v2289_v11 = vpop.permute.xlu1 %2288  ;;  %2155 = vst.msk [vmem:[#allocation3 + $0x180] sm:$0xff] %vm2078_vm1, %v8659_v17  ;;  %v2068_v21 = vmax.f32 %v2020_v62, 0.0  ;;  %v1967_v45 = vmax.f32 %v1871_v20, %v10296_v46  ;;  %v6570_v27 = vpop.f32.mrb[138].mxu0  ;;  %v3553_v56 = vld [vmem:[#allocation2 + $0xf1] sm:$0xff]  ;;  %v10307_v62 = vld [vmem:[#allocation22_spill] sm:$0xff] }
 0x1f4   :  { %v2192_v39 = vpop.permute.xlu0 %2191  ;;  %2118 = vst.msk [vmem:[#allocation2 + $0x138] sm:$0xff] %vm2078_vm1, %v2069_v48  ;;  %v8687_v51 = vld [vmem:[#allocation2 + $0x110] sm:$0xff]  ;;  %v10309_v20 = vmax.f32 %v10307_v62, %v10308_v52  ;;  %3569 = vst.msk [vmem:[#allocation3 + $0x110] sm:$0xff] %vm2078_vm1, %v3553_v56  ;;  %v10310_v48 = vld [vmem:[#allocation15_spill] sm:$0xff] }
 0x1f5   :  { %2240 = vst.msk [vmem:[#allocation3] sm:$0xff] %vm2239_vm2, %v2192_v39  ;;  %3898 = vrot.lane.b32.xlu1 %v7994_v35, %s6855_s30  ;;  %v10292_v39 = vld [vmem:[#allocation34_spill] sm:$0xff]  ;;  %v2022_v0 = vadd.f32 %v8568_v2, %v1967_v45  ;;  %v3164_v62 = vld [vmem:[#allocation2 + $0x62] sm:$0xff] }
 0x1f6   :  { %3803 = vrot.lane.b32.xlu0 %v8484_v36, %s6854_s29  ;;  %2337 = vst.msk [vmem:[#allocation3] sm:$0xff] %vm2336_vm3, %v2289_v11  ;;  %v10291_v11 = vld [vmem:[#allocation21_spill] sm:$0xff]  ;;  %v3554_v45 = vld [vmem:[#allocation2 + $0x101] sm:$0xff] }
 0x1f7   :  { %v2386_v35 = vpop.permute.xlu1 %2385  ;;  %v10293_v58 = vmax.f32 %v10291_v11, %v10292_v39  ;;  %2117 = vst.msk [vmem:[#allocation2 + $0x130] sm:$0xff] %vm2078_vm1, %v2068_v21  ;;  %2156 = vst.msk [vmem:[#allocation3 + $0x1a0] sm:$0xff] %vm2078_vm1, %v8687_v51  ;;  %v2070_v47 = vmax.f32 %v2022_v0, 0.0  ;;  %v10311_v11 = vld [vmem:[#allocation43_spill] sm:$0xff]  ;;  %v3555_v0 = vld [vmem:[#allocation2 + $0x111] sm:$0xff] }
 0x1f8   :  { %v2904_v36 = vpop.permute.xlu0 %2903  ;;  %2434 = vst.msk [vmem:[#allocation3] sm:$0xff] %vm2433_vm4, %v2386_v35  ;;  %v1874_v35 = vmax.f32 %v10297_v7, %v6570_v27  ;;  %v10312_v39 = vmax.f32 %v10310_v48, %v10311_v11 }
 0x1f9   :  { %2951 = vst.msk [vmem:[#allocation3 + $0x8] sm:$0xff] %vm2239_vm2, %v2904_v36  ;;  %3994 = vrot.lane.b32.xlu1 %v7996_v54, %s6856_s10  ;;  %v8636_v54 = vld [vmem:[#allocation2 + $0xf3] sm:$0xff]  ;;  %v1968_v53 = vmax.f32 %v1872_v44, %v10293_v58  ;;  %v1562_v36 = vpop.f32.mrb[139].mxu0  ;;  %v8715_v60 = vld [vmem:[#allocation2 + $0x120] sm:$0xff] }
 0x1fa   :  { %3006 = vrot.lane.b32.xlu0 %v8618_v10, %s6852_s27  ;;  %2865 = vst.msk [vmem:[#allocation3 + $0x148] sm:$0xff] %vm2078_vm1, %v8636_v54  ;;  %v1873_v15 = vmax.f32 %v10298_v13, %v1562_v36  ;;  %v1970_v30 = vmax.f32 %v1874_v35, %v10301_v50  ;;  %2119 = vst.msk [vmem:[#allocation2 + $0x140] sm:$0xff] %vm2078_vm1, %v2070_v47  ;;  %v8720_v28 = vld [vmem:[#allocation2 + $0x123] sm:$0xff] }
 0x1fb   :  { %v2483_v38 = vpop.permute.xlu1 %2482  ;;  %v2023_v61 = vadd.f32 %v8568_v2, %v1968_v53  ;;  %2157 = vst.msk [vmem:[#allocation3 + $0x1c0] sm:$0xff] %vm2078_vm1, %v8715_v60  ;;  %2868 = vst.msk [vmem:[#allocation3 + $0x1a8] sm:$0xff] %vm2078_vm1, %v8720_v28  ;;  %v10313_v53 = vld [vmem:[#allocation8_spill] sm:$0xff] }
 0x1fc   :  { %v2194_v8 = vpop.permute.xlu0 %2193  ;;  %2531 = vst.msk [vmem:[#allocation3] sm:$0xff] %vm2530_vm5, %v2483_v38  ;;  %v1969_v14 = vmax.f32 %v1873_v15, %v10304_v26  ;;  %v6573_v38 = vpop.f32.mrb[140].mxu0  ;;  %v4258_v35 = vld [vmem:[#allocation2 + $0x104] sm:$0xff] }
 0x1fd   :  { %2241 = vst.msk [vmem:[#allocation3 + $0x20] sm:$0xff] %vm2239_vm2, %v2194_v8  ;;  %4090 = vrot.lane.b32.xlu1 %v8471_v32, %s6857_s11  ;;  %v8664_v32 = vld [vmem:[#allocation2 + $0x103] sm:$0xff]  ;;  %v2071_v4 = vmax.f32 %v2023_v61, 0.0  ;;  %v2025_v8 = vadd.f32 %v8568_v2, %v1970_v30  ;;  %v1876_v33 = vmax.f32 %v10305_v19, %v6573_v38  ;;  %v1572_v31 = vpop.f32.mrb[141].mxu0 }
 0x1fe   :  { %3102 = vrot.lane.b32.xlu0 %v8647_v25, %s6854_s29  ;;  %2866 = vst.msk [vmem:[#allocation3 + $0x168] sm:$0xff] %vm2078_vm1, %v8664_v32  ;;  %v2024_v22 = vadd.f32 %v8568_v2, %v1969_v14  ;;  %v1875_v37 = vmax.f32 %v10306_v18, %v1572_v31  ;;  %v8740_v40 = vld [vmem:[#allocation2 + $0x130] sm:$0xff]  ;;  %3570 = vst.msk [vmem:[#allocation3 + $0x130] sm:$0xff] %vm2078_vm1, %v3554_v45  ;;  %v4260_v49 = vld [vmem:[#allocation2 + $0x124] sm:$0xff] }
 0x1ff   :  { %v2581_v23 = vpop.permute.xlu1 %2580  ;;  %2120 = vst.msk [vmem:[#allocation2 + $0x148] sm:$0xff] %vm2078_vm1, %v2071_v4  ;;  %v2073_v16 = vmax.f32 %v2025_v8, 0.0  ;;  %v8744_v46 = vld [vmem:[#allocation2 + $0x133] sm:$0xff]  ;;  %2158 = vst.msk [vmem:[#allocation3 + $0x1e0] sm:$0xff] %vm2078_vm1, %v8740_v40 }
 0x200   :  { %v2291_v42 = vpop.permute.xlu0 %2290  ;;  %2629 = vst.msk [vmem:[#allocation3] sm:$0xff] %vm2628_vm6, %v2581_v23  ;;  %v1972_v23 = vmax.f32 %v1876_v33, %v10309_v20  ;;  %v1971_v58 = vmax.f32 %v1875_v37, %v10312_v39  ;;  %v3557_v50 = vld [vmem:[#allocation2 + $0x131] sm:$0xff]  ;;  %v2972_v37 = vld [vmem:[#allocation2 + $0x60] sm:$0xff] }
 0x201   :  { %2338 = vst.msk [vmem:[#allocation3 + $0x20] sm:$0xff] %vm2336_vm3, %v2291_v42  ;;  %4186 = vrot.lane.b32.xlu1 %v8003_v55, %s6858_s16  ;;  %v8692_v55 = vld [vmem:[#allocation2 + $0x113] sm:$0xff]  ;;  %v2072_v42 = vmax.f32 %v2024_v22, 0.0 }
 0x202   :  { %3198 = vrot.lane.b32.xlu0 %v8675_v34, %s6855_s30  ;;  %2867 = vst.msk [vmem:[#allocation3 + $0x188] sm:$0xff] %vm2078_vm1, %v8692_v55  ;;  %2122 = vst.msk [vmem:[#allocation2 + $0x158] sm:$0xff] %vm2078_vm1, %v2073_v16  ;;  %v2027_v21 = vadd.f32 %v8568_v2, %v1972_v23  ;;  %v2026_v41 = vadd.f32 %v8568_v2, %v1971_v58  ;;  %v4261_v30 = vld [vmem:[#allocation2 + $0x134] sm:$0xff]  ;;  %v10314_v23 = vld [vmem:[#allocation16_spill] sm:$0xff] }
 0x203   :  { %v2678_v3 = vpop.permute.xlu1 %2677  ;;  %2121 = vst.msk [vmem:[#allocation2 + $0x150] sm:$0xff] %vm2078_vm1, %v2072_v42  ;;  %2869 = vst.msk [vmem:[#allocation3 + $0x1c8] sm:$0xff] %vm2078_vm1, %v8744_v46 }
 0x204   :  { %v2388_v12 = vpop.permute.xlu0 %2387  ;;  %2726 = vst.msk [vmem:[#allocation3] sm:$0xff] %vm2725_vm7, %v2678_v3  ;;  %v2075_v7 = vmax.f32 %v2027_v21, 0.0  ;;  %v2074_v36 = vmax.f32 %v2026_v41, 0.0  ;;  %v4259_v3 = vld [vmem:[#allocation2 + $0x114] sm:$0xff] }
 0x205   :  { %2435 = vst.msk [vmem:[#allocation3 + $0x20] sm:$0xff] %vm2433_vm4, %v2388_v12  ;;  %3485 = vrot.lane.b32.xlu1 %v8618_v10, %s6858_s16  ;;  %v3556_v12 = vld [vmem:[#allocation2 + $0x121] sm:$0xff] }
 0x206   :  { %2911 = vrot.lane.b32.xlu0 %v8703_v9, %s6853_s28  ;;  %4274 = vst.msk [vmem:[#allocation3 + $0x118] sm:$0xff] %vm2078_vm1, %v4258_v35  ;;  %2124 = vst.msk [vmem:[#allocation2 + $0x168] sm:$0xff] %vm2078_vm1, %v2075_v7  ;;  %v8759_v2 = vld [vmem:[#allocation2 + $0x143] sm:$0xff] }
 0x207   :  { %v2775_v59 = vpop.permute.xlu1 %2774  ;;  %2123 = vst.msk [vmem:[#allocation2 + $0x160] sm:$0xff] %vm2078_vm1, %v2074_v36  ;;  %2870 = vst.msk [vmem:[#allocation3 + $0x1e8] sm:$0xff] %vm2078_vm1, %v8759_v2  ;;  %v4262_v26 = vld [vmem:[#allocation2 + $0x144] sm:$0xff] }
 0x208   :  { %v3097_v44 = vpop.permute.xlu0 %3096  ;;  %2823 = vst.msk [vmem:[#allocation3] sm:$0xff] %vm2822_vm8, %v2775_v59  ;;  %v3068_v59 = vld [vmem:[#allocation2 + $0x61] sm:$0xff] }
 0x209   :  { %3294 = vrot.lane.b32.xlu1 %v10313_v53, %s6856_s10  ;;  %3571 = vst.msk [vmem:[#allocation3 + $0x150] sm:$0xff] %vm2078_vm1, %v3555_v0  ;;  %4275 = vst.msk [vmem:[#allocation3 + $0x138] sm:$0xff] %vm2078_vm1, %v4259_v3 }
 0x20a   :  { %2201 = vrot.lane.b32.xlu0 %v8647_v25, %s6853_s28  ;;  %3572 = vst.msk [vmem:[#allocation3 + $0x170] sm:$0xff] %vm2078_vm1, %v3556_v12  ;;  %4276 = vst.msk [vmem:[#allocation3 + $0x158] sm:$0xff] %vm2078_vm1, %v4260_v49  ;;  %v4263_v8 = vld [vmem:[#allocation2 + $0x154] sm:$0xff] }
 0x20b   :  { %v2485_v27 = vpop.permute.xlu1 %2484  ;;  %3573 = vst.msk [vmem:[#allocation3 + $0x190] sm:$0xff] %vm2078_vm1, %v3557_v50  ;;  %4277 = vst.msk [vmem:[#allocation3 + $0x178] sm:$0xff] %vm2078_vm1, %v4261_v30 }
 0x20c   :  { %v3193_v61 = vpop.permute.xlu0 %3192  ;;  %2532 = vst.msk [vmem:[#allocation3 + $0x20] sm:$0xff] %vm2530_vm5, %v2485_v27 }
 0x20d   :  { %3390 = vrot.lane.b32.xlu1 %v8703_v9, %s6857_s11  ;;  %4278 = vst.msk [vmem:[#allocation3 + $0x198] sm:$0xff] %vm2078_vm1, %v4262_v26  ;;  %4279 = vst.msk [vmem:[#allocation3 + $0x1b8] sm:$0xff] %vm2078_vm1, %v4263_v8  ;;  %v2877_v26 = vld [vmem:[#allocation2 + $0x74] sm:$0xff] }
 0x20e   :  { %2298 = vrot.lane.b32.xlu0 %v8675_v34, %s6852_s27  ;;  %v8785_v57 = vld [vmem:[#allocation2 + $0x161] sm:$0xff] }
 0x20f   :  { %v3001_v13 = vpop.permute.xlu1 %3000  ;;  %3576 = vst.msk [vmem:[#allocation3 + $0x1f0] sm:$0xff] %vm2078_vm1, %v8785_v57  ;;  %v8809_v31 = vld [vmem:[#allocation2 + $0x164] sm:$0xff] }
 0x210   :  { %v2906_v15 = vpop.permute.xlu0 %2905  ;;  %3048 = vst.msk [vmem:[#allocation3 + $0x8] sm:$0xff] %vm2336_vm3, %v3001_v13  ;;  %v4282_v39 = vld [vmem:[#allocation3] sm:$0xff] }
 0x211   :  { %2952 = vst.msk [vmem:[#allocation3 + $0x28] sm:$0xff] %vm2239_vm2, %v2906_v15  ;;  %2588 = vrot.lane.b32.xlu1 %v8618_v10, %s6856_s10  ;;  %v10315_v15 = vld [vmem:[#allocation9_spill] sm:$0xff] }
 0x212   :  { %3144 = vst.msk [vmem:[#allocation3 + $0x8] sm:$0xff] %vm2433_vm4, %v3097_v44  ;;  %2395 = vrot.lane.b32.xlu0 %v10313_v53, %s6854_s29 }
 0x213   :  { %3240 = vst.msk [vmem:[#allocation3 + $0x8] sm:$0xff] %vm2530_vm5, %v3193_v61  ;;  %v3289_v4 = vpop.permute.xlu1 %3288 }
 0x214   :  { %v2196_v5 = vpop.permute.xlu0 %2195  ;;  %3336 = vst.msk [vmem:[#allocation3 + $0x8] sm:$0xff] %vm2628_vm6, %v3289_v4  ;;  %v10316_v4 = vld [vmem:[#allocation17_spill] sm:$0xff] }
 0x215   :  { %2242 = vst.msk [vmem:[#allocation3 + $0x40] sm:$0xff] %vm2239_vm2, %v2196_v5  ;;  %2685 = vrot.lane.b32.xlu1 %v8647_v25, %s6857_s11 }
 0x216   :  { %3900 = vrot.lane.b32.xlu0 %v8618_v10, %s6855_s30  ;;  %v3558_v10 = vld [vmem:[#allocation2 + $0x141] sm:$0xff]  ;;  %4280 = vst.msk [vmem:[#allocation3 + $0x1d8] sm:$0xff] %vm2078_vm1, %v8809_v31 }
 0x217   :  { %v3385_v47 = vpop.permute.xlu1 %3384  ;;  %3574 = vst.msk [vmem:[#allocation3 + $0x1b0] sm:$0xff] %vm2078_vm1, %v3558_v10 }
 0x218   :  { %v2293_v6 = vpop.permute.xlu0 %2292  ;;  %3432 = vst.msk [vmem:[#allocation3 + $0x8] sm:$0xff] %vm2725_vm7, %v3385_v47  ;;  %v3165_v47 = vld [vmem:[#allocation2 + $0x72] sm:$0xff] }
 0x219   :  { %2339 = vst.msk [vmem:[#allocation3 + $0x40] sm:$0xff] %vm2336_vm3, %v2293_v6  ;;  %2782 = vrot.lane.b32.xlu1 %v8675_v34, %s6858_s16 }
 0x21a   :  { %3996 = vrot.lane.b32.xlu0 %v8647_v25, %s6856_s10  ;;  %v3559_v25 = vld [vmem:[#allocation2 + $0x151] sm:$0xff] }
 0x21b   :  { %v2583_v14 = vpop.permute.xlu1 %2582  ;;  %3575 = vst.msk [vmem:[#allocation3 + $0x1d0] sm:$0xff] %vm2078_vm1, %v3559_v25  ;;  %v10317_v25 = vld [vmem:[#allocation24_spill] sm:$0xff] }
 0x21c   :  { %v2390_v38 = vpop.permute.xlu0 %2389  ;;  %2630 = vst.msk [vmem:[#allocation3 + $0x20] sm:$0xff] %vm2628_vm6, %v2583_v14 }
 0x21d   :  { %2436 = vst.msk [vmem:[#allocation3 + $0x40] sm:$0xff] %vm2433_vm4, %v2390_v38  ;;  %2492 = vrot.lane.b32.xlu1 %v8703_v9, %s6855_s30 }
 0x21e   :  { %4092 = vrot.lane.b32.xlu0 %v8675_v34, %s6857_s11 }
 0x21f   :  { %v2680_v19 = vpop.permute.xlu1 %2679 }
 0x220   :  { %v3003_v33 = vpop.permute.xlu0 %3002  ;;  %2727 = vst.msk [vmem:[#allocation3 + $0x20] sm:$0xff] %vm2725_vm7, %v2680_v19 }
 0x221   :  { %3049 = vst.msk [vmem:[#allocation3 + $0x28] sm:$0xff] %vm2336_vm3, %v3003_v33  ;;  %3613 = vrot.lane.b32.xlu1 %v8675_v34, %s6853_s28 }
 0x222   :  { %4188 = vrot.lane.b32.xlu0 %v10313_v53, %s6858_s16 }
 0x223   :  { %v2777_v22 = vpop.permute.xlu1 %2776 }
 0x224   :  { %v3099_v18 = vpop.permute.xlu0 %3098  ;;  %2824 = vst.msk [vmem:[#allocation3 + $0x20] sm:$0xff] %vm2822_vm8, %v2777_v22 }
 0x225   :  { %3145 = vst.msk [vmem:[#allocation3 + $0x28] sm:$0xff] %vm2433_vm4, %v3099_v18  ;;  %3709 = vrot.lane.b32.xlu1 %v10313_v53, %s6852_s27 }
 0x226   :  { %3008 = vrot.lane.b32.xlu0 %v2972_v37, %s6852_s27 }
 0x227   :  { %v2487_v34 = vpop.permute.xlu1 %2486 }
 0x228   :  { %v3195_v56 = vpop.permute.xlu0 %3194  ;;  %2533 = vst.msk [vmem:[#allocation3 + $0x40] sm:$0xff] %vm2530_vm5, %v2487_v34 }
 0x229   :  { %3241 = vst.msk [vmem:[#allocation3 + $0x28] sm:$0xff] %vm2530_vm5, %v3195_v56  ;;  %3805 = vrot.lane.b32.xlu1 %v8703_v9, %s6854_s29  ;;  %v2876_v9 = vld [vmem:[#allocation2 + $0x64] sm:$0xff] }
 0x22a   :  { %3104 = vrot.lane.b32.xlu0 %v3068_v59, %s6854_s29 }
 0x22b   :  { %v3482_v44 = vpop.permute.xlu1 %3481  ;;  %v4286_v30 = vld [vmem:[#allocation3 + $0x20] sm:$0xff] }
 0x22c   :  { %v2908_v16 = vpop.permute.xlu0 %2907  ;;  %3529 = vst.msk [vmem:[#allocation3 + $0x8] sm:$0xff] %vm2822_vm8, %v3482_v44 }
 0x22d   :  { %2953 = vst.msk [vmem:[#allocation3 + $0x48] sm:$0xff] %vm2239_vm2, %v2908_v16  ;;  %3487 = vrot.lane.b32.xlu1 %v2972_v37, %s6858_s16 }
 0x22e   :  { %3200 = vrot.lane.b32.xlu0 %v3164_v62, %s6855_s30 }
 0x22f   :  { %v3291_v52 = vpop.permute.xlu1 %3290 }
 0x230   :  { %v2198_v20 = vpop.permute.xlu0 %2197  ;;  %3337 = vst.msk [vmem:[#allocation3 + $0x28] sm:$0xff] %vm2628_vm6, %v3291_v52 }
 0x231   :  { %2243 = vst.msk [vmem:[#allocation3 + $0x60] sm:$0xff] %vm2239_vm2, %v2198_v20  ;;  %3296 = vrot.lane.b32.xlu1 %v10314_v23, %s6856_s10 }
 0x232   :  { %2913 = vrot.lane.b32.xlu0 %v2876_v9, %s6853_s28 }
 0x233   :  { %v3387_v42 = vpop.permute.xlu1 %3386  ;;  %v4283_v11 = vld [vmem:[#allocation3 + $0x8] sm:$0xff] }
 0x234   :  { %v2295_v48 = vpop.permute.xlu0 %2294  ;;  %3433 = vst.msk [vmem:[#allocation3 + $0x28] sm:$0xff] %vm2725_vm7, %v3387_v42  ;;  %4508 = vmatprep.mubr.f32.mxu1 %v4283_v11 }
 0x235   :  { %2340 = vst.msk [vmem:[#allocation3 + $0x60] sm:$0xff] %vm2336_vm3, %v2295_v48  ;;  %4509 = vmatmul.mubr.f32.vlgmr.msra.gmra.mrb[50].mxu1 %v4282_v39  ;;  %3392 = vrot.lane.b32.xlu1 %v2876_v9, %s6857_s11  ;;  %v10318_v48 = vld [vmem:[#allocation25_spill] sm:$0xff] }
 0x236   :  { %2203 = vrot.lane.b32.xlu0 %v3068_v59, %s6853_s28 }
 0x237   :  { %v2585_v58 = vpop.permute.xlu1 %2584 }
 0x238   :  { %v2392_v53 = vpop.permute.xlu0 %2391  ;;  %2631 = vst.msk [vmem:[#allocation3 + $0x40] sm:$0xff] %vm2628_vm6, %v2585_v58 }
 0x239   :  { %2437 = vst.msk [vmem:[#allocation3 + $0x60] sm:$0xff] %vm2433_vm4, %v2392_v53  ;;  %2590 = vrot.lane.b32.xlu1 %v2972_v37, %s6856_s10 }
 0x23a   :  { %2300 = vrot.lane.b32.xlu0 %v3164_v62, %s6852_s27 }
 0x23b   :  { %v2682_v21 = vpop.permute.xlu1 %2681 }
 0x23c   :  { %v3706_v41 = vpop.permute.xlu0 %3705  ;;  %2728 = vst.msk [vmem:[#allocation3 + $0x40] sm:$0xff] %vm2725_vm7, %v2682_v21  ;;  %v3166_v21 = vld [vmem:[#allocation2 + $0x82] sm:$0xff] }
 0x23d   :  { %2687 = vrot.lane.b32.xlu1 %v3068_v59, %s6857_s11 }
 0x23e   :  { %2397 = vrot.lane.b32.xlu0 %v10314_v23, %s6854_s29 }
 0x23f   :  { %v2779_v45 = vpop.permute.xlu1 %2778 }
 0x240   :  { %v3802_v27 = vpop.permute.xlu0 %3801  ;;  %2825 = vst.msk [vmem:[#allocation3 + $0x40] sm:$0xff] %vm2822_vm8, %v2779_v45 }
 0x241   :  { %2784 = vrot.lane.b32.xlu1 %v3164_v62, %s6858_s16 }
 0x242   :  { %3615 = vrot.lane.b32.xlu0 %v3164_v62, %s6853_s28 }
 0x243   :  { %v2489_v61 = vpop.permute.xlu1 %2488 }
 0x244   :  { %v3005_v7 = vpop.permute.xlu0 %3004  ;;  %2534 = vst.msk [vmem:[#allocation3 + $0x60] sm:$0xff] %vm2530_vm5, %v2489_v61  ;;  %v2878_v61 = vld [vmem:[#allocation2 + $0x84] sm:$0xff] }
 0x245   :  { %3050 = vst.msk [vmem:[#allocation3 + $0x48] sm:$0xff] %vm2336_vm3, %v3005_v7  ;;  %2494 = vrot.lane.b32.xlu1 %v2876_v9, %s6855_s30 }
 0x246   :  { %3711 = vrot.lane.b32.xlu0 %v10314_v23, %s6852_s27 }
 0x247   :  { %v3610_v35 = vpop.permute.xlu1 %3609  ;;  %v4290_v53 = vld [vmem:[#allocation3 + $0x40] sm:$0xff] }
 0x248   :  { %v3101_v36 = vpop.permute.xlu0 %3100  ;;  %3657 = vst.msk [vmem:[#allocation3 + $0x10] sm:$0xff] %vm2239_vm2, %v3610_v35 }
 0x249   :  { %3146 = vst.msk [vmem:[#allocation3 + $0x48] sm:$0xff] %vm2433_vm4, %v3101_v36  ;;  %3902 = vrot.lane.b32.xlu1 %v2972_v37, %s6855_s30 }
 0x24a   :  { %3753 = vst.msk [vmem:[#allocation3 + $0x10] sm:$0xff] %vm2336_vm3, %v3706_v41  ;;  %3807 = vrot.lane.b32.xlu0 %v2876_v9, %s6854_s29  ;;  %v2974_v9 = vld [vmem:[#allocation2 + $0x80] sm:$0xff] }
 0x24b   :  { %3849 = vst.msk [vmem:[#allocation3 + $0x10] sm:$0xff] %vm2433_vm4, %v3802_v27  ;;  %v3484_v0 = vpop.permute.xlu1 %3483  ;;  %v10319_v27 = vld [vmem:[#allocation10_spill] sm:$0xff] }
 0x24c   :  { %v3197_v13 = vpop.permute.xlu0 %3196  ;;  %3530 = vst.msk [vmem:[#allocation3 + $0x28] sm:$0xff] %vm2822_vm8, %v3484_v0 }
 0x24d   :  { %3242 = vst.msk [vmem:[#allocation3 + $0x48] sm:$0xff] %vm2530_vm5, %v3197_v13  ;;  %3998 = vrot.lane.b32.xlu1 %v3068_v59, %s6856_s10 }
 0x24e   :  { %3010 = vrot.lane.b32.xlu0 %v10315_v15, %s6852_s27 }
 0x24f   :  { %v3293_v3 = vpop.permute.xlu1 %3292 }
 0x250   :  { %v2910_v12 = vpop.permute.xlu0 %2909  ;;  %3338 = vst.msk [vmem:[#allocation3 + $0x48] sm:$0xff] %vm2628_vm6, %v3293_v3  ;;  %v2975_v3 = vld [vmem:[#allocation2 + $0x90] sm:$0xff] }
 0x251   :  { %2954 = vst.msk [vmem:[#allocation3 + $0x68] sm:$0xff] %vm2239_vm2, %v2910_v12  ;;  %4094 = vrot.lane.b32.xlu1 %v3164_v62, %s6857_s11 }
 0x252   :  { %3106 = vrot.lane.b32.xlu0 %v10316_v4, %s6854_s29 }
 0x253   :  { %v3389_v5 = vpop.permute.xlu1 %3388  ;;  %v4287_v50 = vld [vmem:[#allocation3 + $0x28] sm:$0xff] }
 0x254   :  { %v2200_v49 = vpop.permute.xlu0 %2199  ;;  %3434 = vst.msk [vmem:[#allocation3 + $0x48] sm:$0xff] %vm2725_vm7, %v3389_v5  ;;  %4513 = vmatprep.mubr.f32.mxu1 %v4287_v50  ;;  %v3071_v5 = vld [vmem:[#allocation2 + $0x91] sm:$0xff] }
 0x255   :  { %2244 = vst.msk [vmem:[#allocation3 + $0x80] sm:$0xff] %vm2239_vm2, %v2200_v49  ;;  %4514 = vmatmul.mubr.f32.gmra.mrb[52].mxu1 %v4286_v30  ;;  %4190 = vrot.lane.b32.xlu1 %v10314_v23, %s6858_s16  ;;  %v3167_v30 = vld [vmem:[#allocation2 + $0x92] sm:$0xff] }
 0x256   :  { %3202 = vrot.lane.b32.xlu0 %v3165_v47, %s6855_s30 }
 0x257   :  { %v2587_v6 = vpop.permute.xlu1 %2586 }
 0x258   :  { %v2297_v10 = vpop.permute.xlu0 %2296  ;;  %2632 = vst.msk [vmem:[#allocation3 + $0x60] sm:$0xff] %vm2628_vm6, %v2587_v6 }
 0x259   :  { %2341 = vst.msk [vmem:[#allocation3 + $0x80] sm:$0xff] %vm2336_vm3, %v2297_v10  ;;  %3489 = vrot.lane.b32.xlu1 %v10315_v15, %s6858_s16  ;;  %v2167_v10 = vld [vmem:[#allocation2 + $0xc1] sm:$0xff] }
 0x25a   :  { %2915 = vrot.lane.b32.xlu0 %v2877_v26, %s6853_s28 }
 0x25b   :  { %v2684_v14 = vpop.permute.xlu1 %2683 }
 0x25c   :  { %v2394_v38 = vpop.permute.xlu0 %2393  ;;  %2729 = vst.msk [vmem:[#allocation3 + $0x60] sm:$0xff] %vm2725_vm7, %v2684_v14 }
 0x25d   :  { %2438 = vst.msk [vmem:[#allocation3 + $0x80] sm:$0xff] %vm2433_vm4, %v2394_v38  ;;  %3298 = vrot.lane.b32.xlu1 %v10317_v25, %s6856_s10  ;;  %v2264_v38 = vld [vmem:[#allocation2 + $0xc2] sm:$0xff] }
 0x25e   :  { %2205 = vrot.lane.b32.xlu0 %v10316_v4, %s6853_s28 }
 0x25f   :  { %v2781_v8 = vpop.permute.xlu1 %2780 }
 0x260   :  { %v3612_v19 = vpop.permute.xlu0 %3611  ;;  %2826 = vst.msk [vmem:[#allocation3 + $0x60] sm:$0xff] %vm2822_vm8, %v2781_v8 }
 0x261   :  { %3658 = vst.msk [vmem:[#allocation3 + $0x30] sm:$0xff] %vm2239_vm2, %v3612_v19  ;;  %3394 = vrot.lane.b32.xlu1 %v2877_v26, %s6857_s11  ;;  %v2361_v19 = vld [vmem:[#allocation2 + $0xc3] sm:$0xff] }
 0x262   :  { %2302 = vrot.lane.b32.xlu0 %v3165_v47, %s6852_s27 }
 0x263   :  { %v2491_v33 = vpop.permute.xlu1 %2490 }
 0x264   :  { %v3708_v22 = vpop.permute.xlu0 %3707  ;;  %2535 = vst.msk [vmem:[#allocation3 + $0x80] sm:$0xff] %vm2530_vm5, %v2491_v33 }
 0x265   :  { %3754 = vst.msk [vmem:[#allocation3 + $0x30] sm:$0xff] %vm2336_vm3, %v3708_v22  ;;  %2592 = vrot.lane.b32.xlu1 %v10315_v15, %s6856_s10 }
 0x266   :  { %2399 = vrot.lane.b32.xlu0 %v10317_v25, %s6854_s29 }
 0x267   :  { %v3899_v18 = vpop.permute.xlu1 %3898 }
 0x268   :  { %v3804_v37 = vpop.permute.xlu0 %3803  ;;  %3946 = vst.msk [vmem:[#allocation3 + $0x10] sm:$0xff] %vm2530_vm5, %v3899_v18 }
 0x269   :  { %3850 = vst.msk [vmem:[#allocation3 + $0x30] sm:$0xff] %vm2433_vm4, %v3804_v37  ;;  %2689 = vrot.lane.b32.xlu1 %v10316_v4, %s6857_s11  ;;  %v4294_v37 = vld [vmem:[#allocation3 + $0x60] sm:$0xff] }
 0x26a   :  { %3904 = vrot.lane.b32.xlu0 %v10315_v15, %s6855_s30 }
 0x26b   :  { %v3995_v34 = vpop.permute.xlu1 %3994 }
 0x26c   :  { %v3007_v56 = vpop.permute.xlu0 %3006  ;;  %4042 = vst.msk [vmem:[#allocation3 + $0x10] sm:$0xff] %vm2628_vm6, %v3995_v34  ;;  %v3263_v34 = vld [vmem:[#allocation2 + $0x93] sm:$0xff] }
 0x26d   :  { %3051 = vst.msk [vmem:[#allocation3 + $0x68] sm:$0xff] %vm2336_vm3, %v3007_v56  ;;  %2786 = vrot.lane.b32.xlu1 %v3165_v47, %s6858_s16  ;;  %v2879_v56 = vld [vmem:[#allocation2 + $0xd4] sm:$0xff] }
 0x26e   :  { %4000 = vrot.lane.b32.xlu0 %v10316_v4, %s6856_s10 }
 0x26f   :  { %v4091_v59 = vpop.permute.xlu1 %4090 }
 0x270   :  { %v3103_v44 = vpop.permute.xlu0 %3102  ;;  %4138 = vst.msk [vmem:[#allocation3 + $0x10] sm:$0xff] %vm2725_vm7, %v4091_v59 }
 0x271   :  { %3147 = vst.msk [vmem:[#allocation3 + $0x68] sm:$0xff] %vm2433_vm4, %v3103_v44  ;;  %2496 = vrot.lane.b32.xlu1 %v2877_v26, %s6855_s30 }
 0x272   :  { %4096 = vrot.lane.b32.xlu0 %v3165_v47, %s6857_s11 }
 0x273   :  { %v4187_v16 = vpop.permute.xlu1 %4186 }
 0x274   :  { %v3199_v62 = vpop.permute.xlu0 %3198  ;;  %4234 = vst.msk [vmem:[#allocation3 + $0x10] sm:$0xff] %vm2822_vm8, %v4187_v16  ;;  %v3359_v16 = vld [vmem:[#allocation2 + $0x94] sm:$0xff] }
 0x275   :  { %3243 = vst.msk [vmem:[#allocation3 + $0x68] sm:$0xff] %vm2530_vm5, %v3199_v62  ;;  %3617 = vrot.lane.b32.xlu1 %v3165_v47, %s6853_s28  ;;  %v2168_v62 = vld [vmem:[#allocation2 + $0xd1] sm:$0xff] }
 0x276   :  { %4192 = vrot.lane.b32.xlu0 %v10317_v25, %s6858_s16 }
 0x277   :  { %v3486_v52 = vpop.permute.xlu1 %3485 }
 0x278   :  { %v2912_v20 = vpop.permute.xlu0 %2911  ;;  %3531 = vst.msk [vmem:[#allocation3 + $0x48] sm:$0xff] %vm2822_vm8, %v3486_v52 }
 0x279   :  { %2955 = vst.msk [vmem:[#allocation3 + $0x88] sm:$0xff] %vm2239_vm2, %v2912_v20  ;;  %3713 = vrot.lane.b32.xlu1 %v10317_v25, %s6852_s27 }
 0x27a   :  { %3012 = vrot.lane.b32.xlu0 %v2974_v9, %s6852_s27 }
 0x27b   :  { %v3295_v23 = vpop.permute.xlu1 %3294 }
 0x27c   :  { %v2202_v42 = vpop.permute.xlu0 %2201  ;;  %3339 = vst.msk [vmem:[#allocation3 + $0x68] sm:$0xff] %vm2628_vm6, %v3295_v23  ;;  %v2265_v23 = vld [vmem:[#allocation2 + $0xd2] sm:$0xff] }
 0x27d   :  { %2245 = vst.msk [vmem:[#allocation3 + $0xa0] sm:$0xff] %vm2239_vm2, %v2202_v42  ;;  %3809 = vrot.lane.b32.xlu1 %v2877_v26, %s6854_s29 }
 0x27e   :  { %3108 = vrot.lane.b32.xlu0 %v10318_v48, %s6854_s29 }
 0x27f   :  { %v3391_v11 = vpop.permute.xlu1 %3390  ;;  %v4291_v58 = vld [vmem:[#allocation3 + $0x48] sm:$0xff] }
 0x280   :  { %v2299_v39 = vpop.permute.xlu0 %2298  ;;  %3435 = vst.msk [vmem:[#allocation3 + $0x68] sm:$0xff] %vm2725_vm7, %v3391_v11  ;;  %4518 = vmatprep.mubr.f32.mxu1 %v4291_v58  ;;  %v2458_v11 = vld [vmem:[#allocation2 + $0xc4] sm:$0xff] }
 0x281   :  { %2342 = vst.msk [vmem:[#allocation3 + $0xa0] sm:$0xff] %vm2336_vm3, %v2299_v39  ;;  %4519 = vmatmul.mubr.f32.gmra.mrb[54].mxu1 %v4290_v53  ;;  %3491 = vrot.lane.b32.xlu1 %v2974_v9, %s6858_s16 }
 0x282   :  { %3204 = vrot.lane.b32.xlu0 %v3166_v21, %s6855_s30 }
 0x283   :  { %v2589_v41 = vpop.permute.xlu1 %2588 }
 0x284   :  { %v2396_v45 = vpop.permute.xlu0 %2395  ;;  %2633 = vst.msk [vmem:[#allocation3 + $0x80] sm:$0xff] %vm2628_vm6, %v2589_v41 }
 0x285   :  { %2439 = vst.msk [vmem:[#allocation3 + $0xa0] sm:$0xff] %vm2433_vm4, %v2396_v45  ;;  %3300 = vrot.lane.b32.xlu1 %v10319_v27, %s6856_s10 }
 0x286   :  { %2917 = vrot.lane.b32.xlu0 %v2878_v61, %s6853_s28 }
 0x287   :  { %v2686_v7 = vpop.permute.xlu1 %2685 }
 0x288   :  { %v3901_v35 = vpop.permute.xlu0 %3900  ;;  %2730 = vst.msk [vmem:[#allocation3 + $0x80] sm:$0xff] %vm2725_vm7, %v2686_v7  ;;  %v2880_v7 = vld [vmem:[#allocation2 + $0xe4] sm:$0xff] }
 0x289   :  { %3947 = vst.msk [vmem:[#allocation3 + $0x30] sm:$0xff] %vm2530_vm5, %v3901_v35  ;;  %3396 = vrot.lane.b32.xlu1 %v2878_v61, %s6857_s11 }
 0x28a   :  { %3619 = vrot.lane.b32.xlu0 %v3166_v21, %s6853_s28 }
 0x28b   :  { %v2783_v36 = vpop.permute.xlu1 %2782 }
 0x28c   :  { %v3997_v0 = vpop.permute.xlu0 %3996  ;;  %2827 = vst.msk [vmem:[#allocation3 + $0x80] sm:$0xff] %vm2822_vm8, %v2783_v36 }
 0x28d   :  { %4043 = vst.msk [vmem:[#allocation3 + $0x30] sm:$0xff] %vm2628_vm6, %v3997_v0  ;;  %2594 = vrot.lane.b32.xlu1 %v2974_v9, %s6856_s10 }
 0x28e   :  { %3715 = vrot.lane.b32.xlu0 %v10319_v27, %s6852_s27 }
 0x28f   :  { %v2493_v13 = vpop.permute.xlu1 %2492 }
 0x290   :  { %v4093_v15 = vpop.permute.xlu0 %4092  ;;  %2536 = vst.msk [vmem:[#allocation3 + $0xa0] sm:$0xff] %vm2530_vm5, %v2493_v13 }
 0x291   :  { %4139 = vst.msk [vmem:[#allocation3 + $0x30] sm:$0xff] %vm2725_vm7, %v4093_v15  ;;  %2691 = vrot.lane.b32.xlu1 %v10318_v48, %s6857_s11 }
 0x292   :  { %3014 = vrot.lane.b32.xlu0 %v2975_v3, %s6852_s27 }
 0x293   :  { %v3614_v12 = vpop.permute.xlu1 %3613 }
 0x294   :  { %v4189_v4 = vpop.permute.xlu0 %4188  ;;  %3659 = vst.msk [vmem:[#allocation3 + $0x50] sm:$0xff] %vm2239_vm2, %v3614_v12 }
 0x295   :  { %4235 = vst.msk [vmem:[#allocation3 + $0x30] sm:$0xff] %vm2822_vm8, %v4189_v4  ;;  %2788 = vrot.lane.b32.xlu1 %v3166_v21, %s6858_s16 }
 0x296   :  { %3110 = vrot.lane.b32.xlu0 %v3071_v5, %s6854_s29 }
 0x297   :  { %v3710_v49 = vpop.permute.xlu1 %3709 }
 0x298   :  { %v3009_v50 = vpop.permute.xlu0 %3008  ;;  %3755 = vst.msk [vmem:[#allocation3 + $0x50] sm:$0xff] %vm2336_vm3, %v3710_v49  ;;  %v4298_v49 = vld [vmem:[#allocation3 + $0x80] sm:$0xff] }
 0x299   :  { %3052 = vst.msk [vmem:[#allocation3 + $0x88] sm:$0xff] %vm2336_vm3, %v3009_v50  ;;  %3906 = vrot.lane.b32.xlu1 %v2974_v9, %s6855_s30  ;;  %v3456_v9 = vld [vmem:[#allocation2 + $0xa0] sm:$0xff] }
 0x29a   :  { %3206 = vrot.lane.b32.xlu0 %v3167_v30, %s6855_s30 }
 0x29b   :  { %v3806_v47 = vpop.permute.xlu1 %3805 }
 0x29c   :  { %v3105_v6 = vpop.permute.xlu0 %3104  ;;  %3851 = vst.msk [vmem:[#allocation3 + $0x50] sm:$0xff] %vm2433_vm4, %v3806_v47 }
 0x29d   :  { %3148 = vst.msk [vmem:[#allocation3 + $0x88] sm:$0xff] %vm2433_vm4, %v3105_v6  ;;  %4002 = vrot.lane.b32.xlu1 %v10318_v48, %s6856_s10  ;;  %v9030_v6 = vld [vmem:[#allocation2 + $0xf2] sm:$0xff] }
 0x29e   :  { %2207 = vrot.lane.b32.xlu0 %v2167_v10, %s6853_s28 }
 0x29f   :  { %v3488_v26 = vpop.permute.xlu1 %3487 }
 0x2a0   :  { %v3201_v14 = vpop.permute.xlu0 %3200  ;;  %3532 = vst.msk [vmem:[#allocation3 + $0x68] sm:$0xff] %vm2822_vm8, %v3488_v26 }
 0x2a1   :  { %3244 = vst.msk [vmem:[#allocation3 + $0x88] sm:$0xff] %vm2530_vm5, %v3201_v14  ;;  %4098 = vrot.lane.b32.xlu1 %v3166_v21, %s6857_s11  ;;  %v9038_v14 = vld [vmem:[#allocation2 + $0xf4] sm:$0xff] }
 0x2a2   :  { %2304 = vrot.lane.b32.xlu0 %v2264_v38, %s6852_s27 }
 0x2a3   :  { %v3297_v25 = vpop.permute.xlu1 %3296 }
 0x2a4   :  { %v2914_v8 = vpop.permute.xlu0 %2913  ;;  %3340 = vst.msk [vmem:[#allocation3 + $0x88] sm:$0xff] %vm2628_vm6, %v3297_v25 }
 0x2a5   :  { %2956 = vst.msk [vmem:[#allocation3 + $0xa8] sm:$0xff] %vm2239_vm2, %v2914_v8  ;;  %3493 = vrot.lane.b32.xlu1 %v2975_v3, %s6858_s16 }
 0x2a6   :  { %2401 = vrot.lane.b32.xlu0 %v2361_v19, %s6854_s29 }
 0x2a7   :  { %v3393_v33 = vpop.permute.xlu1 %3392  ;;  %v4295_v22 = vld [vmem:[#allocation3 + $0x68] sm:$0xff] }
 0x2a8   :  { %3436 = vst.msk [vmem:[#allocation3 + $0x88] sm:$0xff] %vm2725_vm7, %v3393_v33  ;;  %v2204_v18 = vpop.permute.xlu0 %2203  ;;  %4523 = vmatprep.mubr.f32.mxu1 %v4295_v22 }
 0x2a9   :  { %2246 = vst.msk [vmem:[#allocation3 + $0xc0] sm:$0xff] %vm2239_vm2, %v2204_v18  ;;  %4524 = vmatmul.mubr.f32.gmra.mrb[56].mxu1 %v4294_v37  ;;  %3302 = vrot.lane.b32.xlu1 %v3263_v34, %s6856_s10 }
 0x2aa   :  { %2919 = vrot.lane.b32.xlu0 %v2879_v56, %s6853_s28 }
 0x2ab   :  { %v2591_v59 = vpop.permute.xlu1 %2590 }
 0x2ac   :  { %2634 = vst.msk [vmem:[#allocation3 + $0xa0] sm:$0xff] %vm2628_vm6, %v2591_v59  ;;  %v2301_v44 = vpop.permute.xlu0 %2300 }
 0x2ad   :  { %2343 = vst.msk [vmem:[#allocation3 + $0xc0] sm:$0xff] %vm2336_vm3, %v2301_v44  ;;  %3398 = vrot.lane.b32.xlu1 %v3359_v16, %s6857_s11  ;;  %v9076_v16 = vld [vmem:[#allocation2 + $0x102] sm:$0xff] }
 0x2ae   :  { %2209 = vrot.lane.b32.xlu0 %v2168_v62, %s6853_s28 }
 0x2af   :  { %v2688_v52 = vpop.permute.xlu1 %2687 }
 0x2b0   :  { %2731 = vst.msk [vmem:[#allocation3 + $0xa0] sm:$0xff] %vm2725_vm7, %v2688_v52  ;;  %v2398_v20 = vpop.permute.xlu0 %2397 }
 0x2b1   :  { %2440 = vst.msk [vmem:[#allocation3 + $0xc0] sm:$0xff] %vm2433_vm4, %v2398_v20  ;;  %3495 = vrot.lane.b32.xlu1 %v3456_v9, %s6858_s16 }
 0x2b2   :  { %2306 = vrot.lane.b32.xlu0 %v2265_v23, %s6852_s27 }
 0x2b3   :  { %v2785_v42 = vpop.permute.xlu1 %2784 }
 0x2b4   :  { %2828 = vst.msk [vmem:[#allocation3 + $0xa0] sm:$0xff] %vm2822_vm8, %v2785_v42  ;;  %v3616_v48 = vpop.permute.xlu0 %3615 }
 0x2b5   :  { %3660 = vst.msk [vmem:[#allocation3 + $0x70] sm:$0xff] %vm2239_vm2, %v3616_v48  ;;  %2498 = vrot.lane.b32.xlu1 %v2458_v11, %s6855_s30 }
 0x2b6   :  { %2403 = vrot.lane.b32.xlu0 %v8582_v43, %s6854_s29  ;;  %v3072_v43 = vld [vmem:[#allocation2 + $0xe1] sm:$0xff] }
 0x2b7   :  { %v2495_v39 = vpop.permute.xlu1 %2494 }
 0x2b8   :  { %2537 = vst.msk [vmem:[#allocation3 + $0xc0] sm:$0xff] %vm2530_vm5, %v2495_v39  ;;  %v3712_v58 = vpop.permute.xlu0 %3711 }
 0x2b9   :  { %3756 = vst.msk [vmem:[#allocation3 + $0x70] sm:$0xff] %vm2336_vm3, %v3712_v58  ;;  %2596 = vrot.lane.b32.xlu1 %v8584_v24, %s6856_s10  ;;  %v3168_v24 = vld [vmem:[#allocation2 + $0xe2] sm:$0xff] }
 0x2ba   :  { %3016 = vrot.lane.b32.xlu0 %v8604_v1, %s6852_s27 }
 0x2bb   :  { %v3903_v53 = vpop.permute.xlu1 %3902  ;;  %v4302_v9 = vld [vmem:[#allocation3 + $0xa0] sm:$0xff] }
 0x2bc   :  { %3948 = vst.msk [vmem:[#allocation3 + $0x50] sm:$0xff] %vm2530_vm5, %v3903_v53  ;;  %v3808_v21 = vpop.permute.xlu0 %3807 }
 0x2bd   :  { %3852 = vst.msk [vmem:[#allocation3 + $0x70] sm:$0xff] %vm2433_vm4, %v3808_v21  ;;  %2693 = vrot.lane.b32.xlu1 %v2168_v62, %s6857_s11 }
 0x2be   :  { %3112 = vrot.lane.b32.xlu0 %v3072_v43, %s6854_s29 }
 0x2bf   :  { %v3999_v41 = vpop.permute.xlu1 %3998 }
 0x2c0   :  { %4044 = vst.msk [vmem:[#allocation3 + $0x50] sm:$0xff] %vm2628_vm6, %v3999_v41  ;;  %v3011_v45 = vpop.permute.xlu0 %3010 }
 0x2c1   :  { %3053 = vst.msk [vmem:[#allocation3 + $0xa8] sm:$0xff] %vm2336_vm3, %v3011_v45  ;;  %2790 = vrot.lane.b32.xlu1 %v2265_v23, %s6858_s16  ;;  %v9084_v23 = vld [vmem:[#allocation2 + $0x104] sm:$0xff] }
 0x2c2   :  { %3208 = vrot.lane.b32.xlu0 %v3168_v24, %s6855_s30 }
 0x2c3   :  { %v4095_v27 = vpop.permute.xlu1 %4094 }
 0x2c4   :  { %4140 = vst.msk [vmem:[#allocation3 + $0x50] sm:$0xff] %vm2725_vm7, %v4095_v27  ;;  %v3107_v61 = vpop.permute.xlu0 %3106 }
 0x2c5   :  { %3149 = vst.msk [vmem:[#allocation3 + $0xa8] sm:$0xff] %vm2433_vm4, %v3107_v61  ;;  %2500 = vrot.lane.b32.xlu1 %v2879_v56, %s6855_s30 }
 0x2c6   :  { %2921 = vrot.lane.b32.xlu0 %v2880_v7, %s6853_s28 }
 0x2c7   :  { %v4191_v35 = vpop.permute.xlu1 %4190 }
 0x2c8   :  { %4236 = vst.msk [vmem:[#allocation3 + $0x50] sm:$0xff] %vm2822_vm8, %v4191_v35  ;;  %v3203_v36 = vpop.permute.xlu0 %3202 }
 0x2c9   :  { %3245 = vst.msk [vmem:[#allocation3 + $0xa8] sm:$0xff] %vm2530_vm5, %v3203_v36  ;;  %3304 = vrot.lane.b32.xlu1 %v8607_v63, %s6856_s10 }
 0x2ca   :  { %2211 = vrot.lane.b32.xlu0 %v3072_v43, %s6853_s28 }
 0x2cb   :  { %v3490_v0 = vpop.permute.xlu1 %3489 }
 0x2cc   :  { %3533 = vst.msk [vmem:[#allocation3 + $0x88] sm:$0xff] %vm2822_vm8, %v3490_v0  ;;  %v2916_v13 = vpop.permute.xlu0 %2915  ;;  %v9126_v0 = vld [vmem:[#allocation2 + $0x112] sm:$0xff] }
 0x2cd   :  { %2957 = vst.msk [vmem:[#allocation3 + $0xc8] sm:$0xff] %vm2239_vm2, %v2916_v13  ;;  %3400 = vrot.lane.b32.xlu1 %v2880_v7, %s6857_s11 }
 0x2ce   :  { %2308 = vrot.lane.b32.xlu0 %v3168_v24, %s6852_s27 }
 0x2cf   :  { %v3299_v15 = vpop.permute.xlu1 %3298 }
 0x2d0   :  { %3341 = vst.msk [vmem:[#allocation3 + $0xa8] sm:$0xff] %vm2628_vm6, %v3299_v15  ;;  %v2206_v3 = vpop.permute.xlu0 %2205 }
 0x2d1   :  { %2247 = vst.msk [vmem:[#allocation3 + $0xe0] sm:$0xff] %vm2239_vm2, %v2206_v3  ;;  %2598 = vrot.lane.b32.xlu1 %v8604_v1, %s6856_s10  ;;  %v9134_v3 = vld [vmem:[#allocation2 + $0x114] sm:$0xff] }
 0x2d2   :  { %2405 = vrot.lane.b32.xlu0 %v8607_v63, %s6854_s29  ;;  %v3073_v63 = vld [vmem:[#allocation2 + $0xf1] sm:$0xff] }
 0x2d3   :  { %v3395_v12 = vpop.permute.xlu1 %3394  ;;  %v4299_v4 = vld [vmem:[#allocation3 + $0x88] sm:$0xff] }
 0x2d4   :  { %3437 = vst.msk [vmem:[#allocation3 + $0xa8] sm:$0xff] %vm2725_vm7, %v3395_v12  ;;  %v2303_v5 = vpop.permute.xlu0 %2302  ;;  %4528 = vmatprep.mubr.f32.mxu1 %v4299_v4 }
 0x2d5   :  { %2344 = vst.msk [vmem:[#allocation3 + $0xe0] sm:$0xff] %vm2336_vm3, %v2303_v5  ;;  %4529 = vmatmul.mubr.f32.gmra.mrb[58].mxu1 %v4298_v49  ;;  %2695 = vrot.lane.b32.xlu1 %v3072_v43, %s6857_s11 }
 0x2d6   :  { %3018 = vrot.lane.b32.xlu0 %v8631_v29, %s6852_s27 }
 0x2d7   :  { %v2593_v50 = vpop.permute.xlu1 %2592 }
 0x2d8   :  { %2635 = vst.msk [vmem:[#allocation3 + $0xc0] sm:$0xff] %vm2628_vm6, %v2593_v50  ;;  %v2400_v1 = vpop.permute.xlu0 %2399 }
 0x2d9   :  { %2441 = vst.msk [vmem:[#allocation3 + $0xe0] sm:$0xff] %vm2433_vm4, %v2400_v1  ;;  %2792 = vrot.lane.b32.xlu1 %v3168_v24, %s6858_s16 }
 0x2da   :  { %3114 = vrot.lane.b32.xlu0 %v3073_v63, %s6854_s29 }
 0x2db   :  { %v2690_v30 = vpop.permute.xlu1 %2689 }
 0x2dc   :  { %2732 = vst.msk [vmem:[#allocation3 + $0xc0] sm:$0xff] %vm2725_vm7, %v2690_v30  ;;  %v3905_v47 = vpop.permute.xlu0 %3904 }
 0x2dd   :  { %3949 = vst.msk [vmem:[#allocation3 + $0x70] sm:$0xff] %vm2530_vm5, %v3905_v47  ;;  %2502 = vrot.lane.b32.xlu1 %v2880_v7, %s6855_s30  ;;  %v9118_v7 = vld [vmem:[#allocation2 + $0x111] sm:$0xff] }
 0x2de   :  { %3210 = vrot.lane.b32.xlu0 %v9030_v6, %s6855_s30 }
 0x2df   :  { %v2787_v10 = vpop.permute.xlu1 %2786 }
 0x2e0   :  { %2829 = vst.msk [vmem:[#allocation3 + $0xc0] sm:$0xff] %vm2822_vm8, %v2787_v10  ;;  %v4001_v26 = vpop.permute.xlu0 %4000 }
 0x2e1   :  { %4045 = vst.msk [vmem:[#allocation3 + $0x70] sm:$0xff] %vm2628_vm6, %v4001_v26  ;;  %3497 = vrot.lane.b32.xlu1 %v8631_v29, %s6858_s16 }
 0x2e2   :  { %2923 = vrot.lane.b32.xlu0 %v9038_v14, %s6853_s28 }
 0x2e3   :  { %v2497_v38 = vpop.permute.xlu1 %2496 }
 0x2e4   :  { %2538 = vst.msk [vmem:[#allocation3 + $0xe0] sm:$0xff] %vm2530_vm5, %v2497_v38  ;;  %v4097_v25 = vpop.permute.xlu0 %4096 }
 0x2e5   :  { %4141 = vst.msk [vmem:[#allocation3 + $0x70] sm:$0xff] %vm2725_vm7, %v4097_v25  ;;  %3306 = vrot.lane.b32.xlu1 %v8636_v54, %s6856_s10 }
 0x2e6   :  { %2213 = vrot.lane.b32.xlu0 %v3073_v63, %s6853_s28 }
 0x2e7   :  { %v3618_v8 = vpop.permute.xlu1 %3617  ;;  %v4306_v1 = vld [vmem:[#allocation3 + $0xc0] sm:$0xff] }
 0x2e8   :  { %3661 = vst.msk [vmem:[#allocation3 + $0x90] sm:$0xff] %vm2239_vm2, %v3618_v8  ;;  %v4193_v19 = vpop.permute.xlu0 %4192 }
 0x2e9   :  { %4237 = vst.msk [vmem:[#allocation3 + $0x70] sm:$0xff] %vm2822_vm8, %v4193_v19  ;;  %3402 = vrot.lane.b32.xlu1 %v9038_v14, %s6857_s11 }
 0x2ea   :  { %2310 = vrot.lane.b32.xlu0 %v9030_v6, %s6852_s27 }
 0x2eb   :  { %v3714_v33 = vpop.permute.xlu1 %3713 }
 0x2ec   :  { %3757 = vst.msk [vmem:[#allocation3 + $0x90] sm:$0xff] %vm2336_vm3, %v3714_v33  ;;  %v3013_v22 = vpop.permute.xlu0 %3012 }
 0x2ed   :  { %3054 = vst.msk [vmem:[#allocation3 + $0xc8] sm:$0xff] %vm2336_vm3, %v3013_v22  ;;  %2600 = vrot.lane.b32.xlu1 %v8631_v29, %s6856_s10  ;;  %v9068_v29 = vld [vmem:[#allocation2 + $0x101] sm:$0xff] }
 0x2ee   :  { %2407 = vrot.lane.b32.xlu0 %v8636_v54, %s6854_s29 }
 0x2ef   :  { %v3810_v18 = vpop.permute.xlu1 %3809 }
 0x2f0   :  { %3853 = vst.msk [vmem:[#allocation3 + $0x90] sm:$0xff] %vm2433_vm4, %v3810_v18  ;;  %v3109_v37 = vpop.permute.xlu0 %3108  ;;  %v9168_v18 = vld [vmem:[#allocation2 + $0x121] sm:$0xff] }
 0x2f1   :  { %3150 = vst.msk [vmem:[#allocation3 + $0xc8] sm:$0xff] %vm2433_vm4, %v3109_v37  ;;  %2697 = vrot.lane.b32.xlu1 %v3073_v63, %s6857_s11 }
 0x2f2   :  { %3020 = vrot.lane.b32.xlu0 %v8659_v17, %s6852_s27 }
 0x2f3   :  { %v3492_v34 = vpop.permute.xlu1 %3491 }
 0x2f4   :  { %3534 = vst.msk [vmem:[#allocation3 + $0xa8] sm:$0xff] %vm2822_vm8, %v3492_v34  ;;  %v3205_v56 = vpop.permute.xlu0 %3204 }
 0x2f5   :  { %3246 = vst.msk [vmem:[#allocation3 + $0xc8] sm:$0xff] %vm2530_vm5, %v3205_v56  ;;  %2794 = vrot.lane.b32.xlu1 %v9030_v6, %s6858_s16  ;;  %v9176_v56 = vld [vmem:[#allocation2 + $0x122] sm:$0xff] }
 0x2f6   :  { %3116 = vrot.lane.b32.xlu0 %v9068_v29, %s6854_s29 }
 0x2f7   :  { %v3301_v59 = vpop.permute.xlu1 %3300 }
 0x2f8   :  { %3342 = vst.msk [vmem:[#allocation3 + $0xc8] sm:$0xff] %vm2628_vm6, %v3301_v59  ;;  %v2918_v44 = vpop.permute.xlu0 %2917 }
 0x2f9   :  { %2958 = vst.msk [vmem:[#allocation3 + $0xe8] sm:$0xff] %vm2239_vm2, %v2918_v44  ;;  %2504 = vrot.lane.b32.xlu1 %v9038_v14, %s6855_s30 }
 0x2fa   :  { %3212 = vrot.lane.b32.xlu0 %v9076_v16, %s6855_s30 }
 0x2fb   :  { %v3397_v62 = vpop.permute.xlu1 %3396  ;;  %v4303_v52 = vld [vmem:[#allocation3 + $0xa8] sm:$0xff] }
 0x2fc   :  { %3438 = vst.msk [vmem:[#allocation3 + $0xc8] sm:$0xff] %vm2725_vm7, %v3397_v62  ;;  %v3620_v20 = vpop.permute.xlu0 %3619  ;;  %4533 = vmatprep.mubr.f32.mxu1 %v4303_v52  ;;  %v9184_v62 = vld [vmem:[#allocation2 + $0x124] sm:$0xff] }
 0x2fd   :  { %3662 = vst.msk [vmem:[#allocation3 + $0xb0] sm:$0xff] %vm2239_vm2, %v3620_v20  ;;  %4534 = vmatmul.mubr.f32.gmra.mrb[60].mxu1 %v4302_v9  ;;  %3499 = vrot.lane.b32.xlu1 %v8659_v17, %s6858_s16 }
 0x2fe   :  { %2925 = vrot.lane.b32.xlu0 %v9084_v23, %s6853_s28 }
 0x2ff   :  { %v2595_v42 = vpop.permute.xlu1 %2594 }
 0x300   :  { %v3716_v48 = vpop.permute.xlu0 %3715  ;;  %2636 = vst.msk [vmem:[#allocation3 + $0xe0] sm:$0xff] %vm2628_vm6, %v2595_v42 }
 0x301   :  { %3758 = vst.msk [vmem:[#allocation3 + $0xb0] sm:$0xff] %vm2336_vm3, %v3716_v48  ;;  %3308 = vrot.lane.b32.xlu1 %v8664_v32, %s6856_s10 }
 0x302   :  { %2215 = vrot.lane.b32.xlu0 %v9068_v29, %s6853_s28 }
 0x303   :  { %v2692_v11 = vpop.permute.xlu1 %2691 }
 0x304   :  { %2733 = vst.msk [vmem:[#allocation3 + $0xe0] sm:$0xff] %vm2725_vm7, %v2692_v11  ;;  %v3015_v39 = vpop.permute.xlu0 %3014 }
 0x305   :  { %3055 = vst.msk [vmem:[#allocation3 + $0xe8] sm:$0xff] %vm2336_vm3, %v3015_v39  ;;  %3404 = vrot.lane.b32.xlu1 %v9084_v23, %s6857_s11 }
 0x306   :  { %2312 = vrot.lane.b32.xlu0 %v9076_v16, %s6852_s27 }
 0x307   :  { %v2789_v58 = vpop.permute.xlu1 %2788 }
 0x308   :  { %2830 = vst.msk [vmem:[#allocation3 + $0xe0] sm:$0xff] %vm2822_vm8, %v2789_v58  ;;  %v3111_v53 = vpop.permute.xlu0 %3110  ;;  %v6227_v21 = vpop.f32.mrb[50].mxu1 }
 0x309   :  { %3151 = vst.msk [vmem:[#allocation3 + $0xe8] sm:$0xff] %vm2433_vm4, %v3111_v53  ;;  %v6228_v43 = vpop.f32.mrb[51].mxu1  ;;  %2602 = vrot.lane.b32.xlu1 %v8659_v17, %s6856_s10 }
 0x30a   :  { %v9104_v41 = vadd.f32 %v6228_v43, %v6227_v21  ;;  %2409 = vrot.lane.b32.xlu0 %v8664_v32, %s6854_s29  ;;  %v9216_v43 = vld [vmem:[#allocation2 + $0x131] sm:$0xff] }
 0x30b   :  { %v3907_v45 = vpop.permute.xlu1 %3906 }
 0x30c   :  { %3950 = vst.msk [vmem:[#allocation3 + $0x90] sm:$0xff] %vm2530_vm5, %v3907_v45  ;;  %v3207_v24 = vpop.permute.xlu0 %3206 }
 0x30d   :  { %3247 = vst.msk [vmem:[#allocation3 + $0xe8] sm:$0xff] %vm2530_vm5, %v3207_v24  ;;  %2699 = vrot.lane.b32.xlu1 %v9068_v29, %s6857_s11 }
 0x30e   :  { %3022 = vrot.lane.b32.xlu0 %v8687_v51, %s6852_s27 }
 0x30f   :  { %v4003_v27 = vpop.permute.xlu1 %4002  ;;  %v4310_v22 = vld [vmem:[#allocation3 + $0xe0] sm:$0xff] }
 0x310   :  { %4046 = vst.msk [vmem:[#allocation3 + $0x90] sm:$0xff] %vm2628_vm6, %v4003_v27  ;;  %v2208_v61 = vpop.permute.xlu0 %2207  ;;  %v9224_v27 = vld [vmem:[#allocation2 + $0x132] sm:$0xff] }
 0x311   :  { %2248 = vst.msk [vmem:[#allocation3 + $0x100] sm:$0xff] %vm2239_vm2, %v2208_v61  ;;  %2796 = vrot.lane.b32.xlu1 %v9076_v16, %s6858_s16 }
 0x312   :  { %3118 = vrot.lane.b32.xlu0 %v9118_v7, %s6854_s29 }
 0x313   :  { %v4099_v35 = vpop.permute.xlu1 %4098 }
 0x314   :  { %4142 = vst.msk [vmem:[#allocation3 + $0x90] sm:$0xff] %vm2725_vm7, %v4099_v35  ;;  %v2305_v36 = vpop.permute.xlu0 %2304 }
 0x315   :  { %2345 = vst.msk [vmem:[#allocation3 + $0x100] sm:$0xff] %vm2336_vm3, %v2305_v36  ;;  %2506 = vrot.lane.b32.xlu1 %v9084_v23, %s6855_s30  ;;  %v9232_v36 = vld [vmem:[#allocation2 + $0x134] sm:$0xff] }
 0x316   :  { %3214 = vrot.lane.b32.xlu0 %v9126_v0, %s6855_s30 }
 0x317   :  { %v3494_v13 = vpop.permute.xlu1 %3493 }
 0x318   :  { %3535 = vst.msk [vmem:[#allocation3 + $0xc8] sm:$0xff] %vm2822_vm8, %v3494_v13  ;;  %v2402_v15 = vpop.permute.xlu0 %2401 }
 0x319   :  { %2442 = vst.msk [vmem:[#allocation3 + $0x100] sm:$0xff] %vm2433_vm4, %v2402_v15  ;;  %3501 = vrot.lane.b32.xlu1 %v8687_v51, %s6858_s16 }
 0x31a   :  { %2927 = vrot.lane.b32.xlu0 %v9134_v3, %s6853_s28 }
 0x31b   :  { %v3303_v12 = vpop.permute.xlu1 %3302 }
 0x31c   :  { %3343 = vst.msk [vmem:[#allocation3 + $0xe8] sm:$0xff] %vm2628_vm6, %v3303_v12  ;;  %v2920_v4 = vpop.permute.xlu0 %2919 }
 0x31d   :  { %2959 = vst.msk [vmem:[#allocation3 + $0x108] sm:$0xff] %vm2239_vm2, %v2920_v4  ;;  %3310 = vrot.lane.b32.xlu1 %v8692_v55, %s6856_s10 }
 0x31e   :  { %2217 = vrot.lane.b32.xlu0 %v9118_v7, %s6853_s28 }
 0x31f   :  { %v3399_v5 = vpop.permute.xlu1 %3398  ;;  %v4307_v49 = vld [vmem:[#allocation3 + $0xc8] sm:$0xff] }
 0x320   :  { %3439 = vst.msk [vmem:[#allocation3 + $0xe8] sm:$0xff] %vm2725_vm7, %v3399_v5  ;;  %v2210_v50 = vpop.permute.xlu0 %2209  ;;  %4538 = vmatprep.mubr.f32.mxu1 %v4307_v49 }
 0x321   :  { %2249 = vst.msk [vmem:[#allocation3 + $0x120] sm:$0xff] %vm2239_vm2, %v2210_v50  ;;  %4539 = vmatmul.mubr.f32.gmra.mrb[62].mxu1 %v4306_v1  ;;  %3406 = vrot.lane.b32.xlu1 %v9134_v3, %s6857_s11 }
 0x322   :  { %2314 = vrot.lane.b32.xlu0 %v9126_v0, %s6852_s27 }
 0x323   :  { %v3496_v63 = vpop.permute.xlu1 %3495 }
 0x324   :  { %3536 = vst.msk [vmem:[#allocation3 + $0xe8] sm:$0xff] %vm2822_vm8, %v3496_v63  ;;  %v2307_v30 = vpop.permute.xlu0 %2306 }
 0x325   :  { %2346 = vst.msk [vmem:[#allocation3 + $0x120] sm:$0xff] %vm2336_vm3, %v2307_v30  ;;  %2604 = vrot.lane.b32.xlu1 %v8687_v51, %s6856_s10 }
 0x326   :  { %2411 = vrot.lane.b32.xlu0 %v8692_v55, %s6854_s29 }
 0x327   :  { %v2499_v47 = vpop.permute.xlu1 %2498 }
 0x328   :  { %2539 = vst.msk [vmem:[#allocation3 + $0x100] sm:$0xff] %vm2530_vm5, %v2499_v47  ;;  %v2404_v10 = vpop.permute.xlu0 %2403  ;;  %v6230_v26 = vpop.f32.mrb[52].mxu1 }
 0x329   :  { %2443 = vst.msk [vmem:[#allocation3 + $0x120] sm:$0xff] %vm2433_vm4, %v2404_v10  ;;  %v6231_v38 = vpop.f32.mrb[53].mxu1  ;;  %2701 = vrot.lane.b32.xlu1 %v9118_v7, %s6857_s11 }
 0x32a   :  { %v9160_v25 = vadd.f32 %v6231_v38, %v6230_v26  ;;  %3024 = vrot.lane.b32.xlu0 %v8715_v60, %s6852_s27  ;;  %v9260_v38 = vld [vmem:[#allocation2 + $0x140] sm:$0xff] }
 0x32b   :  { %v2597_v8 = vpop.permute.xlu1 %2596  ;;  %v4311_v19 = vld [vmem:[#allocation3 + $0xe8] sm:$0xff] }
 0x32c   :  { %2637 = vst.msk [vmem:[#allocation3 + $0x100] sm:$0xff] %vm2628_vm6, %v2597_v8  ;;  %v3017_v33 = vpop.permute.xlu0 %3016  ;;  %4543 = vmatprep.mubr.f32.mxu1 %v4311_v19 }
 0x32d   :  { %3056 = vst.msk [vmem:[#allocation3 + $0x108] sm:$0xff] %vm2336_vm3, %v3017_v33  ;;  %4544 = vmatmul.mubr.f32.gmra.mrb[64].mxu1 %v4310_v22  ;;  %2798 = vrot.lane.b32.xlu1 %v9126_v0, %s6858_s16  ;;  %v9268_v33 = vld [vmem:[#allocation2 + $0x141] sm:$0xff]  ;;  %v6859_v22 = vmov 0.0|0.0  }
 0x32e   :  { %3120 = vrot.lane.b32.xlu0 %v9168_v18, %s6854_s29  ;;  %6706 = vmatprep.subr.bf16.mxu1 %v6859_v22 }
 0x32f   :  { %v2694_v37 = vpop.permute.xlu1 %2693 }
 0x330   :  { %2734 = vst.msk [vmem:[#allocation3 + $0x100] sm:$0xff] %vm2725_vm7, %v2694_v37  ;;  %v3113_v34 = vpop.permute.xlu0 %3112  ;;  %v4378_v37 = vld [vmem:[%s10100_s3 + $0x100] sm:$0xff] }
 0x331   :  { %3152 = vst.msk [vmem:[#allocation3 + $0x108] sm:$0xff] %vm2433_vm4, %v3113_v34  ;;  %2508 = vrot.lane.b32.xlu1 %v9134_v3, %s6855_s30  ;;  %v4379_v34 = vld [vmem:[%s10100_s3 + $0x108] sm:$0xff] }
 0x332   :  { %3216 = vrot.lane.b32.xlu0 %v9176_v56, %s6855_s30 }
 0x333   :  { %v2791_v59 = vpop.permute.xlu1 %2790 }
 0x334   :  { %2831 = vst.msk [vmem:[#allocation3 + $0x100] sm:$0xff] %vm2822_vm8, %v2791_v59  ;;  %v3209_v44 = vpop.permute.xlu0 %3208 }
 0x335   :  { %3248 = vst.msk [vmem:[#allocation3 + $0x108] sm:$0xff] %vm2530_vm5, %v3209_v44  ;;  %3503 = vrot.lane.b32.xlu1 %v8715_v60, %s6858_s16  ;;  %v6707_v44 = vpack.c.bf16 %v4379_v34, %v4378_v37  ;;  %v4389_v37 = vld [vmem:[%s10100_s3 + $0x158] sm:$0xff] }
 0x336   :  { %2929 = vrot.lane.b32.xlu0 %v9184_v62, %s6853_s28 }
 0x337   :  { %v2501_v52 = vpop.permute.xlu1 %2500  ;;  %6708 = vmatpush1.bf16.msra.mxu1 %v6707_v44 }
 0x338   :  { %2540 = vst.msk [vmem:[#allocation3 + $0x120] sm:$0xff] %vm2530_vm5, %v2501_v52  ;;  %v2922_v20 = vpop.permute.xlu0 %2921  ;;  %6709 = vmatprep.subr.bf16.mxu1 %v6859_v22 }
 0x339   :  { %2960 = vst.msk [vmem:[#allocation3 + $0x128] sm:$0xff] %vm2239_vm2, %v2922_v20  ;;  %3312 = vrot.lane.b32.xlu1 %v8720_v28, %s6856_s10  ;;  %v9283_v20 = vld [vmem:[#allocation2 + $0x142] sm:$0xff] }
 0x33a   :  { %2219 = vrot.lane.b32.xlu0 %v9168_v18, %s6853_s28 }
 0x33b   :  { %v3305_v9 = vpop.permute.xlu1 %3304  ;;  %v4314_v47 = vld [vmem:[#allocation3 + $0x100] sm:$0xff] }
 0x33c   :  { %3344 = vst.msk [vmem:[#allocation3 + $0x108] sm:$0xff] %vm2628_vm6, %v3305_v9  ;;  %v2212_v42 = vpop.permute.xlu0 %2211  ;;  %v4380_v9 = vld [vmem:[%s10100_s3 + $0x110] sm:$0xff] }
 0x33d   :  { %2250 = vst.msk [vmem:[#allocation3 + $0x140] sm:$0xff] %vm2239_vm2, %v2212_v42  ;;  %3408 = vrot.lane.b32.xlu1 %v9184_v62, %s6857_s11  ;;  %v4381_v42 = vld [vmem:[%s10100_s3 + $0x118] sm:$0xff] }
 0x33e   :  { %2316 = vrot.lane.b32.xlu0 %v9176_v56, %s6852_s27 }
 0x33f   :  { %v3401_v48 = vpop.permute.xlu1 %3400 }
 0x340   :  { %3440 = vst.msk [vmem:[#allocation3 + $0x108] sm:$0xff] %vm2725_vm7, %v3401_v48  ;;  %v2309_v11 = vpop.permute.xlu0 %2308 }
 0x341   :  { %2347 = vst.msk [vmem:[#allocation3 + $0x140] sm:$0xff] %vm2336_vm3, %v2309_v11  ;;  %2606 = vrot.lane.b32.xlu1 %v8715_v60, %s6856_s10  ;;  %v6710_v11 = vpack.c.bf16 %v4381_v42, %v4380_v9  ;;  %v9356_v42 = vld [vmem:[#allocation2 + $0x152] sm:$0xff] }
 0x342   :  { %2413 = vrot.lane.b32.xlu0 %v8720_v28, %s6854_s29 }
 0x343   :  { %v2599_v39 = vpop.permute.xlu1 %2598  ;;  %6711 = vmatpush1.bf16.msra.mxu1 %v6710_v11  ;;  %v4390_v11 = vld [vmem:[%s10100_s3 + $0x160] sm:$0xff] }
 0x344   :  { %2638 = vst.msk [vmem:[#allocation3 + $0x120] sm:$0xff] %vm2628_vm6, %v2599_v39  ;;  %v2406_v58 = vpop.permute.xlu0 %2405  ;;  %6712 = vmatprep.subr.bf16.mxu1 %v6859_v22 }
 0x345   :  { %2444 = vst.msk [vmem:[#allocation3 + $0x140] sm:$0xff] %vm2433_vm4, %v2406_v58  ;;  %2703 = vrot.lane.b32.xlu1 %v9168_v18, %s6857_s11  ;;  %v9298_v58 = vld [vmem:[#allocation2 + $0x144] sm:$0xff] }
 0x346   :  { %3026 = vrot.lane.b32.xlu0 %v8740_v40, %s6852_s27 }
 0x347   :  { %v2696_v53 = vpop.permute.xlu1 %2695 }
 0x348   :  { %2735 = vst.msk [vmem:[#allocation3 + $0x120] sm:$0xff] %vm2725_vm7, %v2696_v53  ;;  %v3019_v21 = vpop.permute.xlu0 %3018  ;;  %v4382_v53 = vld [vmem:[%s10100_s3 + $0x120] sm:$0xff] }
 0x349   :  { %3057 = vst.msk [vmem:[#allocation3 + $0x128] sm:$0xff] %vm2336_vm3, %v3019_v21  ;;  %2800 = vrot.lane.b32.xlu1 %v9176_v56, %s6858_s16  ;;  %v4383_v21 = vld [vmem:[%s10100_s3 + $0x128] sm:$0xff] }
 0x34a   :  { %3122 = vrot.lane.b32.xlu0 %v9216_v43, %s6854_s29 }
 0x34b   :  { %v2793_v45 = vpop.permute.xlu1 %2792 }
 0x34c   :  { %2832 = vst.msk [vmem:[#allocation3 + $0x120] sm:$0xff] %vm2822_vm8, %v2793_v45  ;;  %v3115_v24 = vpop.permute.xlu0 %3114 }
 0x34d   :  { %3153 = vst.msk [vmem:[#allocation3 + $0x128] sm:$0xff] %vm2433_vm4, %v3115_v24  ;;  %2510 = vrot.lane.b32.xlu1 %v9184_v62, %s6855_s30  ;;  %v6713_v24 = vpack.c.bf16 %v4383_v21, %v4382_v53 }
 0x34e   :  { %3218 = vrot.lane.b32.xlu0 %v9224_v27, %s6855_s30 }
 0x34f   :  { %v2503_v61 = vpop.permute.xlu1 %2502  ;;  %6714 = vmatpush1.bf16.msra.mxu1 %v6713_v24  ;;  %v9373_v24 = vld [vmem:[#allocation2 + $0x153] sm:$0xff] }
 0x350   :  { %2541 = vst.msk [vmem:[#allocation3 + $0x140] sm:$0xff] %vm2530_vm5, %v2503_v61  ;;  %v3211_v35 = vpop.permute.xlu0 %3210  ;;  %6715 = vmatprep.subr.bf16.mxu1 %v6859_v22 }
 0x351   :  { %3249 = vst.msk [vmem:[#allocation3 + $0x128] sm:$0xff] %vm2530_vm5, %v3211_v35  ;;  %3505 = vrot.lane.b32.xlu1 %v8740_v40, %s6858_s16  ;;  %v4384_v35 = vld [vmem:[%s10100_s3 + $0x130] sm:$0xff] }
 0x352   :  { %2931 = vrot.lane.b32.xlu0 %v9232_v36, %s6853_s28 }
 0x353   :  { %v3498_v13 = vpop.permute.xlu1 %3497 }
 0x354   :  { %3537 = vst.msk [vmem:[#allocation3 + $0x108] sm:$0xff] %vm2822_vm8, %v3498_v13  ;;  %v2924_v15 = vpop.permute.xlu0 %2923  ;;  %v6233_v12 = vpop.f32.mrb[54].mxu1  ;;  %v4385_v13 = vld [vmem:[%s10100_s3 + $0x138] sm:$0xff] }
 0x355   :  { %2961 = vst.msk [vmem:[#allocation3 + $0x148] sm:$0xff] %vm2239_vm2, %v2924_v15  ;;  %v6234_v4 = vpop.f32.mrb[55].mxu1  ;;  %3314 = vrot.lane.b32.xlu1 %v8744_v46, %s6856_s10 }
 0x356   :  { %v9240_v5 = vadd.f32 %v6234_v4, %v6233_v12  ;;  %2221 = vrot.lane.b32.xlu0 %v9216_v43, %s6853_s28  ;;  %v6716_v12 = vpack.c.bf16 %v4385_v13, %v4384_v35  ;;  %v4393_v35 = vld [vmem:[%s10100_s3 + $0x178] sm:$0xff] }
 0x357   :  { %v3307_v49 = vpop.permute.xlu1 %3306 }
 0x358   :  { %3345 = vst.msk [vmem:[#allocation3 + $0x128] sm:$0xff] %vm2628_vm6, %v3307_v49  ;;  %v2214_v50 = vpop.permute.xlu0 %2213  ;;  %v9326_v49 = vld [vmem:[#allocation2 + $0x150] sm:$0xff]  ;;  %6717 = vmatpush1.bf16.msra.mxu1 %v6716_v12 }
 0x359   :  { %2251 = vst.msk [vmem:[#allocation3 + $0x160] sm:$0xff] %vm2239_vm2, %v2214_v50  ;;  %3410 = vrot.lane.b32.xlu1 %v9232_v36, %s6857_s11  ;;  %6718 = vmatprep.subr.bf16.mxu1 %v6859_v22  ;;  %v4386_v50 = vld [vmem:[%s10100_s3 + $0x140] sm:$0xff] }
 0x35a   :  { %2318 = vrot.lane.b32.xlu0 %v9224_v27, %s6852_s27 }
 0x35b   :  { %v3403_v1 = vpop.permute.xlu1 %3402  ;;  %v4315_v63 = vld [vmem:[#allocation3 + $0x108] sm:$0xff] }
 0x35c   :  { %3441 = vst.msk [vmem:[#allocation3 + $0x128] sm:$0xff] %vm2725_vm7, %v3403_v1  ;;  %v2311_v30 = vpop.permute.xlu0 %2310  ;;  %4548 = vmatprep.mubr.f32.mxu1 %v4315_v63  ;;  %v4387_v1 = vld [vmem:[%s10100_s3 + $0x148] sm:$0xff] }
 0x35d   :  { %2348 = vst.msk [vmem:[#allocation3 + $0x160] sm:$0xff] %vm2336_vm3, %v2311_v30  ;;  %4549 = vmatmul.mubr.f32.gmra.mrb[66].mxu1 %v4314_v47  ;;  %2608 = vrot.lane.b32.xlu1 %v8740_v40, %s6856_s10  ;;  %v6719_v47 = vpack.c.bf16 %v4387_v1, %v4386_v50  ;;  %v9387_v50 = vld [vmem:[#allocation2 + $0x154] sm:$0xff]  ;;  %v4394_v1 = vld [vmem:[%s10100_s3 + $0x180] sm:$0xff] }
 0x35e   :  { %2415 = vrot.lane.b32.xlu0 %v8744_v46, %s6854_s29 }
 0x35f   :  { %v2601_v10 = vpop.permute.xlu1 %2600  ;;  %6720 = vmatpush1.bf16.msra.mxu1 %v6719_v47 }
 0x360   :  { %2639 = vst.msk [vmem:[#allocation3 + $0x140] sm:$0xff] %vm2628_vm6, %v2601_v10  ;;  %v2408_v26 = vpop.permute.xlu0 %2407  ;;  %6721 = vmatprep.subr.bf16.mxu1 %v6859_v22 }
 0x361   :  { %2445 = vst.msk [vmem:[#allocation3 + $0x160] sm:$0xff] %vm2433_vm4, %v2408_v26  ;;  %2705 = vrot.lane.b32.xlu1 %v9216_v43, %s6857_s11  ;;  %v4318_v26 = vld [vmem:[#allocation3 + $0x120] sm:$0xff] }
 0x362   :  { %3028 = vrot.lane.b32.xlu0 %v9260_v38, %s6852_s27 }
 0x363   :  { %v2698_v8 = vpop.permute.xlu1 %2697 }
 0x364   :  { %2736 = vst.msk [vmem:[#allocation3 + $0x140] sm:$0xff] %vm2725_vm7, %v2698_v8  ;;  %v3021_v19 = vpop.permute.xlu0 %3020  ;;  %v9341_v8 = vld [vmem:[#allocation2 + $0x151] sm:$0xff] }
 0x365   :  { %3058 = vst.msk [vmem:[#allocation3 + $0x148] sm:$0xff] %vm2336_vm3, %v3021_v19  ;;  %2802 = vrot.lane.b32.xlu1 %v9224_v27, %s6858_s16  ;;  %v4388_v19 = vld [vmem:[%s10100_s3 + $0x150] sm:$0xff] }
 0x366   :  { %3124 = vrot.lane.b32.xlu0 %v9268_v33, %s6854_s29 }
 0x367   :  { %v2795_v59 = vpop.permute.xlu1 %2794 }
 0x368   :  { %2833 = vst.msk [vmem:[#allocation3 + $0x140] sm:$0xff] %vm2822_vm8, %v2795_v59  ;;  %v3117_v52 = vpop.permute.xlu0 %3116  ;;  %v6722_v59 = vpack.c.bf16 %v4389_v37, %v4388_v19  ;;  %v10320_v19 = vld [vmem:[#allocation18_spill] sm:$0xff] }
 0x369   :  { %3154 = vst.msk [vmem:[#allocation3 + $0x148] sm:$0xff] %vm2433_vm4, %v3117_v52  ;;  %2512 = vrot.lane.b32.xlu1 %v9232_v36, %s6855_s30 }
 0x36a   :  { %3220 = vrot.lane.b32.xlu0 %v9283_v20, %s6855_s30  ;;  %6723 = vmatpush1.bf16.msra.mxu1 %v6722_v59  ;;  %v3583_v59 = vld [vmem:[#allocation2 + $0x92] sm:$0xff] }
 0x36b   :  { %v2505_v48 = vpop.permute.xlu1 %2504  ;;  %6724 = vmatprep.subr.bf16.mxu1 %v6859_v22 }
 0x36c   :  { %2542 = vst.msk [vmem:[#allocation3 + $0x160] sm:$0xff] %vm2530_vm5, %v2505_v48  ;;  %v3213_v39 = vpop.permute.xlu0 %3212 }
 0x36d   :  { %3250 = vst.msk [vmem:[#allocation3 + $0x148] sm:$0xff] %vm2530_vm5, %v3213_v39  ;;  %3507 = vrot.lane.b32.xlu1 %v9260_v38, %s6858_s16  ;;  %v4391_v39 = vld [vmem:[%s10100_s3 + $0x168] sm:$0xff] }
 0x36e   :  { %2933 = vrot.lane.b32.xlu0 %v9298_v58, %s6853_s28  ;;  %v6725_v21 = vpack.c.bf16 %v4391_v39, %v4390_v11  ;;  %v3679_v11 = vld [vmem:[#allocation2 + $0x93] sm:$0xff]  ;;  %v10321_v39 = vld [vmem:[#allocation11_spill] sm:$0xff] }
 0x36f   :  { %v3500_v45 = vpop.permute.xlu1 %3499 }
 0x370   :  { %3538 = vst.msk [vmem:[#allocation3 + $0x128] sm:$0xff] %vm2822_vm8, %v3500_v45  ;;  %v2926_v61 = vpop.permute.xlu0 %2925  ;;  %6726 = vmatpush1.bf16.msra.mxu1 %v6725_v21 }
 0x371   :  { %2962 = vst.msk [vmem:[#allocation3 + $0x168] sm:$0xff] %vm2239_vm2, %v2926_v61  ;;  %3316 = vrot.lane.b32.xlu1 %v8759_v2, %s6856_s10  ;;  %v4392_v61 = vld [vmem:[%s10100_s3 + $0x170] sm:$0xff]  ;;  %6727 = vmatprep.subr.bf16.mxu1 %v6859_v22 }
 0x372   :  { %2707 = vrot.lane.b32.xlu0 %v9268_v33, %s6857_s11 }
 0x373   :  { %v3309_v15 = vpop.permute.xlu1 %3308 }
 0x374   :  { %3346 = vst.msk [vmem:[#allocation3 + $0x148] sm:$0xff] %vm2628_vm6, %v3309_v15  ;;  %v2216_v4 = vpop.permute.xlu0 %2215  ;;  %v6728_v15 = vpack.c.bf16 %v4393_v35, %v4392_v61  ;;  %v4322_v61 = vld [vmem:[#allocation3 + $0x140] sm:$0xff] }
 0x375   :  { %2252 = vst.msk [vmem:[#allocation3 + $0x180] sm:$0xff] %vm2239_vm2, %v2216_v4  ;;  %3412 = vrot.lane.b32.xlu1 %v9298_v58, %s6857_s11  ;;  %v4158_v4 = vld [vmem:[#allocation2 + $0x83] sm:$0xff] }
 0x376   :  { %3030 = vrot.lane.b32.xlu0 %v9326_v49, %s6852_s27  ;;  %6729 = vmatpush1.bf16.msra.mxu1 %v6728_v15  ;;  %v10322_v35 = vld [vmem:[#allocation19_spill] sm:$0xff] }
 0x377   :  { %v3405_v63 = vpop.permute.xlu1 %3404  ;;  %v4319_v30 = vld [vmem:[#allocation3 + $0x128] sm:$0xff]  ;;  %6730 = vmatprep.subr.bf16.mxu1 %v6859_v22 }
 0x378   :  { %3442 = vst.msk [vmem:[#allocation3 + $0x148] sm:$0xff] %vm2725_vm7, %v3405_v63  ;;  %v2313_v10 = vpop.permute.xlu0 %2312  ;;  %4553 = vmatprep.mubr.f32.mxu1 %v4319_v30  ;;  %v4395_v63 = vld [vmem:[%s10100_s3 + $0x188] sm:$0xff] }
 0x379   :  { %2349 = vst.msk [vmem:[#allocation3 + $0x180] sm:$0xff] %vm2336_vm3, %v2313_v10  ;;  %4554 = vmatmul.mubr.f32.gmra.mrb[68].mxu1 %v4318_v26  ;;  %2610 = vrot.lane.b32.xlu1 %v9260_v38, %s6856_s10  ;;  %v6731_v47 = vpack.c.bf16 %v4395_v63, %v4394_v1  ;;  %v9399_v26 = vld [vmem:[#allocation2 + $0x160] sm:$0xff] }
 0x37a   :  { %3126 = vrot.lane.b32.xlu0 %v9341_v8, %s6854_s29  ;;  %v3584_v63 = vld [vmem:[#allocation2 + $0xa2] sm:$0xff] }
 0x37b   :  { %v2603_v34 = vpop.permute.xlu1 %2602  ;;  %6732 = vmatpush1.bf16.msra.mxu1 %v6731_v47 }
 0x37c   :  { %2640 = vst.msk [vmem:[#allocation3 + $0x160] sm:$0xff] %vm2628_vm6, %v2603_v34  ;;  %v2410_v44 = vpop.permute.xlu0 %2409  ;;  %v6236_v52 = vpop.f32.mrb[56].mxu1 }
 0x37d   :  { %2446 = vst.msk [vmem:[#allocation3 + $0x180] sm:$0xff] %vm2433_vm4, %v2410_v44  ;;  %v6237_v9 = vpop.f32.mrb[57].mxu1  ;;  %2804 = vrot.lane.b32.xlu1 %v9283_v20, %s6858_s16  ;;  %v3871_v44 = vld [vmem:[#allocation2 + $0x90] sm:$0xff] }
 0x37e   :  { %v9358_v48 = vadd.f32 %v6237_v9, %v6236_v52  ;;  %3222 = vrot.lane.b32.xlu0 %v9356_v42, %s6855_s30 }
 0x37f   :  { %v2700_v53 = vpop.permute.xlu1 %2699 }
 0x380   :  { %2737 = vst.msk [vmem:[#allocation3 + $0x160] sm:$0xff] %vm2725_vm7, %v2700_v53  ;;  %v3023_v45 = vpop.permute.xlu0 %3022 }
 0x381   :  { %3059 = vst.msk [vmem:[#allocation3 + $0x168] sm:$0xff] %vm2336_vm3, %v3023_v45  ;;  %3509 = vrot.lane.b32.xlu1 %v9326_v49, %s6858_s16 }
 0x382   :  { %3318 = vrot.lane.b32.xlu0 %v9373_v24, %s6856_s10 }
 0x383   :  { %v2797_v13 = vpop.permute.xlu1 %2796 }
 0x384   :  { %2834 = vst.msk [vmem:[#allocation3 + $0x160] sm:$0xff] %vm2822_vm8, %v2797_v13  ;;  %v3119_v12 = vpop.permute.xlu0 %3118 }
 0x385   :  { %3155 = vst.msk [vmem:[#allocation3 + $0x168] sm:$0xff] %vm2433_vm4, %v3119_v12  ;;  %4194 = vrot.lane.b32.xlu1 %v4158_v4, %s6858_s16  ;;  %v3872_v12 = vld [vmem:[#allocation2 + $0xa0] sm:$0xff] }
 0x386   :  { %3414 = vrot.lane.b32.xlu0 %v9387_v50, %s6857_s11 }
 0x387   :  { %v2507_v30 = vpop.permute.xlu1 %2506 }
 0x388   :  { %2543 = vst.msk [vmem:[#allocation3 + $0x180] sm:$0xff] %vm2530_vm5, %v2507_v30  ;;  %v3215_v10 = vpop.permute.xlu0 %3214  ;;  %v10323_v30 = vld [vmem:[#allocation26_spill] sm:$0xff] }
 0x389   :  { %3251 = vst.msk [vmem:[#allocation3 + $0x168] sm:$0xff] %vm2530_vm5, %v3215_v10  ;;  %3511 = vrot.lane.b32.xlu1 %v9399_v26, %s6858_s16 }
 0x38a   :  { %3811 = vrot.lane.b32.xlu0 %v10320_v19, %s6854_s29  ;;  %v3680_v19 = vld [vmem:[#allocation2 + $0xa3] sm:$0xff] }
 0x38b   :  { %v3502_v37 = vpop.permute.xlu1 %3501 }
 0x38c   :  { %3539 = vst.msk [vmem:[#allocation3 + $0x148] sm:$0xff] %vm2822_vm8, %v3502_v37  ;;  %v2928_v34 = vpop.permute.xlu0 %2927 }
 0x38d   :  { %2963 = vst.msk [vmem:[#allocation3 + $0x188] sm:$0xff] %vm2239_vm2, %v2928_v34  ;;  %3621 = vrot.lane.b32.xlu1 %v3583_v59, %s6853_s28 }
 0x38e   :  { %3908 = vrot.lane.b32.xlu0 %v3871_v44, %s6855_s30 }
 0x38f   :  { %v3311_v52 = vpop.permute.xlu1 %3310 }
 0x390   :  { %3347 = vst.msk [vmem:[#allocation3 + $0x168] sm:$0xff] %vm2628_vm6, %v3311_v52  ;;  %v2218_v9 = vpop.permute.xlu0 %2217 }
 0x391   :  { %2253 = vst.msk [vmem:[#allocation3 + $0x1a0] sm:$0xff] %vm2239_vm2, %v2218_v9  ;;  %3717 = vrot.lane.b32.xlu1 %v3679_v11, %s6852_s27 }
 0x392   :  { %4004 = vrot.lane.b32.xlu0 %v10321_v39, %s6856_s10  ;;  %v3873_v39 = vld [vmem:[#allocation2 + $0xb0] sm:$0xff] }
 0x393   :  { %v3407_v53 = vpop.permute.xlu1 %3406  ;;  %v4323_v21 = vld [vmem:[#allocation3 + $0x148] sm:$0xff] }
 0x394   :  { %3443 = vst.msk [vmem:[#allocation3 + $0x168] sm:$0xff] %vm2725_vm7, %v3407_v53  ;;  %v2315_v45 = vpop.permute.xlu0 %2314  ;;  %4558 = vmatprep.mubr.f32.mxu1 %v4323_v21 }
 0x395   :  { %2350 = vst.msk [vmem:[#allocation3 + $0x1a0] sm:$0xff] %vm2336_vm3, %v2315_v45  ;;  %4559 = vmatmul.mubr.f32.gmra.mrb[70].mxu1 %v4322_v61  ;;  %3813 = vrot.lane.b32.xlu1 %v10322_v35, %s6854_s29  ;;  %v3969_v61 = vld [vmem:[#allocation2 + $0xb1] sm:$0xff] }
 0x396   :  { %4100 = vrot.lane.b32.xlu0 %v3583_v59, %s6857_s11  ;;  %v10324_v59 = vld [vmem:[#allocation27_spill] sm:$0xff] }
 0x397   :  { %v2605_v13 = vpop.permute.xlu1 %2604 }
 0x398   :  { %2641 = vst.msk [vmem:[#allocation3 + $0x180] sm:$0xff] %vm2628_vm6, %v2605_v13  ;;  %v2412_v15 = vpop.permute.xlu0 %2411 }
 0x399   :  { %2447 = vst.msk [vmem:[#allocation3 + $0x1a0] sm:$0xff] %vm2433_vm4, %v2412_v15  ;;  %3910 = vrot.lane.b32.xlu1 %v3872_v12, %s6855_s30  ;;  %v4326_v15 = vld [vmem:[#allocation3 + $0x160] sm:$0xff]  ;;  %v4065_v12 = vld [vmem:[#allocation2 + $0xb2] sm:$0xff] }
 0x39a   :  { %4196 = vrot.lane.b32.xlu0 %v3679_v11, %s6858_s16 }
 0x39b   :  { %v2702_v4 = vpop.permute.xlu1 %2701 }
 0x39c   :  { %2738 = vst.msk [vmem:[#allocation3 + $0x180] sm:$0xff] %vm2725_vm7, %v2702_v4  ;;  %v3025_v1 = vpop.permute.xlu0 %3024 }
 0x39d   :  { %3060 = vst.msk [vmem:[#allocation3 + $0x188] sm:$0xff] %vm2336_vm3, %v3025_v1  ;;  %4006 = vrot.lane.b32.xlu1 %v10323_v30, %s6856_s10  ;;  %v4161_v1 = vld [vmem:[#allocation2 + $0xb3] sm:$0xff] }
 0x39e   :  { %3623 = vrot.lane.b32.xlu0 %v3584_v63, %s6853_s28 }
 0x39f   :  { %v2799_v47 = vpop.permute.xlu1 %2798 }
 0x3a0   :  { %2835 = vst.msk [vmem:[#allocation3 + $0x180] sm:$0xff] %vm2822_vm8, %v2799_v47  ;;  %v3121_v10 = vpop.permute.xlu0 %3120 }
 0x3a1   :  { %3156 = vst.msk [vmem:[#allocation3 + $0x188] sm:$0xff] %vm2433_vm4, %v3121_v10  ;;  %4102 = vrot.lane.b32.xlu1 %v3584_v63, %s6857_s11 }
 0x3a2   :  { %3719 = vrot.lane.b32.xlu0 %v3680_v19, %s6852_s27 }
 0x3a3   :  { %v2509_v37 = vpop.permute.xlu1 %2508 }
 0x3a4   :  { %2544 = vst.msk [vmem:[#allocation3 + $0x1a0] sm:$0xff] %vm2530_vm5, %v2509_v37  ;;  %v3217_v34 = vpop.permute.xlu0 %3216 }
 0x3a5   :  { %3252 = vst.msk [vmem:[#allocation3 + $0x188] sm:$0xff] %vm2530_vm5, %v3217_v34  ;;  %4198 = vrot.lane.b32.xlu1 %v3680_v19, %s6858_s16 }
 0x3a6   :  { %3815 = vrot.lane.b32.xlu0 %v10324_v59, %s6854_s29 }
 0x3a7   :  { %v3504_v44 = vpop.permute.xlu1 %3503  ;;  %v4330_v59 = vld [vmem:[#allocation3 + $0x180] sm:$0xff] }
 0x3a8   :  { %3540 = vst.msk [vmem:[#allocation3 + $0x168] sm:$0xff] %vm2822_vm8, %v3504_v44  ;;  %v2930_v52 = vpop.permute.xlu0 %2929  ;;  %v6239_v9 = vpop.f32.mrb[58].mxu1 }
 0x3a9   :  { %2964 = vst.msk [vmem:[#allocation3 + $0x1a8] sm:$0xff] %vm2239_vm2, %v2930_v52  ;;  %v6240_v11 = vpop.f32.mrb[59].mxu1  ;;  %3625 = vrot.lane.b32.xlu1 %v9030_v6, %s6853_s28 }
 0x3aa   :  { %v9442_v53 = vadd.f32 %v6240_v11, %v6239_v9  ;;  %3912 = vrot.lane.b32.xlu0 %v3873_v39, %s6855_s30 }
 0x3ab   :  { %v3313_v21 = vpop.permute.xlu1 %3312 }
 0x3ac   :  { %3348 = vst.msk [vmem:[#allocation3 + $0x188] sm:$0xff] %vm2628_vm6, %v3313_v21  ;;  %v2220_v45 = vpop.permute.xlu0 %2219 }
 0x3ad   :  { %2254 = vst.msk [vmem:[#allocation3 + $0x1c0] sm:$0xff] %vm2239_vm2, %v2220_v45  ;;  %3721 = vrot.lane.b32.xlu1 %v8636_v54, %s6852_s27 }
 0x3ae   :  { %4008 = vrot.lane.b32.xlu0 %v3969_v61, %s6856_s10 }
 0x3af   :  { %v3409_v35 = vpop.permute.xlu1 %3408  ;;  %v4327_v13 = vld [vmem:[#allocation3 + $0x168] sm:$0xff] }
 0x3b0   :  { %3444 = vst.msk [vmem:[#allocation3 + $0x188] sm:$0xff] %vm2725_vm7, %v3409_v35  ;;  %v2317_v6 = vpop.permute.xlu0 %2316  ;;  %4563 = vmatprep.mubr.f32.mxu1 %v4327_v13 }
 0x3b1   :  { %2351 = vst.msk [vmem:[#allocation3 + $0x1c0] sm:$0xff] %vm2336_vm3, %v2317_v6  ;;  %4564 = vmatmul.mubr.f32.gmra.mrb[72].mxu1 %v4326_v15  ;;  %3817 = vrot.lane.b32.xlu1 %v9038_v14, %s6854_s29 }
 0x3b2   :  { %4104 = vrot.lane.b32.xlu0 %v4065_v12, %s6857_s11 }
 0x3b3   :  { %v2607_v4 = vpop.permute.xlu1 %2606 }
 0x3b4   :  { %2642 = vst.msk [vmem:[#allocation3 + $0x1a0] sm:$0xff] %vm2628_vm6, %v2607_v4  ;;  %v2414_v54 = vpop.permute.xlu0 %2413 }
 0x3b5   :  { %2448 = vst.msk [vmem:[#allocation3 + $0x1c0] sm:$0xff] %vm2433_vm4, %v2414_v54  ;;  %3914 = vrot.lane.b32.xlu1 %v8659_v17, %s6855_s30 }
 0x3b6   :  { %4200 = vrot.lane.b32.xlu0 %v4161_v1, %s6858_s16 }
 0x3b7   :  { %v2704_v63 = vpop.permute.xlu1 %2703 }
 0x3b8   :  { %2739 = vst.msk [vmem:[#allocation3 + $0x1a0] sm:$0xff] %vm2725_vm7, %v2704_v63  ;;  %v3027_v30 = vpop.permute.xlu0 %3026 }
 0x3b9   :  { %3061 = vst.msk [vmem:[#allocation3 + $0x1a8] sm:$0xff] %vm2336_vm3, %v3027_v30  ;;  %4010 = vrot.lane.b32.xlu1 %v9068_v29, %s6856_s10 }
 0x3ba   :  { %3627 = vrot.lane.b32.xlu0 %v9076_v16, %s6853_s28 }
 0x3bb   :  { %v2801_v14 = vpop.permute.xlu1 %2800 }
 0x3bc   :  { %2836 = vst.msk [vmem:[#allocation3 + $0x1a0] sm:$0xff] %vm2822_vm8, %v2801_v14  ;;  %v3123_v47 = vpop.permute.xlu0 %3122 }
 0x3bd   :  { %3157 = vst.msk [vmem:[#allocation3 + $0x1a8] sm:$0xff] %vm2433_vm4, %v3123_v47  ;;  %4106 = vrot.lane.b32.xlu1 %v9076_v16, %s6857_s11 }
 0x3be   :  { %3723 = vrot.lane.b32.xlu0 %v8664_v32, %s6852_s27 }
 0x3bf   :  { %v2511_v17 = vpop.permute.xlu1 %2510 }
 0x3c0   :  { %2545 = vst.msk [vmem:[#allocation3 + $0x1c0] sm:$0xff] %vm2530_vm5, %v2511_v17  ;;  %v3219_v10 = vpop.permute.xlu0 %3218 }
 0x3c1   :  { %3253 = vst.msk [vmem:[#allocation3 + $0x1a8] sm:$0xff] %vm2530_vm5, %v3219_v10  ;;  %4202 = vrot.lane.b32.xlu1 %v8664_v32, %s6858_s16 }
 0x3c2   :  { %3819 = vrot.lane.b32.xlu0 %v9084_v23, %s6854_s29 }
 0x3c3   :  { %v3506_v29 = vpop.permute.xlu1 %3505  ;;  %v4334_v35 = vld [vmem:[#allocation3 + $0x1a0] sm:$0xff] }
 0x3c4   :  { %3541 = vst.msk [vmem:[#allocation3 + $0x188] sm:$0xff] %vm2822_vm8, %v3506_v29  ;;  %v2932_v19 = vpop.permute.xlu0 %2931  ;;  %v4285_v29 = vld [vmem:[#allocation3 + $0x18] sm:$0xff] }
 0x3c5   :  { %2965 = vst.msk [vmem:[#allocation3 + $0x1c8] sm:$0xff] %vm2239_vm2, %v2932_v19  ;;  %3629 = vrot.lane.b32.xlu1 %v9126_v0, %s6853_s28 }
 0x3c6   :  { %3916 = vrot.lane.b32.xlu0 %v8687_v51, %s6855_s30 }
 0x3c7   :  { %v3315_v16 = vpop.permute.xlu1 %3314 }
 0x3c8   :  { %3349 = vst.msk [vmem:[#allocation3 + $0x1a8] sm:$0xff] %vm2628_vm6, %v3315_v16  ;;  %v2222_v37 = vpop.permute.xlu0 %2221  ;;  %v4284_v16 = vld [vmem:[#allocation3 + $0x10] sm:$0xff] }
 0x3c9   :  { %2255 = vst.msk [vmem:[#allocation3 + $0x1e0] sm:$0xff] %vm2239_vm2, %v2222_v37  ;;  %3725 = vrot.lane.b32.xlu1 %v8692_v55, %s6852_s27  ;;  %v4289_v37 = vld [vmem:[#allocation3 + $0x38] sm:$0xff] }
 0x3ca   :  { %4012 = vrot.lane.b32.xlu0 %v9118_v7, %s6856_s10 }
 0x3cb   :  { %v3411_v32 = vpop.permute.xlu1 %3410  ;;  %v4331_v23 = vld [vmem:[#allocation3 + $0x188] sm:$0xff] }
 0x3cc   :  { %3445 = vst.msk [vmem:[#allocation3 + $0x1a8] sm:$0xff] %vm2725_vm7, %v3411_v32  ;;  %v2319_v34 = vpop.permute.xlu0 %2318  ;;  %4568 = vmatprep.mubr.f32.mxu1 %v4331_v23  ;;  %v4288_v32 = vld [vmem:[#allocation3 + $0x30] sm:$0xff]  ;;  %v3592_v23 = vld [vmem:[#allocation2 + $0x162] sm:$0xff] }
 0x3cd   :  { %2352 = vst.msk [vmem:[#allocation3 + $0x1e0] sm:$0xff] %vm2336_vm3, %v2319_v34  ;;  %4569 = vmatmul.mubr.f32.gmra.mrb[74].mxu1 %v4330_v59  ;;  %3821 = vrot.lane.b32.xlu1 %v9134_v3, %s6854_s29  ;;  %v4292_v59 = vld [vmem:[#allocation3 + $0x50] sm:$0xff] }
 0x3ce   :  { %4108 = vrot.lane.b32.xlu0 %v9126_v0, %s6857_s11 }
 0x3cf   :  { %v2609_v51 = vpop.permute.xlu1 %2608 }
 0x3d0   :  { %2643 = vst.msk [vmem:[#allocation3 + $0x1c0] sm:$0xff] %vm2628_vm6, %v2609_v51  ;;  %v2416_v7 = vpop.permute.xlu0 %2415  ;;  %v6242_v44 = vpop.f32.mrb[60].mxu1  ;;  %v3688_v51 = vld [vmem:[#allocation2 + $0x163] sm:$0xff] }
 0x3d1   :  { %2449 = vst.msk [vmem:[#allocation3 + $0x1e0] sm:$0xff] %vm2433_vm4, %v2416_v7  ;;  %v6243_v52 = vpop.f32.mrb[61].mxu1  ;;  %3918 = vrot.lane.b32.xlu1 %v8715_v60, %s6855_s30  ;;  %v4297_v7 = vld [vmem:[#allocation3 + $0x78] sm:$0xff] }
 0x3d2   :  { %v9500_v9 = vadd.f32 %v6243_v52, %v6242_v44  ;;  %4204 = vrot.lane.b32.xlu0 %v8692_v55, %s6858_s16  ;;  %v4296_v52 = vld [vmem:[#allocation3 + $0x70] sm:$0xff] }
 0x3d3   :  { %v2706_v3 = vpop.permute.xlu1 %2705 }
 0x3d4   :  { %2740 = vst.msk [vmem:[#allocation3 + $0x1c0] sm:$0xff] %vm2725_vm7, %v2706_v3  ;;  %v3029_v0 = vpop.permute.xlu0 %3028  ;;  %v4301_v3 = vld [vmem:[#allocation3 + $0x98] sm:$0xff] }
 0x3d5   :  { %3062 = vst.msk [vmem:[#allocation3 + $0x1c8] sm:$0xff] %vm2336_vm3, %v3029_v0  ;;  %4014 = vrot.lane.b32.xlu1 %v9168_v18, %s6856_s10 }
 0x3d6   :  { %3631 = vrot.lane.b32.xlu0 %v9176_v56, %s6853_s28 }
 0x3d7   :  { %v2803_v11 = vpop.permute.xlu1 %2802 }
 0x3d8   :  { %2837 = vst.msk [vmem:[#allocation3 + $0x1c0] sm:$0xff] %vm2822_vm8, %v2803_v11  ;;  %v3125_v60 = vpop.permute.xlu0 %3124 }
 0x3d9   :  { %3158 = vst.msk [vmem:[#allocation3 + $0x1c8] sm:$0xff] %vm2433_vm4, %v3125_v60  ;;  %4110 = vrot.lane.b32.xlu1 %v9176_v56, %s6857_s11  ;;  %v3977_v60 = vld [vmem:[#allocation2 + $0x171] sm:$0xff] }
 0x3da   :  { %3727 = vrot.lane.b32.xlu0 %v8720_v28, %s6852_s27 }
 0x3db   :  { %v2513_v55 = vpop.permute.xlu1 %2512 }
 0x3dc   :  { %2546 = vst.msk [vmem:[#allocation3 + $0x1e0] sm:$0xff] %vm2530_vm5, %v2513_v55  ;;  %v3221_v39 = vpop.permute.xlu0 %3220 }
 0x3dd   :  { %3254 = vst.msk [vmem:[#allocation3 + $0x1c8] sm:$0xff] %vm2530_vm5, %v3221_v39  ;;  %4206 = vrot.lane.b32.xlu1 %v8720_v28, %s6858_s16  ;;  %v3881_v39 = vld [vmem:[#allocation2 + $0x170] sm:$0xff] }
 0x3de   :  { %3823 = vrot.lane.b32.xlu0 %v9184_v62, %s6854_s29 }
 0x3df   :  { %v3508_v18 = vpop.permute.xlu1 %3507  ;;  %v4338_v1 = vld [vmem:[#allocation3 + $0x1c0] sm:$0xff] }
 0x3e0   :  { %3542 = vst.msk [vmem:[#allocation3 + $0x1a8] sm:$0xff] %vm2822_vm8, %v3508_v18  ;;  %v2934_v21 = vpop.permute.xlu0 %2933  ;;  %v4305_v18 = vld [vmem:[#allocation3 + $0xb8] sm:$0xff] }
 0x3e1   :  { %2966 = vst.msk [vmem:[#allocation3 + $0x1e8] sm:$0xff] %vm2239_vm2, %v2934_v21  ;;  %3633 = vrot.lane.b32.xlu1 %v9224_v27, %s6853_s28 }
 0x3e2   :  { %3920 = vrot.lane.b32.xlu0 %v8740_v40, %s6855_s30 }
 0x3e3   :  { %v3317_v56 = vpop.permute.xlu1 %3316 }
 0x3e4   :  { %3350 = vst.msk [vmem:[#allocation3 + $0x1c8] sm:$0xff] %vm2628_vm6, %v3317_v56  ;;  %v2708_v45 = vpop.permute.xlu0 %2707  ;;  %v4169_v56 = vld [vmem:[#allocation2 + $0x173] sm:$0xff] }
 0x3e5   :  { %3729 = vrot.lane.b32.xlu1 %v8744_v46, %s6852_s27 }
 0x3e6   :  { %4016 = vrot.lane.b32.xlu0 %v9216_v43, %s6856_s10 }
 0x3e7   :  { %v3413_v28 = vpop.permute.xlu1 %3412  ;;  %v4335_v62 = vld [vmem:[#allocation3 + $0x1a8] sm:$0xff] }
 0x3e8   :  { %3446 = vst.msk [vmem:[#allocation3 + $0x1c8] sm:$0xff] %vm2725_vm7, %v3413_v28  ;;  %v3031_v61 = vpop.permute.xlu0 %3030  ;;  %4573 = vmatprep.mubr.f32.mxu1 %v4335_v62  ;;  %v4073_v28 = vld [vmem:[#allocation2 + $0x172] sm:$0xff] }
 0x3e9   :  { %3063 = vst.msk [vmem:[#allocation3 + $0x1e8] sm:$0xff] %vm2336_vm3, %v3031_v61  ;;  %4574 = vmatmul.mubr.f32.gmra.mrb[76].mxu1 %v4334_v35  ;;  %3825 = vrot.lane.b32.xlu1 %v9232_v36, %s6854_s29  ;;  %v4309_v62 = vld [vmem:[#allocation3 + $0xd8] sm:$0xff] }
 0x3ea   :  { %4112 = vrot.lane.b32.xlu0 %v9224_v27, %s6857_s11 }
 0x3eb   :  { %v2611_v40 = vpop.permute.xlu1 %2610 }
 0x3ec   :  { %2644 = vst.msk [vmem:[#allocation3 + $0x1e0] sm:$0xff] %vm2628_vm6, %v2611_v40  ;;  %v3127_v43 = vpop.permute.xlu0 %3126 }
 0x3ed   :  { %2741 = vst.msk [vmem:[#allocation3 + $0x1e0] sm:$0xff] %vm2725_vm7, %v2708_v45  ;;  %3922 = vrot.lane.b32.xlu1 %v9260_v38, %s6855_s30 }
 0x3ee   :  { %3159 = vst.msk [vmem:[#allocation3 + $0x1e8] sm:$0xff] %vm2433_vm4, %v3127_v43  ;;  %4208 = vrot.lane.b32.xlu0 %v8744_v46, %s6858_s16  ;;  %v4313_v43 = vld [vmem:[#allocation3 + $0xf8] sm:$0xff] }
 0x3ef   :  { %v2805_v13 = vpop.permute.xlu1 %2804 }
 0x3f0   :  { %2838 = vst.msk [vmem:[#allocation3 + $0x1e0] sm:$0xff] %vm2822_vm8, %v2805_v13  ;;  %v3223_v36 = vpop.permute.xlu0 %3222 }
 0x3f1   :  { %3255 = vst.msk [vmem:[#allocation3 + $0x1e8] sm:$0xff] %vm2530_vm5, %v3223_v36  ;;  %4018 = vrot.lane.b32.xlu1 %v9268_v33, %s6856_s10 }
 0x3f2   :  { %3635 = vrot.lane.b32.xlu0 %v9283_v20, %s6853_s28 }
 0x3f3   :  { %v3510_v27 = vpop.permute.xlu1 %3509 }
 0x3f4   :  { %3543 = vst.msk [vmem:[#allocation3 + $0x1c8] sm:$0xff] %vm2822_vm8, %v3510_v27  ;;  %v3319_v6 = vpop.permute.xlu0 %3318  ;;  %v6245_v38 = vpop.f32.mrb[62].mxu1 }
 0x3f5   :  { %3351 = vst.msk [vmem:[#allocation3 + $0x1e8] sm:$0xff] %vm2628_vm6, %v3319_v6  ;;  %v6246_v46 = vpop.f32.mrb[63].mxu1  ;;  %4114 = vrot.lane.b32.xlu1 %v9283_v20, %s6857_s11 }
 0x3f6   :  { %v9556_v15 = vadd.f32 %v6246_v46, %v6245_v38  ;;  %3731 = vrot.lane.b32.xlu0 %v8759_v2, %s6852_s27 }
 0x3f7   :  { %v4195_v33 = vpop.permute.xlu1 %4194 }
 0x3f8   :  { %4238 = vst.msk [vmem:[#allocation3 + $0x90] sm:$0xff] %vm2822_vm8, %v4195_v33  ;;  %v3415_v12 = vpop.permute.xlu0 %3414 }
 0x3f9   :  { %3447 = vst.msk [vmem:[#allocation3 + $0x1e8] sm:$0xff] %vm2725_vm7, %v3415_v12  ;;  %4210 = vrot.lane.b32.xlu1 %v8759_v2, %s6858_s16 }
 0x3fa   :  { %3827 = vrot.lane.b32.xlu0 %v9298_v58, %s6854_s29 }
 0x3fb   :  { %v3512_v4 = vpop.permute.xlu1 %3511  ;;  %v4339_v54 = vld [vmem:[#allocation3 + $0x1c8] sm:$0xff] }
 0x3fc   :  { %v3812_v20 = vpop.permute.xlu0 %3811  ;;  %3544 = vst.msk [vmem:[#allocation3 + $0x1e8] sm:$0xff] %vm2822_vm8, %v3512_v4  ;;  %4578 = vmatprep.mubr.f32.mxu1 %v4339_v54 }
 0x3fd   :  { %3854 = vst.msk [vmem:[#allocation3 + $0xb0] sm:$0xff] %vm2433_vm4, %v3812_v20  ;;  %4579 = vmatmul.mubr.f32.gmra.mrb[78].mxu1 %v4338_v1  ;;  %3637 = vrot.lane.b32.xlu1 %v9356_v42, %s6853_s28  ;;  %v4317_v1 = vld [vmem:[#allocation3 + $0x118] sm:$0xff] }
 0x3fe   :  { %3924 = vrot.lane.b32.xlu0 %v9326_v49, %s6855_s30  ;;  %v4342_v49 = vld [vmem:[#allocation3 + $0x1e0] sm:$0xff] }
 0x3ff   :  { %v3622_v2 = vpop.permute.xlu1 %3621  ;;  %v4300_v55 = vld [vmem:[#allocation3 + $0x90] sm:$0xff] }
 0x400   :  { %v3909_v63 = vpop.permute.xlu0 %3908  ;;  %3663 = vst.msk [vmem:[#allocation3 + $0xd0] sm:$0xff] %vm2239_vm2, %v3622_v2  ;;  %v6248_v58 = vpop.f32.mrb[64].mxu1 }
 0x401   :  { %3951 = vst.msk [vmem:[#allocation3 + $0xb0] sm:$0xff] %vm2530_vm5, %v3909_v63  ;;  %v6249_v30 = vpop.f32.mrb[65].mxu1  ;;  %3733 = vrot.lane.b32.xlu1 %v9373_v24, %s6852_s27 }
 0x402   :  { %v9576_v14 = vadd.f32 %v6249_v30, %v6248_v58  ;;  %4020 = vrot.lane.b32.xlu0 %v9341_v8, %s6856_s10 }
 0x403   :  { %v3718_v47 = vpop.permute.xlu1 %3717  ;;  %v4343_v17 = vld [vmem:[#allocation3 + $0x1e8] sm:$0xff] }
 0x404   :  { %v4005_v10 = vpop.permute.xlu0 %4004  ;;  %3759 = vst.msk [vmem:[#allocation3 + $0xd0] sm:$0xff] %vm2336_vm3, %v3718_v47  ;;  %4583 = vmatprep.mubr.f32.mxu1 %v4343_v17 }
 0x405   :  { %4047 = vst.msk [vmem:[#allocation3 + $0xb0] sm:$0xff] %vm2628_vm6, %v4005_v10  ;;  %3829 = vrot.lane.b32.xlu1 %v9387_v50, %s6854_s29  ;;  %4584 = vmatmul.mubr.f32.gmra.mrb[80].mxu1 %v4342_v49 }
 0x406   :  { %4116 = vrot.lane.b32.xlu0 %v9356_v42, %s6857_s11  ;;  %5963 = vmatprep.mubr.msk.f32.mxu1 %vm2078_vm1, %v4285_v29  ;;  %v4321_v29 = vld [vmem:[#allocation3 + $0x138] sm:$0xff] }
 0x407   :  { %v3814_v8 = vpop.permute.xlu1 %3813 }
 0x408   :  { %v4101_v19 = vpop.permute.xlu0 %4100  ;;  %3855 = vst.msk [vmem:[#allocation3 + $0xd0] sm:$0xff] %vm2433_vm4, %v3814_v8 }
 0x409   :  { %4143 = vst.msk [vmem:[#allocation3 + $0xb0] sm:$0xff] %vm2725_vm7, %v4101_v19  ;;  %3926 = vrot.lane.b32.xlu1 %v9399_v26, %s6855_s30  ;;  %4654 = vmatmul.mubr.f32.vlgmr.msra.gmra.mrb[82].mxu1 %v4284_v16  ;;  %v4293_v26 = vld [vmem:[#allocation3 + $0x58] sm:$0xff] }
 0x40a   :  { %4212 = vrot.lane.b32.xlu0 %v9373_v24, %s6858_s16  ;;  %5964 = vmatprep.mubr.msk.f32.mxu1 %vm2078_vm1, %v4289_v37 }
 0x40b   :  { %v3911_v42 = vpop.permute.xlu1 %3910 }
 0x40c   :  { %v4197_v50 = vpop.permute.xlu0 %4196  ;;  %3952 = vst.msk [vmem:[#allocation3 + $0xd0] sm:$0xff] %vm2530_vm5, %v3911_v42 }
 0x40d   :  { %4239 = vst.msk [vmem:[#allocation3 + $0xb0] sm:$0xff] %vm2822_vm8, %v4197_v50  ;;  %4022 = vrot.lane.b32.xlu1 %v8785_v57, %s6856_s10  ;;  %4659 = vmatmul.mubr.f32.gmra.mrb[84].mxu1 %v4288_v32 }
 0x40e   :  { %3639 = vrot.lane.b32.xlu0 %v3592_v23, %s6853_s28  ;;  %5965 = vmatprep.mubr.msk.f32.mxu1 %vm2078_vm1, %v4293_v26 }
 0x40f   :  { %v4007_v24 = vpop.permute.xlu1 %4006 }
 0x410   :  { %v3624_v34 = vpop.permute.xlu0 %3623  ;;  %4048 = vst.msk [vmem:[#allocation3 + $0xd0] sm:$0xff] %vm2628_vm6, %v4007_v24 }
 0x411   :  { %3664 = vst.msk [vmem:[#allocation3 + $0xf0] sm:$0xff] %vm2239_vm2, %v3624_v34  ;;  %4118 = vrot.lane.b32.xlu1 %v3592_v23, %s6857_s11  ;;  %4664 = vmatmul.mubr.f32.gmra.mrb[86].mxu1 %v4292_v59  ;;  %v4325_v59 = vld [vmem:[#allocation3 + $0x158] sm:$0xff] }
 0x412   :  { %3735 = vrot.lane.b32.xlu0 %v3688_v51, %s6852_s27  ;;  %5966 = vmatprep.mubr.msk.f32.mxu1 %vm2078_vm1, %v4297_v7 }
 0x413   :  { %v4103_v57 = vpop.permute.xlu1 %4102 }
 0x414   :  { %v3720_v44 = vpop.permute.xlu0 %3719  ;;  %4144 = vst.msk [vmem:[#allocation3 + $0xd0] sm:$0xff] %vm2725_vm7, %v4103_v57  ;;  %v4304_v45 = vld [vmem:[#allocation3 + $0xb0] sm:$0xff] }
 0x415   :  { %3760 = vst.msk [vmem:[#allocation3 + $0xf0] sm:$0xff] %vm2336_vm3, %v3720_v44  ;;  %4214 = vrot.lane.b32.xlu1 %v3688_v51, %s6858_s16  ;;  %4669 = vmatmul.mubr.f32.gmra.mrb[88].mxu1 %v4296_v52 }
 0x416   :  { %3831 = vrot.lane.b32.xlu0 %v8809_v31, %s6854_s29  ;;  %5967 = vmatprep.mubr.msk.f32.mxu1 %vm2078_vm1, %v4301_v3 }
 0x417   :  { %v4199_v0 = vpop.permute.xlu1 %4198 }
 0x418   :  { %v3816_v11 = vpop.permute.xlu0 %3815  ;;  %4240 = vst.msk [vmem:[#allocation3 + $0xd0] sm:$0xff] %vm2822_vm8, %v4199_v0 }
 0x419   :  { %3856 = vst.msk [vmem:[#allocation3 + $0xf0] sm:$0xff] %vm2433_vm4, %v3816_v11  ;;  %4024 = vrot.lane.b32.xlu1 %v3977_v60, %s6856_s10  ;;  %4674 = vmatmul.mubr.f32.gmra.mrb[90].mxu1 %v4300_v55  ;;  %v4329_v60 = vld [vmem:[#allocation3 + $0x178] sm:$0xff] }
 0x41a   :  { %3928 = vrot.lane.b32.xlu0 %v3881_v39, %s6855_s30  ;;  %5968 = vmatprep.mubr.msk.f32.mxu1 %vm2078_vm1, %v4305_v18 }
 0x41b   :  { %v3626_v31 = vpop.permute.xlu1 %3625 }
 0x41c   :  { %v3913_v21 = vpop.permute.xlu0 %3912  ;;  %3665 = vst.msk [vmem:[#allocation3 + $0x110] sm:$0xff] %vm2239_vm2, %v3626_v31 }
 0x41d   :  { %3953 = vst.msk [vmem:[#allocation3 + $0xf0] sm:$0xff] %vm2530_vm5, %v3913_v21  ;;  %4216 = vrot.lane.b32.xlu1 %v4169_v56, %s6858_s16  ;;  %4679 = vmatmul.mubr.f32.gmra.mrb[92].mxu1 %v4304_v45 }
 0x41e   :  { %4120 = vrot.lane.b32.xlu0 %v4073_v28, %s6857_s11  ;;  %5969 = vmatprep.mubr.msk.f32.mxu1 %vm2078_vm1, %v4309_v62 }
 0x41f   :  { %v3722_v61 = vpop.permute.xlu1 %3721  ;;  %v4308_v35 = vld [vmem:[#allocation3 + $0xd0] sm:$0xff] }
 0x420   :  { %v4009_v40 = vpop.permute.xlu0 %4008  ;;  %3761 = vst.msk [vmem:[#allocation3 + $0x110] sm:$0xff] %vm2336_vm3, %v3722_v61 }
 0x421   :  { %4049 = vst.msk [vmem:[#allocation3 + $0xf0] sm:$0xff] %vm2628_vm6, %v4009_v40  ;;  %4684 = vmatmul.mubr.f32.gmra.mrb[94].mxu1 %v4308_v35  ;;  %v4333_v40 = vld [vmem:[#allocation3 + $0x198] sm:$0xff] }
 0x422   :  { %5970 = vmatprep.mubr.msk.f32.mxu1 %vm2078_vm1, %v4313_v43 }
 0x423   :  { %v3818_v13 = vpop.permute.xlu1 %3817 }
 0x424   :  { %v4105_v36 = vpop.permute.xlu0 %4104  ;;  %3857 = vst.msk [vmem:[#allocation3 + $0x110] sm:$0xff] %vm2433_vm4, %v3818_v13 }
 0x425   :  { %4145 = vst.msk [vmem:[#allocation3 + $0xf0] sm:$0xff] %vm2725_vm7, %v4105_v36 }
 0x427   :  { %v3915_v27 = vpop.permute.xlu1 %3914 }
 0x428   :  { %v4201_v6 = vpop.permute.xlu0 %4200  ;;  %3954 = vst.msk [vmem:[#allocation3 + $0x110] sm:$0xff] %vm2530_vm5, %v3915_v27 }
 0x429   :  { %4241 = vst.msk [vmem:[#allocation3 + $0xf0] sm:$0xff] %vm2822_vm8, %v4201_v6 }
 0x42b   :  { %v4011_v38 = vpop.permute.xlu1 %4010 }
 0x42c   :  { %v3628_v46 = vpop.permute.xlu0 %3627  ;;  %4050 = vst.msk [vmem:[#allocation3 + $0x110] sm:$0xff] %vm2628_vm6, %v4011_v38 }
 0x42d   :  { %3666 = vst.msk [vmem:[#allocation3 + $0x130] sm:$0xff] %vm2239_vm2, %v3628_v46 }
 0x42f   :  { %v4107_v33 = vpop.permute.xlu1 %4106 }
 0x430   :  { %v3724_v12 = vpop.permute.xlu0 %3723  ;;  %4146 = vst.msk [vmem:[#allocation3 + $0x110] sm:$0xff] %vm2725_vm7, %v4107_v33  ;;  %v6251_v4 = vpop.f32.mrb[66].mxu1  ;;  %v4312_v54 = vld [vmem:[#allocation3 + $0xf0] sm:$0xff] }
 0x431   :  { %3762 = vst.msk [vmem:[#allocation3 + $0x130] sm:$0xff] %vm2336_vm3, %v3724_v12  ;;  %4689 = vmatmul.mubr.f32.gmra.mrb[96].mxu1 %v4312_v54  ;;  %v6252_v20 = vpop.f32.mrb[67].mxu1  ;;  %v4337_v12 = vld [vmem:[#allocation3 + $0x1b8] sm:$0xff] }
 0x432   :  { %v9632_v2 = vadd.f32 %v6252_v20, %v6251_v4  ;;  %5971 = vmatprep.mubr.msk.f32.mxu1 %vm2078_vm1, %v4317_v1 }
 0x433   :  { %v4203_v63 = vpop.permute.xlu1 %4202 }
 0x434   :  { %v3820_v58 = vpop.permute.xlu0 %3819  ;;  %4242 = vst.msk [vmem:[#allocation3 + $0x110] sm:$0xff] %vm2822_vm8, %v4203_v63 }
 0x435   :  { %3858 = vst.msk [vmem:[#allocation3 + $0x130] sm:$0xff] %vm2433_vm4, %v3820_v58 }
 0x437   :  { %v3630_v30 = vpop.permute.xlu1 %3629 }
 0x438   :  { %v3917_v47 = vpop.permute.xlu0 %3916  ;;  %3667 = vst.msk [vmem:[#allocation3 + $0x150] sm:$0xff] %vm2239_vm2, %v3630_v30 }
 0x439   :  { %3955 = vst.msk [vmem:[#allocation3 + $0x130] sm:$0xff] %vm2530_vm5, %v3917_v47 }
 0x43b   :  { %v3726_v17 = vpop.permute.xlu1 %3725  ;;  %v4316_v10 = vld [vmem:[#allocation3 + $0x110] sm:$0xff] }
 0x43c   :  { %v4013_v49 = vpop.permute.xlu0 %4012  ;;  %3763 = vst.msk [vmem:[#allocation3 + $0x150] sm:$0xff] %vm2336_vm3, %v3726_v17  ;;  %4694 = vmatmul.mubr.f32.gmra.mrb[98].mxu1 %v4316_v10 }
 0x43d   :  { %4051 = vst.msk [vmem:[#allocation3 + $0x130] sm:$0xff] %vm2628_vm6, %v4013_v49  ;;  %5972 = vmatprep.mubr.msk.f32.mxu1 %vm2078_vm1, %v4321_v29  ;;  %v4341_v29 = vld [vmem:[#allocation3 + $0x1d8] sm:$0xff] }
 0x43f   :  { %v3822_v8 = vpop.permute.xlu1 %3821 }
 0x440   :  { %v4109_v19 = vpop.permute.xlu0 %4108  ;;  %3859 = vst.msk [vmem:[#allocation3 + $0x150] sm:$0xff] %vm2433_vm4, %v3822_v8 }
 0x441   :  { %4147 = vst.msk [vmem:[#allocation3 + $0x130] sm:$0xff] %vm2725_vm7, %v4109_v19 }
 0x443   :  { %v3919_v16 = vpop.permute.xlu1 %3918 }
 0x444   :  { %v4205_v37 = vpop.permute.xlu0 %4204  ;;  %3956 = vst.msk [vmem:[#allocation3 + $0x150] sm:$0xff] %vm2530_vm5, %v3919_v16 }
 0x445   :  { %4243 = vst.msk [vmem:[#allocation3 + $0x130] sm:$0xff] %vm2822_vm8, %v4205_v37 }
 0x447   :  { %v4015_v42 = vpop.permute.xlu1 %4014 }
 0x448   :  { %v3632_v50 = vpop.permute.xlu0 %3631  ;;  %4052 = vst.msk [vmem:[#allocation3 + $0x150] sm:$0xff] %vm2628_vm6, %v4015_v42 }
 0x449   :  { %3668 = vst.msk [vmem:[#allocation3 + $0x170] sm:$0xff] %vm2239_vm2, %v3632_v50 }
 0x44b   :  { %v4111_v32 = vpop.permute.xlu1 %4110 }
 0x44c   :  { %v3728_v23 = vpop.permute.xlu0 %3727  ;;  %4148 = vst.msk [vmem:[#allocation3 + $0x150] sm:$0xff] %vm2725_vm7, %v4111_v32  ;;  %v6254_v26 = vpop.f32.mrb[68].mxu1  ;;  %v4320_v24 = vld [vmem:[#allocation3 + $0x130] sm:$0xff] }
 0x44d   :  { %3764 = vst.msk [vmem:[#allocation3 + $0x170] sm:$0xff] %vm2336_vm3, %v3728_v23  ;;  %4699 = vmatmul.mubr.f32.gmra.mrb[100].mxu1 %v4320_v24  ;;  %v6255_v34 = vpop.f32.mrb[69].mxu1 }
 0x44e   :  { %v9650_v51 = vadd.f32 %v6255_v34, %v6254_v26  ;;  %5973 = vmatprep.mubr.msk.f32.mxu1 %vm2078_vm1, %v4325_v59  ;;  %v4345_v26 = vld [vmem:[#allocation3 + $0x1f8] sm:$0xff] }
 0x44f   :  { %v4207_v7 = vpop.permute.xlu1 %4206 }
 0x450   :  { %v3824_v57 = vpop.permute.xlu0 %3823  ;;  %4244 = vst.msk [vmem:[#allocation3 + $0x150] sm:$0xff] %vm2822_vm8, %v4207_v7 }
 0x451   :  { %3860 = vst.msk [vmem:[#allocation3 + $0x170] sm:$0xff] %vm2433_vm4, %v3824_v57 }
 0x453   :  { %v3634_v44 = vpop.permute.xlu1 %3633 }
 0x454   :  { %v3921_v52 = vpop.permute.xlu0 %3920  ;;  %3669 = vst.msk [vmem:[#allocation3 + $0x190] sm:$0xff] %vm2239_vm2, %v3634_v44 }
 0x455   :  { %3957 = vst.msk [vmem:[#allocation3 + $0x170] sm:$0xff] %vm2530_vm5, %v3921_v52 }
 0x457   :  { %v3730_v3 = vpop.permute.xlu1 %3729  ;;  %v4324_v0 = vld [vmem:[#allocation3 + $0x150] sm:$0xff] }
 0x458   :  { %v4017_v11 = vpop.permute.xlu0 %4016  ;;  %3765 = vst.msk [vmem:[#allocation3 + $0x190] sm:$0xff] %vm2336_vm3, %v3730_v3  ;;  %4704 = vmatmul.mubr.f32.gmra.mrb[102].mxu1 %v4324_v0 }
 0x459   :  { %4053 = vst.msk [vmem:[#allocation3 + $0x170] sm:$0xff] %vm2628_vm6, %v4017_v11  ;;  %5974 = vmatprep.mubr.msk.f32.mxu1 %vm2078_vm1, %v4329_v60 }
 0x45b   :  { %v3826_v55 = vpop.permute.xlu1 %3825 }
 0x45c   :  { %v4113_v39 = vpop.permute.xlu0 %4112  ;;  %3861 = vst.msk [vmem:[#allocation3 + $0x190] sm:$0xff] %vm2433_vm4, %v3826_v55 }
 0x45d   :  { %4149 = vst.msk [vmem:[#allocation3 + $0x170] sm:$0xff] %vm2725_vm7, %v4113_v39 }
 0x45f   :  { %v3923_v18 = vpop.permute.xlu1 %3922 }
 0x460   :  { %v4209_v31 = vpop.permute.xlu0 %4208  ;;  %3958 = vst.msk [vmem:[#allocation3 + $0x190] sm:$0xff] %vm2530_vm5, %v3923_v18 }
 0x461   :  { %4245 = vst.msk [vmem:[#allocation3 + $0x170] sm:$0xff] %vm2822_vm8, %v4209_v31 }
 0x463   :  { %v4019_v21 = vpop.permute.xlu1 %4018 }
 0x464   :  { %v3636_v56 = vpop.permute.xlu0 %3635  ;;  %4054 = vst.msk [vmem:[#allocation3 + $0x190] sm:$0xff] %vm2628_vm6, %v4019_v21 }
 0x465   :  { %3670 = vst.msk [vmem:[#allocation3 + $0x1b0] sm:$0xff] %vm2239_vm2, %v3636_v56 }
 0x467   :  { %v4115_v45 = vpop.permute.xlu1 %4114 }
 0x468   :  { %v3732_v28 = vpop.permute.xlu0 %3731  ;;  %4150 = vst.msk [vmem:[#allocation3 + $0x190] sm:$0xff] %vm2725_vm7, %v4115_v45  ;;  %v6257_v62 = vpop.f32.mrb[70].mxu1  ;;  %v4328_v61 = vld [vmem:[#allocation3 + $0x170] sm:$0xff] }
 0x469   :  { %3766 = vst.msk [vmem:[#allocation3 + $0x1b0] sm:$0xff] %vm2336_vm3, %v3732_v28  ;;  %4709 = vmatmul.mubr.f32.gmra.mrb[104].mxu1 %v4328_v61  ;;  %v6258_v35 = vpop.f32.mrb[71].mxu1 }
 0x46a   :  { %v9668_v43 = vadd.f32 %v6258_v35, %v6257_v62  ;;  %5975 = vmatprep.mubr.msk.f32.mxu1 %vm2078_vm1, %v4333_v40 }
 0x46b   :  { %v4211_v13 = vpop.permute.xlu1 %4210 }
 0x46c   :  { %v3828_v36 = vpop.permute.xlu0 %3827  ;;  %4246 = vst.msk [vmem:[#allocation3 + $0x190] sm:$0xff] %vm2822_vm8, %v4211_v13 }
 0x46d   :  { %3862 = vst.msk [vmem:[#allocation3 + $0x1b0] sm:$0xff] %vm2433_vm4, %v3828_v36 }
 0x46f   :  { %v3638_v27 = vpop.permute.xlu1 %3637 }
 0x470   :  { %v3925_v6 = vpop.permute.xlu0 %3924  ;;  %3671 = vst.msk [vmem:[#allocation3 + $0x1d0] sm:$0xff] %vm2239_vm2, %v3638_v27 }
 0x471   :  { %3959 = vst.msk [vmem:[#allocation3 + $0x1b0] sm:$0xff] %vm2530_vm5, %v3925_v6 }
 0x473   :  { %v3734_v38 = vpop.permute.xlu1 %3733  ;;  %v4332_v46 = vld [vmem:[#allocation3 + $0x190] sm:$0xff] }
 0x474   :  { %v4021_v33 = vpop.permute.xlu0 %4020  ;;  %3767 = vst.msk [vmem:[#allocation3 + $0x1d0] sm:$0xff] %vm2336_vm3, %v3734_v38  ;;  %4714 = vmatmul.mubr.f32.gmra.mrb[106].mxu1 %v4332_v46 }
 0x475   :  { %4055 = vst.msk [vmem:[#allocation3 + $0x1b0] sm:$0xff] %vm2628_vm6, %v4021_v33  ;;  %5976 = vmatprep.mubr.msk.f32.mxu1 %vm2078_vm1, %v4337_v12 }
 0x477   :  { %v3830_v4 = vpop.permute.xlu1 %3829 }
 0x478   :  { %v4117_v54 = vpop.permute.xlu0 %4116  ;;  %3863 = vst.msk [vmem:[#allocation3 + $0x1d0] sm:$0xff] %vm2433_vm4, %v3830_v4 }
 0x479   :  { %4151 = vst.msk [vmem:[#allocation3 + $0x1b0] sm:$0xff] %vm2725_vm7, %v4117_v54 }
 0x47b   :  { %v3927_v20 = vpop.permute.xlu1 %3926 }
 0x47c   :  { %v4213_v1 = vpop.permute.xlu0 %4212  ;;  %3960 = vst.msk [vmem:[#allocation3 + $0x1d0] sm:$0xff] %vm2530_vm5, %v3927_v20 }
 0x47d   :  { %4247 = vst.msk [vmem:[#allocation3 + $0x1b0] sm:$0xff] %vm2822_vm8, %v4213_v1 }
 0x47f   :  { %v4023_v63 = vpop.permute.xlu1 %4022 }
 0x480   :  { %v3640_v58 = vpop.permute.xlu0 %3639  ;;  %4056 = vst.msk [vmem:[#allocation3 + $0x1d0] sm:$0xff] %vm2628_vm6, %v4023_v63 }
 0x481   :  { %3672 = vst.msk [vmem:[#allocation3 + $0x1f0] sm:$0xff] %vm2239_vm2, %v3640_v58  ;;  %vm5668_vm2 = vcmask 1041408  }
 0x483   :  { %v4119_v30 = vpop.permute.xlu1 %4118 }
 0x484   :  { %v3736_v47 = vpop.permute.xlu0 %3735  ;;  %4152 = vst.msk [vmem:[#allocation3 + $0x1d0] sm:$0xff] %vm2725_vm7, %v4119_v30  ;;  %v6260_v17 = vpop.f32.mrb[72].mxu1  ;;  %v4336_v10 = vld [vmem:[#allocation3 + $0x1b0] sm:$0xff] }
 0x485   :  { %3768 = vst.msk [vmem:[#allocation3 + $0x1f0] sm:$0xff] %vm2336_vm3, %v3736_v47  ;;  %4719 = vmatmul.mubr.f32.gmra.mrb[108].mxu1 %v4336_v10  ;;  %v6261_v49 = vpop.f32.mrb[73].mxu1  ;;  %vm5664_vm3 = vcmask 408576  }
 0x486   :  { %v9686_v8 = vadd.f32 %v6261_v49, %v6260_v17  ;;  %5977 = vmatprep.mubr.msk.f32.mxu1 %vm2078_vm1, %v4341_v29  ;;  %v6860_v49 = vmov 1983009808  }
 0x487   :  { %v4215_v19 = vpop.permute.xlu1 %4214  ;;  %v4758_v29 = vunpack.c.l.s4 %v6860_v49 }
 0x488   :  { %v3832_v16 = vpop.permute.xlu0 %3831  ;;  %4248 = vst.msk [vmem:[#allocation3 + $0x1d0] sm:$0xff] %vm2822_vm8, %v4215_v19 }
 0x489   :  { %3864 = vst.msk [vmem:[#allocation3 + $0x1f0] sm:$0xff] %vm2433_vm4, %v3832_v16  ;;  %vm5742_vm4 = vcmask 74752  }
 0x48b   :  { %v4025_v37 = vpop.permute.xlu1 %4024 }
 0x48c   :  { %v3929_v42 = vpop.permute.xlu0 %3928 }
 0x48d   :  { %3961 = vst.msk [vmem:[#allocation3 + $0x1f0] sm:$0xff] %vm2530_vm5, %v3929_v42 }
 0x48e   :  { %4057 = vst.msk [vmem:[#allocation3 + $0x1f0] sm:$0xff] %vm2628_vm6, %v4025_v37 }
 0x48f   :  { %v4217_v50 = vpop.permute.xlu1 %4216  ;;  %v4340_v32 = vld [vmem:[#allocation3 + $0x1d0] sm:$0xff] }
 0x490   :  { %v4121_v23 = vpop.permute.xlu0 %4120  ;;  %4724 = vmatmul.mubr.f32.gmra.mrb[110].mxu1 %v4340_v32 }
 0x491   :  { %4153 = vst.msk [vmem:[#allocation3 + $0x1f0] sm:$0xff] %vm2725_vm7, %v4121_v23  ;;  %5978 = vmatprep.mubr.msk.f32.mxu1 %vm2078_vm1, %v4345_v26  ;;  %vm6861_vm1 = vmmov 0  }
 0x492   :  { %4249 = vst.msk [vmem:[#allocation3 + $0x1f0] sm:$0xff] %vm2822_vm8, %v4217_v50  ;;  %v4759_v50 = vunpack.c.0.s8 %v4758_v29 }
 0x499   :  { %v4344_v24 = vld [vmem:[#allocation3 + $0x1f0] sm:$0xff] }
 0x49a   :  { %4729 = vmatmul.mubr.f32.gmra.mrb[112].mxu1 %v4344_v24 }
 0x4a0   :  { %v6263_v34 = vpop.f32.mrb[74].mxu1 }
 0x4a1   :  { %v6264_v59 = vpop.f32.mrb[75].mxu1 }
 0x4a2   :  { %v9696_v7 = vadd.f32 %v6264_v59, %v6263_v34 }
 0x4bc   :  { %v6266_v57 = vpop.f32.mrb[76].mxu1 }
 0x4bd   :  { %v6267_v44 = vpop.f32.mrb[77].mxu1 }
 0x4be   :  { %v9698_v52 = vadd.f32 %v6267_v44, %v6266_v57 }
 0x4d0   :  { %v6269_v3 = vpop.f32.mrb[78].mxu1 }
 0x4d1   :  { %v6270_v0 = vpop.f32.mrb[79].mxu1 }
 0x4d2   :  { %v9700_v11 = vadd.f32 %v6270_v0, %v6269_v3 }
 0x4d8   :  { %v6272_v60 = vpop.f32.mrb[80].mxu1 }
 0x4d9   :  { %v6273_v55 = vpop.f32.mrb[81].mxu1 }
 0x4da   :  { %v9702_v39 = vadd.f32 %v6273_v55, %v6272_v60 }
 0x4dc   :  { %v4655_v18 = vpop.f32.mrb[82].mxu1 }
 0x4dd   :  { %v4656_v31 = vadd.f32 %v9104_v41, %v4655_v18  ;;  %v4657_v21 = vpop.f32.mrb[83].mxu1 }
 0x4e0   :  { %v4660_v56 = vpop.f32.mrb[84].mxu1 }
 0x4e1   :  { %v4661_v45 = vadd.f32 %v9160_v25, %v4660_v56  ;;  %v4662_v28 = vpop.f32.mrb[85].mxu1 }
 0x4e3   :  { %v4734_v62 = vmax.f32 %v4656_v31, %v4661_v45 }
 0x4e4   :  { %v4665_v61 = vpop.f32.mrb[86].mxu1 }
 0x4e5   :  { %v4666_v35 = vadd.f32 %v9240_v5, %v4665_v61  ;;  %v4667_v40 = vpop.f32.mrb[87].mxu1  ;;  %v4738_v17 = vrot.slane %v4734_v62, 1 }
 0x4e7   :  { %v4742_v10 = vmax.f32 %v4734_v62, %v4738_v17 }
 0x4e8   :  { %v4670_v13 = vpop.f32.mrb[88].mxu1 }
 0x4e9   :  { %v4671_v36 = vadd.f32 %v9358_v48, %v4670_v13  ;;  %v4672_v27 = vpop.f32.mrb[89].mxu1 }
 0x4eb   :  { %v9708_v6 = vmax.f32 %v4666_v35, %v4671_v36 }
 0x4ec   :  { %v4675_v38 = vpop.f32.mrb[90].mxu1 }
 0x4ed   :  { %v4677_v46 = vpop.f32.mrb[91].mxu1  ;;  %v4676_v41 = vadd.f32 %v9442_v53, %v4675_v38 }
 0x4f0   :  { %v4680_v33 = vpop.f32.mrb[92].mxu1 }
 0x4f1   :  { %v4681_v12 = vadd.f32 %v9500_v9, %v4680_v33  ;;  %v4682_v25 = vpop.f32.mrb[93].mxu1  ;;  %v9722_v9 = vld [vmem:[%s10101_s4] ss:$0 sm:$0xff] }
 0x4f2   :  { %v4751_v37 = vadd.f32 %v9722_v9, %v4742_v10 }
 0x4f3   :  { %v9712_v4 = vmax.f32 %v4676_v41, %v4681_v12 }
 0x4f4   :  { %v4685_v54 = vpop.f32.mrb[94].mxu1  ;;  %v4753_v23 = vmax.f32 %v4751_v37, 0.0 }
 0x4f5   :  { %v4687_v20 = vpop.f32.mrb[95].mxu1  ;;  %v4686_v5 = vadd.f32 %v9556_v15, %v4685_v54  ;;  %v4760_v15 = vlaneseq }
 0x4f6   :  { %v4882_v59 = vcombine.high %v4753_v23, %v4753_v23  ;;  %v4916_v20 = vrot.slane %v9708_v6, 1 }
 0x504   :  { %v4690_v1 = vpop.f32.mrb[96].mxu1 }
 0x505   :  { %v4691_v48 = vadd.f32 %v9576_v14, %v4690_v1  ;;  %v4692_v63 = vpop.f32.mrb[97].mxu1 }
 0x507   :  { %v9716_v58 = vmax.f32 %v4686_v5, %v4691_v48 }
 0x50f   :  { %v4695_v30 = vpop.f32.mrb[98].mxu1 }
 0x510   :  { %v4696_v47 = vadd.f32 %v9632_v2, %v4695_v30  ;;  %v4697_v53 = vpop.f32.mrb[99].mxu1  ;;  %v4761_v2 = vshrl.u32 %v4760_v15, 7 }
 0x512   :  { %v9726_v24 = vsub.s32 %v4759_v50, %v4761_v2 }
 0x514   :  { %v4763_v3 = vrot.slane %v4753_v23, %v9726_v24  ;;  %v4889_v18 = vrot.slane %v4882_v59, %v9726_v24  ;;  %v5434_v59 = vld [vmem:[%s10102_s5 + $0x88] sm:$0xff] }
 0x516   :  { %v4807_v45 = vcombine.high %v4763_v3, %v4763_v3  ;;  %v4890_v35 = vcombine.high %v4889_v18, %v4889_v18 }
 0x520   :  { %v4700_v19 = vpop.f32.mrb[100].mxu1 }
 0x521   :  { %v4701_v14 = vadd.f32 %v9650_v51, %v4700_v19  ;;  %v4702_v16 = vpop.f32.mrb[101].mxu1 }
 0x523   :  { %v4735_v42 = vmax.f32 %v4696_v47, %v4701_v14  ;;  %v4920_v47 = vmax.f32 %v9708_v6, %v4916_v20  ;;  %v5421_v20 = vld [vmem:[%s10102_s5 + $0x20] sm:$0xff] }
 0x525   :  { %v4739_v32 = vrot.slane %v4735_v42, 1  ;;  %v4929_v49 = vadd.f32 %v9722_v9, %v4920_v47 }
 0x527   :  { %v4743_v26 = vmax.f32 %v4735_v42, %v4739_v32  ;;  %v4931_v19 = vmax.f32 %v4929_v49, 0.0 }
 0x529   :  { %v4752_v34 = vadd.f32 %v9722_v9, %v4743_v26  ;;  %v5051_v37 = vcombine.high %v4931_v19, %v4931_v19  ;;  %v4941_v6 = vrot.slane %v4931_v19, %v9726_v24 }
 0x52b   :  { %v4754_v57 = vmax.f32 %v4752_v34, 0.0  ;;  %v4705_v44 = vpop.f32.mrb[102].mxu1  ;;  %v5058_v26 = vrot.slane %v5051_v37, %v9726_v24  ;;  %v5433_v34 = vld [vmem:[%s10102_s5 + $0x80] sm:$0xff] }
 0x52c   :  { %v4706_v51 = vadd.f32 %v9668_v43, %v4705_v44  ;;  %v4707_v0 = vpop.f32.mrb[103].mxu1 }
 0x52d   :  { %v4849_v60 = vcombine.high %v4754_v57, %v4754_v57  ;;  %v4814_v55 = vrot.slane %v4754_v57, %v9726_v24  ;;  %v5417_v57 = vld [vmem:[%s10102_s5] sm:$0xff]  ;;  %v4978_v0 = vcombine.high %v4941_v6, %v4941_v6 }
 0x52f   :  { %v4815_v31 = vcombine.high %v4814_v55, %v4814_v55  ;;  %v4856_v21 = vrot.slane %v4849_v60, %v9726_v24  ;;  %v4775_v56 = vrot.slane %v4814_v55, 7  ;;  %v6733_v60 = vpack.c.bf16 %v5434_v59, %v5433_v34  ;;  %v5439_v34 = vld [vmem:[%s10102_s5 + $0xb0] sm:$0xff] }
 0x531   :  { %v4818_v28 = vrot.slane %v4815_v31, 7  ;;  %v4859_v62 = vrot.slane %v4856_v21, 7  ;;  %v4899_v61 = vcombine.high %v4856_v21, %v4856_v21  ;;  %v4777_v43 = vsel %vm4776_vm9, %v4775_v56, %v4763_v3  ;;  %6734 = vmatprep.subr.bf16.mxu1 %v6733_v60 }
 0x532   :  { %v4779_v40 = vsel %vm4778_vm10, %v4775_v56, %v4777_v43  ;;  %v5436_v43 = vld [vmem:[%s10102_s5 + $0x98] sm:$0xff] }
 0x533   :  { %v4819_v13 = vsel %vm4776_vm9, %v4818_v28, %v4807_v45  ;;  %v4860_v36 = vsel %vm4776_vm9, %v4859_v62, %v4889_v18  ;;  %v4902_v27 = vrot.slane %v4899_v61, 7  ;;  %v4781_v38 = vsel %vm4780_vm11, %v4775_v56, %v4779_v40  ;;  %v5435_v61 = vld [vmem:[%s10102_s5 + $0x90] sm:$0xff] }
 0x534   :  { %v4820_v46 = vsel %vm4778_vm10, %v4818_v28, %v4819_v13  ;;  %v4861_v41 = vsel %vm4778_vm10, %v4859_v62, %v4860_v36  ;;  %v4783_v33 = vsel %vm4782_vm12, %v4775_v56, %v4781_v38  ;;  %v5084_v45 = vrot.slane %v9712_v4, 1  ;;  %v5420_v38 = vld [vmem:[%s10102_s5 + $0x18] sm:$0xff] }
 0x535   :  { %v4821_v12 = vsel %vm4780_vm11, %v4818_v28, %v4820_v46  ;;  %v4862_v25 = vsel %vm4780_vm11, %v4859_v62, %v4861_v41  ;;  %v4903_v54 = vsel %vm4776_vm9, %v4902_v27, %v4890_v35  ;;  %4786 = vst.msk [vmem:[#allocation4] sm:$0x3] %vm4785_vm13, %v4783_v33  ;;  %v5419_v35 = vld [vmem:[%s10102_s5 + $0x10] sm:$0xff]  ;;  %v5437_v46 = vld [vmem:[%s10102_s5 + $0xa0] sm:$0xff]  ;;  %v5438_v41 = vld [vmem:[%s10102_s5 + $0xa8] sm:$0xff] }
 0x536   :  { %v4822_v5 = vsel %vm4782_vm12, %v4818_v28, %v4821_v12  ;;  %v4863_v1 = vsel %vm4782_vm12, %v4859_v62, %v4862_v25  ;;  %v4904_v48 = vsel %vm4778_vm10, %v4902_v27, %v4903_v54  ;;  %v5059_v28 = vcombine.high %v5058_v26, %v5058_v26 }
 0x537   :  { %4823 = vrot.lane.b32.xlu0 %v4822_v5, %s6852_s27  ;;  %v4905_v63 = vsel %vm4780_vm11, %v4902_v27, %v4904_v48  ;;  %v6737_v54 = vpack.c.bf16 %v5436_v43, %v5435_v61  ;;  %v5422_v5 = vld [vmem:[%s10102_s5 + $0x28] sm:$0xff]  ;;  %v5088_v19 = vmax.f32 %v9712_v4, %v5084_v45  ;;  %v5252_v4 = vrot.slane %v9716_v58, 1 }
 0x538   :  { %v4906_v30 = vsel %vm4782_vm12, %v4902_v27, %v4905_v63 }
 0x53b   :  { %4864 = vrot.lane.b32.xlu0 %v4863_v1, %s6855_s30 }
 0x53c   :  { %v4710_v53 = vpop.f32.mrb[104].mxu1 }
 0x53d   :  { %v4711_v17 = vadd.f32 %v9686_v8, %v4710_v53  ;;  %v4712_v10 = vpop.f32.mrb[105].mxu1 }
 0x53e   :  { %v6741_v10 = vpack.c.bf16 %v5438_v41, %v5437_v46 }
 0x53f   :  { %v4913_v29 = vmax.f32 %v4706_v51, %v4711_v17  ;;  %4907 = vrot.lane.b32.xlu0 %v4906_v30, %s6857_s11  ;;  %v5418_v51 = vld [vmem:[%s10102_s5 + $0x8] sm:$0xff]  ;;  %v6739_v30 = vpack.c.bf16 %v5420_v38, %v5419_v35  ;;  %v5425_v38 = vld [vmem:[%s10102_s5 + $0x40] sm:$0xff] }
 0x540   :  { %v6735_v55 = vpack.c.bf16 %v5418_v51, %v5417_v57 }
 0x541   :  { %v4917_v15 = vrot.slane %v4913_v29, 1 }
 0x542   :  { %6736 = vmatpush3.bf16.msra.mxu1 %v6735_v55 }
 0x543   :  { %v4921_v14 = vmax.f32 %v4913_v29, %v4917_v15  ;;  %6738 = vmatprep.subr.bf16.mxu1 %v6737_v54  ;;  %v6743_v29 = vpack.c.bf16 %v5422_v5, %v5421_v20  ;;  %v5443_v54 = vld [vmem:[%s10102_s5 + $0xd0] sm:$0xff] }
 0x545   :  { %v4930_v16 = vadd.f32 %v9722_v9, %v4921_v14 }
 0x546   :  { %6740 = vmatpush3.bf16.msra.mxu1 %v6739_v30  ;;  %v5427_v30 = vld [vmem:[%s10102_s5 + $0x50] sm:$0xff] }
 0x547   :  { %v4932_v42 = vmax.f32 %v4930_v16, 0.0  ;;  %v4715_v50 = vpop.f32.mrb[106].mxu1  ;;  %6742 = vmatprep.subr.bf16.mxu1 %v6741_v10 }
 0x548   :  { %v9761_v2 = vadd.f32 %v9696_v7, %v4715_v50  ;;  %v4717_v8 = vpop.f32.mrb[107].mxu1 }
 0x549   :  { %v5019_v32 = vcombine.high %v4932_v42, %v4932_v42  ;;  %v4985_v23 = vrot.slane %v4932_v42, %v9726_v24  ;;  %v5097_v42 = vadd.f32 %v9722_v9, %v5088_v19 }
 0x54a   :  { %6744 = vmatpush3.bf16.msra.mxu1 %v6743_v29 }
 0x54b   :  { %v4986_v7 = vcombine.high %v4985_v23, %v4985_v23  ;;  %v5026_v44 = vrot.slane %v5019_v32, %v9726_v24  ;;  %v4951_v3 = vrot.slane %v4985_v23, 7  ;;  %v5099_v8 = vmax.f32 %v5097_v42, 0.0 }
 0x54d   :  { %v4989_v18 = vrot.slane %v4986_v7, 7  ;;  %v5029_v31 = vrot.slane %v5026_v44, 7  ;;  %v5068_v21 = vcombine.high %v5026_v44, %v5026_v44  ;;  %v4952_v56 = vsel %vm4776_vm9, %v4951_v3, %v4941_v6  ;;  %v5424_v44 = vld [vmem:[%s10102_s5 + $0x38] sm:$0xff] }
 0x54e   :  { %v4953_v62 = vsel %vm4778_vm10, %v4951_v3, %v4952_v56 }
 0x54f   :  { %v4990_v40 = vsel %vm4776_vm9, %v4989_v18, %v4978_v0  ;;  %v5030_v13 = vsel %vm4776_vm9, %v5029_v31, %v5058_v26  ;;  %v5071_v36 = vrot.slane %v5068_v21, 7  ;;  %v4954_v27 = vsel %vm4780_vm11, %v4951_v3, %v4953_v62 }
 0x550   :  { %v4991_v33 = vsel %vm4778_vm10, %v4989_v18, %v4990_v40  ;;  %v5031_v12 = vsel %vm4778_vm10, %v5029_v31, %v5030_v13  ;;  %v4955_v25 = vsel %vm4782_vm12, %v4951_v3, %v4954_v27  ;;  %v5219_v26 = vcombine.high %v5099_v8, %v5099_v8  ;;  %v5442_v27 = vld [vmem:[%s10102_s5 + $0xc8] sm:$0xff] }
 0x551   :  { %v4992_v1 = vsel %vm4780_vm11, %v4989_v18, %v4991_v33  ;;  %v5032_v48 = vsel %vm4780_vm11, %v5029_v31, %v5031_v12  ;;  %v5072_v63 = vsel %vm4776_vm9, %v5071_v36, %v5059_v28  ;;  %4957 = vst.msk [vmem:[#allocation4 + $0x2] sm:$0x3] %vm4785_vm13, %v4955_v25  ;;  %v5109_v3 = vrot.slane %v5099_v8, %v9726_v24  ;;  %v5426_v25 = vld [vmem:[%s10102_s5 + $0x48] sm:$0xff] }
 0x552   :  { %v4993_v47 = vsel %vm4782_vm12, %v4989_v18, %v4992_v1  ;;  %v5033_v53 = vsel %vm4782_vm12, %v5029_v31, %v5032_v48  ;;  %v5073_v17 = vsel %vm4778_vm10, %v5071_v36, %v5072_v63  ;;  %v5256_v31 = vmax.f32 %v9716_v58, %v5252_v4  ;;  %v5441_v58 = vld [vmem:[%s10102_s5 + $0xc0] sm:$0xff]  ;;  %v5444_v63 = vld [vmem:[%s10102_s5 + $0xd8] sm:$0xff] }
 0x553   :  { %4994 = vrot.lane.b32.xlu1 %v4993_v47, %s6852_s27  ;;  %v5074_v49 = vsel %vm4780_vm11, %v5071_v36, %v5073_v17  ;;  %v5226_v21 = vrot.slane %v5219_v26, %v9726_v24  ;;  %v5146_v62 = vcombine.high %v5109_v3, %v5109_v3  ;;  %v6749_v48 = vpack.c.bf16 %v5442_v27, %v5441_v58  ;;  %v5428_v47 = vld [vmem:[%s10102_s5 + $0x58] sm:$0xff] }
 0x554   :  { %v5075_v15 = vsel %vm4782_vm12, %v5071_v36, %v5074_v49  ;;  %v5265_v40 = vadd.f32 %v9722_v9, %v5256_v31  ;;  %v6751_v29 = vpack.c.bf16 %v5426_v25, %v5425_v38  ;;  %v5432_v38 = vld [vmem:[%s10102_s5 + $0x78] sm:$0xff] }
 0x555   :  { %v5227_v13 = vcombine.high %v5226_v21, %v5226_v21 }
 0x557   :  { %5034 = vrot.lane.b32.xlu1 %v5033_v53, %s6855_s30 }
 0x558   :  { %v4720_v14 = vpop.f32.mrb[108].mxu1 }
 0x559   :  { %v4721_v16 = vadd.f32 %v9698_v52, %v4720_v14  ;;  %v4722_v37 = vpop.f32.mrb[109].mxu1  ;;  %v5440_v52 = vld [vmem:[%s10102_s5 + $0xb8] sm:$0xff] }
 0x55a   :  { %v6745_v7 = vpack.c.bf16 %v5440_v52, %v5439_v34 }
 0x55b   :  { %v5081_v50 = vmax.f32 %v9761_v2, %v4721_v16  ;;  %5076 = vrot.lane.b32.xlu1 %v5075_v15, %s6857_s11  ;;  %v5423_v2 = vld [vmem:[%s10102_s5 + $0x30] sm:$0xff] }
 0x55c   :  { %v6747_v60 = vpack.c.bf16 %v5424_v44, %v5423_v2  ;;  %6746 = vmatprep.subr.bf16.mxu1 %v6745_v7  ;;  %v5445_v44 = vld [vmem:[%s10102_s5 + $0xe0] sm:$0xff] }
 0x55d   :  { %v5085_v6 = vrot.slane %v5081_v50, 1 }
 0x55e   :  { %6748 = vmatpush3.bf16.msra.mxu1 %v6747_v60 }
 0x55f   :  { %v5089_v32 = vmax.f32 %v5081_v50, %v5085_v6  ;;  %6750 = vmatprep.subr.bf16.mxu1 %v6749_v48  ;;  %v6753_v50 = vpack.c.bf16 %v5444_v63, %v5443_v54  ;;  %v6755_v6 = vpack.c.bf16 %v5428_v47, %v5427_v30 }
 0x561   :  { %v5098_v23 = vadd.f32 %v9722_v9, %v5089_v32 }
 0x562   :  { %6752 = vmatpush3.bf16.msra.mxu1 %v6751_v29 }
 0x563   :  { %v5100_v59 = vmax.f32 %v5098_v23, 0.0  ;;  %v4725_v57 = vpop.f32.mrb[110].mxu1  ;;  %6754 = vmatprep.subr.bf16.mxu1 %v6753_v50  ;;  %v5267_v23 = vmax.f32 %v5265_v40, 0.0  ;;  %v5431_v40 = vld [vmem:[%s10102_s5 + $0x70] sm:$0xff] }
 0x564   :  { %v4726_v51 = vadd.f32 %v9700_v11, %v4725_v57  ;;  %v4727_v0 = vpop.f32.mrb[111].mxu1 }
 0x565   :  { %v5187_v55 = vcombine.high %v5100_v59, %v5100_v59  ;;  %v5153_v18 = vrot.slane %v5100_v59, %v9726_v24  ;;  %v5387_v34 = vcombine.high %v5267_v23, %v5267_v23  ;;  %v5277_v2 = vrot.slane %v5267_v23, %v9726_v24  ;;  %v5449_v23 = vld [vmem:[%s10102_s5 + $0x100] sm:$0xff] }
 0x566   :  { %6756 = vmatpush3.bf16.msra.mxu1 %v6755_v6 }
 0x567   :  { %v5154_v56 = vcombine.high %v5153_v18, %v5153_v18  ;;  %v5194_v45 = vrot.slane %v5187_v55, %v9726_v24  ;;  %v5119_v28 = vrot.slane %v5153_v18, 7  ;;  %v5394_v7 = vrot.slane %v5387_v34, %v9726_v24  ;;  %v5430_v55 = vld [vmem:[%s10102_s5 + $0x68] sm:$0xff] }
 0x568   :  { %v5314_v18 = vcombine.high %v5277_v2, %v5277_v2 }
 0x569   :  { %v5157_v61 = vrot.slane %v5154_v56, 7  ;;  %v5197_v43 = vrot.slane %v5194_v45, 7  ;;  %v5236_v35 = vcombine.high %v5194_v45, %v5194_v45  ;;  %v5120_v11 = vsel %vm4776_vm9, %v5119_v28, %v5109_v3  ;;  %v5446_v3 = vld [vmem:[%s10102_s5 + $0xe8] sm:$0xff] }
 0x56a   :  { %v5121_v36 = vsel %vm4778_vm10, %v5119_v28, %v5120_v11  ;;  %v6757_v31 = vpack.c.bf16 %v5446_v3, %v5445_v44  ;;  %v5448_v11 = vld [vmem:[%s10102_s5 + $0xf8] sm:$0xff]  ;;  %v5451_v3 = vld [vmem:[%s10102_s5 + $0x110] sm:$0xff] }
 0x56b   :  { %v5158_v46 = vsel %vm4776_vm9, %v5157_v61, %v5146_v62  ;;  %v5198_v41 = vsel %vm4776_vm9, %v5197_v43, %v5226_v21  ;;  %v5239_v33 = vrot.slane %v5236_v35, 7  ;;  %v5122_v12 = vsel %vm4780_vm11, %v5119_v28, %v5121_v36  ;;  %v5447_v35 = vld [vmem:[%s10102_s5 + $0xf0] sm:$0xff] }
 0x56c   :  { %v5159_v20 = vsel %vm4778_vm10, %v5157_v61, %v5158_v46  ;;  %v5199_v5 = vsel %vm4778_vm10, %v5197_v43, %v5198_v41  ;;  %v5123_v1 = vsel %vm4782_vm12, %v5119_v28, %v5122_v12  ;;  %6758 = vmatprep.subr.bf16.mxu1 %v6757_v31  ;;  %v6761_v12 = vpack.c.bf16 %v5448_v11, %v5447_v35  ;;  %v5454_v31 = vld [vmem:[%s10102_s5 + $0x128] sm:$0xff] }
 0x56d   :  { %v4730_v53 = vpop.f32.mrb[112].mxu1  ;;  %v5160_v17 = vsel %vm4780_vm11, %v5157_v61, %v5159_v20  ;;  %v5200_v10 = vsel %vm4780_vm11, %v5197_v43, %v5199_v5  ;;  %v5240_v49 = vsel %vm4776_vm9, %v5239_v33, %v5227_v13  ;;  %5125 = vst.msk [vmem:[#allocation4 + $0x4] sm:$0x3] %vm4785_vm13, %v5123_v1  ;;  %v6763_v5 = vpack.c.bf16 %v5432_v38, %v5431_v40  ;;  %v5474_v35 = vld [vmem:[%s10102_s5 + $0x1c8] sm:$0xff] }
 0x56e   :  { %v4731_v15 = vadd.f32 %v9702_v39, %v4730_v53  ;;  %v4732_v19 = vpop.f32.mrb[113].mxu1  ;;  %v5161_v14 = vsel %vm4782_vm12, %v5157_v61, %v5160_v17  ;;  %v5201_v16 = vsel %vm4782_vm12, %v5197_v43, %v5200_v10  ;;  %v5241_v37 = vsel %vm4778_vm10, %v5239_v33, %v5240_v49  ;;  %v5465_v53 = vld [vmem:[%s10102_s5 + $0x180] sm:$0xff]  ;;  %v5466_v17 = vld [vmem:[%s10102_s5 + $0x188] sm:$0xff] }
 0x56f   :  { %5162 = vrot.lane.b32.xlu0 %v5161_v14, %s6852_s27  ;;  %v5242_v42 = vsel %vm4780_vm11, %v5239_v33, %v5241_v37  ;;  %v5395_v61 = vcombine.high %v5394_v7, %v5394_v7  ;;  %v6765_v10 = vpack.c.bf16 %v5466_v17, %v5465_v53  ;;  %v5463_v53 = vld [vmem:[%s10102_s5 + $0x170] sm:$0xff]  ;;  %v5464_v17 = vld [vmem:[%s10102_s5 + $0x178] sm:$0xff] }
 0x570   :  { %v5249_v8 = vmax.f32 %v4726_v51, %v4731_v15  ;;  %v5243_v32 = vsel %vm4782_vm12, %v5239_v33, %v5242_v42 }
 0x572   :  { %v5253_v39 = vrot.slane %v5249_v8, 1 }
 0x573   :  { %5202 = vrot.lane.b32.xlu0 %v5201_v16, %s6855_s30 }
 0x574   :  { %v5257_v26 = vmax.f32 %v5249_v8, %v5253_v39 }
 0x576   :  { %v5266_v4 = vadd.f32 %v9722_v9, %v5257_v26  ;;  %v5429_v9 = vld [vmem:[%s10102_s5 + $0x60] sm:$0xff]  ;;  %v5450_v26 = vld [vmem:[%s10102_s5 + $0x108] sm:$0xff] }
 0x577   :  { %5244 = vrot.lane.b32.xlu0 %v5243_v32, %s6857_s11  ;;  %v6759_v21 = vpack.c.bf16 %v5430_v55, %v5429_v9  ;;  %v5452_v9 = vld [vmem:[%s10102_s5 + $0x118] sm:$0xff] }
 0x578   :  { %v5268_v52 = vmax.f32 %v5266_v4, 0.0 }
 0x579   :  { %6760 = vmatpush3.bf16.msra.mxu1 %v6759_v21  ;;  %v5471_v21 = vld [vmem:[%s10102_s5 + $0x1b0] sm:$0xff] }
 0x57a   :  { %v5355_v59 = vcombine.high %v5268_v52, %v5268_v52  ;;  %v5321_v57 = vrot.slane %v5268_v52, %v9726_v24  ;;  %6762 = vmatprep.subr.bf16.mxu1 %v6761_v12  ;;  %v5467_v52 = vld [vmem:[%s10102_s5 + $0x190] sm:$0xff]  ;;  %v5477_v12 = vld [vmem:[%s10102_s5 + $0x1e0] sm:$0xff] }
 0x57c   :  { %v5322_v51 = vcombine.high %v5321_v57, %v5321_v57  ;;  %v5362_v0 = vrot.slane %v5355_v59, %v9726_v24  ;;  %v5287_v60 = vrot.slane %v5321_v57, 7  ;;  %v6767_v57 = vpack.c.bf16 %v5450_v26, %v5449_v23  ;;  %v5995_v23 = vld [vmem:[%s10103_s6] ss:$0 sm:$0xff]  ;;  %s6863_s6 = smov [#allocation5]  }
 0x57d   :  { %6764 = vmatpush3.bf16.msra.mxu1 %v6763_v5  ;;  %v5461_v5 = vld [vmem:[%s10102_s5 + $0x160] sm:$0xff] }
 0x57e   :  { %v5325_v56 = vrot.slane %v5322_v51, 7  ;;  %v5365_v45 = vrot.slane %v5362_v0, 7  ;;  %v5404_v28 = vcombine.high %v5362_v0, %v5362_v0  ;;  %v5288_v62 = vsel %vm4776_vm9, %v5287_v60, %v5277_v2  ;;  %6766 = vmatprep.subr.bf16.mxu1 %v6765_v10  ;;  %v5468_v2 = vld [vmem:[%s10102_s5 + $0x198] sm:$0xff]  ;;  %v5469_v0 = vld [vmem:[%s10102_s5 + $0x1a0] sm:$0xff] }
 0x57f   :  { %v5289_v43 = vsel %vm4778_vm10, %v5287_v60, %v5288_v62  ;;  %v6769_v44 = vpack.c.bf16 %v5468_v2, %v5467_v52  ;;  %v5455_v62 = vld [vmem:[%s10102_s5 + $0x130] sm:$0xff]  ;;  %v6795_v10 = vpack.c.bf16 %v5464_v17, %v5463_v53 }
 0x580   :  { %v5326_v13 = vsel %vm4776_vm9, %v5325_v56, %v5314_v18  ;;  %v5366_v36 = vsel %vm4776_vm9, %v5365_v45, %v5394_v7  ;;  %v5407_v58 = vrot.slane %v5404_v28, 7  ;;  %v5290_v27 = vsel %vm4780_vm11, %v5287_v60, %v5289_v43  ;;  %v5453_v18 = vld [vmem:[%s10102_s5 + $0x120] sm:$0xff] }
 0x581   :  { %v5327_v46 = vsel %vm4778_vm10, %v5325_v56, %v5326_v13  ;;  %v5367_v41 = vsel %vm4778_vm10, %v5365_v45, %v5366_v36  ;;  %v5291_v33 = vsel %vm4782_vm12, %v5287_v60, %v5290_v27  ;;  %v5470_v60 = vld [vmem:[%s10102_s5 + $0x1a8] sm:$0xff]  ;;  %v5473_v43 = vld [vmem:[%s10102_s5 + $0x1c0] sm:$0xff]  ;;  %v5476_v27 = vld [vmem:[%s10102_s5 + $0x1d8] sm:$0xff] }
 0x582   :  { %v5328_v25 = vsel %vm4780_vm11, %v5325_v56, %v5327_v46  ;;  %v5368_v54 = vsel %vm4780_vm11, %v5365_v45, %v5367_v41  ;;  %v5408_v20 = vsel %vm4776_vm9, %v5407_v58, %v5395_v61  ;;  %5293 = vst.msk [vmem:[#allocation4 + $0x6] sm:$0x3] %vm4785_vm13, %v5291_v33  ;;  %v6773_v55 = vpack.c.bf16 %v5470_v60, %v5469_v0  ;;  %v5456_v61 = vld [vmem:[%s10102_s5 + $0x138] sm:$0xff]  ;;  %v5457_v13 = vld [vmem:[%s10102_s5 + $0x140] sm:$0xff]  ;;  %v5458_v36 = vld [vmem:[%s10102_s5 + $0x148] sm:$0xff] }
 0x583   :  { %v5329_v1 = vsel %vm4782_vm12, %v5325_v56, %v5328_v25  ;;  %v5369_v48 = vsel %vm4782_vm12, %v5365_v45, %v5368_v54  ;;  %v5409_v63 = vsel %vm4778_vm10, %v5407_v58, %v5408_v20  ;;  %v5472_v56 = vld [vmem:[%s10102_s5 + $0x1b8] sm:$0xff]  ;;  %v6775_v45 = vpack.c.bf16 %v5454_v31, %v5453_v18  ;;  %v5459_v41 = vld [vmem:[%s10102_s5 + $0x150] sm:$0xff]  ;;  %v5478_v25 = vld [vmem:[%s10102_s5 + $0x1e8] sm:$0xff] }
 0x584   :  { %5330 = vrot.lane.b32.xlu1 %v5329_v1, %s6852_s27  ;;  %v5410_v30 = vsel %vm4780_vm11, %v5407_v58, %v5409_v63  ;;  %v6777_v28 = vpack.c.bf16 %v5472_v56, %v5471_v21  ;;  %v6779_v11 = vpack.c.bf16 %v5456_v61, %v5455_v62  ;;  %v6781_v40 = vpack.c.bf16 %v5474_v35, %v5473_v43  ;;  %v5460_v33 = vld [vmem:[%s10102_s5 + $0x158] sm:$0xff]  ;;  %v5462_v1 = vld [vmem:[%s10102_s5 + $0x168] sm:$0xff] }
 0x585   :  { %v5411_v47 = vsel %vm4782_vm12, %v5407_v58, %v5410_v30  ;;  %v5475_v58 = vld [vmem:[%s10102_s5 + $0x1d0] sm:$0xff]  ;;  %v6783_v38 = vpack.c.bf16 %v5458_v36, %v5457_v13  ;;  %v6787_v54 = vpack.c.bf16 %v5460_v33, %v5459_v41  ;;  %v6789_v20 = vpack.c.bf16 %v5478_v25, %v5477_v12  ;;  %v5480_v63 = vld [vmem:[%s10102_s5 + $0x1f8] sm:$0xff] }
 0x586   :  { %v6785_v46 = vpack.c.bf16 %v5476_v27, %v5475_v58  ;;  %v6791_v30 = vpack.c.bf16 %v5462_v1, %v5461_v5 }
 0x588   :  { %5370 = vrot.lane.b32.xlu1 %v5369_v48, %s6855_s30  ;;  %v5479_v48 = vld [vmem:[%s10102_s5 + $0x1f0] sm:$0xff] }
 0x58c   :  { %5412 = vrot.lane.b32.xlu1 %v5411_v47, %s6857_s11  ;;  %v6793_v47 = vpack.c.bf16 %v5480_v63, %v5479_v48 }
 0x5a9   :  { %v4824_v49 = vpop.permute.xlu0 %4823 }
 0x5aa   :  { %4827 = vst.msk [vmem:[#allocation4] sm:$0x3] %vm4826_vm14, %v4824_v49  ;;  %v5650_v49 = vld [vmem:[%s10104_s7] sm:$0xff] }
 0x5ad   :  { %v4865_v29 = vpop.permute.xlu0 %4864 }
 0x5ae   :  { %4868 = vst.msk [vmem:[#allocation4] sm:$0x3] %vm4867_vm15, %v4865_v29  ;;  %v5651_v29 = vld [vmem:[%s10104_s7 + $0x8] sm:$0xff] }
 0x5b1   :  { %v4908_v15 = vpop.permute.xlu0 %4907 }
 0x5b2   :  { %4911 = vst.msk [vmem:[#allocation4] sm:$0x3] %vm4910_vm0, %v4908_v15  ;;  %v5652_v15 = vld [vmem:[%s10104_s7 + $0x10] sm:$0xff] }
 0x5c5   :  { %v4995_v19 = vpop.permute.xlu1 %4994 }
 0x5c6   :  { %4997 = vst.msk [vmem:[#allocation4 + $0x2] sm:$0x3] %vm4826_vm14, %v4995_v19  ;;  %v6798_v19 = vpack.c.bf16 %v5651_v29, %v5650_v49 }
 0x5c9   :  { %v5035_v14 = vpop.permute.xlu1 %5034 }
 0x5ca   :  { %5037 = vst.msk [vmem:[#allocation4 + $0x2] sm:$0x3] %vm4867_vm15, %v5035_v14  ;;  %v5653_v14 = vld [vmem:[%s10104_s7 + $0x18] sm:$0xff] }
 0x5cd   :  { %v5077_v16 = vpop.permute.xlu1 %5076 }
 0x5ce   :  { %5079 = vst.msk [vmem:[#allocation4 + $0x2] sm:$0x3] %vm4910_vm0, %v5077_v16  ;;  %v6801_v16 = vpack.c.bf16 %v5653_v14, %v5652_v15 }
 0x5e1   :  { %v5163_v37 = vpop.permute.xlu0 %5162 }
 0x5e2   :  { %5165 = vst.msk [vmem:[#allocation4 + $0x4] sm:$0x3] %vm4826_vm14, %v5163_v37  ;;  %v5654_v37 = vld [vmem:[%s10104_s7 + $0x20] sm:$0xff] }
 0x5e5   :  { %v5203_v42 = vpop.permute.xlu0 %5202 }
 0x5e6   :  { %5205 = vst.msk [vmem:[#allocation4 + $0x4] sm:$0x3] %vm4867_vm15, %v5203_v42  ;;  %v5655_v42 = vld [vmem:[%s10104_s7 + $0x28] sm:$0xff] }
 0x5e9   :  { %v5245_v50 = vpop.permute.xlu0 %5244 }
 0x5ea   :  { %5247 = vst.msk [vmem:[#allocation4 + $0x4] sm:$0x3] %vm4910_vm0, %v5245_v50  ;;  %v6804_v50 = vpack.c.bf16 %v5655_v42, %v5654_v37 }
 0x5f6   :  { %v5331_v6 = vpop.permute.xlu1 %5330 }
 0x5f7   :  { %5333 = vst.msk [vmem:[#allocation4 + $0x6] sm:$0x3] %vm4826_vm14, %v5331_v6  ;;  %v6862_v6 = vmov 0.0  }
 0x5fa   :  { %v5371_v8 = vpop.permute.xlu1 %5370 }
 0x5fb   :  { %5373 = vst.msk [vmem:[#allocation4 + $0x6] sm:$0x3] %vm4867_vm15, %v5371_v8  ;;  %v5656_v8 = vld [vmem:[%s10104_s7 + $0x30] sm:$0x3]  ;;  %s5762_s7 = sshll.u32 %s6863_s6, 4  ;;  %s5763_s7 = int_to_ptr.vmem [resolvable:$true] %s5762_s7 }
 0x5fc   :  { %p6833_p1 = scmp.lt.s32.totalorder %s5763_s7, %s5763_s7 }
 0x5fe   :  { %v5413_v32 = vpop.permute.xlu1 %5412 }
 0x5ff   :  { %5415 = vst.msk [vmem:[#allocation4 + $0x6] sm:$0x3] %vm4910_vm0, %v5413_v32 }
 0x606   :  { %v5416_v39 = vld [vmem:[#allocation4] sm:$0xff] }
 0x607   :  { %v5496_v4 = vrot.slane %v5416_v39, %v9726_v24  ;;  %v5489_v34 = vcombine.high %v5416_v39, %v5416_v39 }
 0x609   :  { %v5504_v59 = vcombine.high %v5496_v4, %v5496_v4  ;;  %v5503_v7 = vrot.slane %v5489_v34, %v9726_v24  ;;  %v6771_v24 = vpack.c.bf16 %v5452_v9, %v5451_v3 }
 0x60b   :  { %5574 = vmatprep.mubr.f32.mxu1 %v5504_v59  ;;  %v5505_v51 = vcombine.high %v5503_v7, %v5503_v7  ;;  %v5996_v59 = vld [vmem:[%s10105_s8] ss:$0 sm:$0xff]  ;;  %s6828_s8 = scalar_lea.vmem %s5763_s7, 32 }
 0x60c   :  { %5575 = vmatmul.mubr.f32.vlgmr.msra.gmra.mrb[114].mxu1 %v5496_v4  ;;  %p6829_p0 = scmp.ne.s32.totalorder %s5763_s7, %s6828_s8  ;;  %p6834_p2 = scmp.lt.s32.totalorder %s6828_s8, %s6828_s8 }
 0x60d   :  { %6768 = vmatpush3.bf16.msra.mxu1 %v6767_v57  ;;  %5644 = vmatprep.mubr.f32.mxu1 %v5505_v51 }
 0x60e   :  { %6770 = vmatprep.subr.bf16.mxu1 %v6769_v44  ;;  %p6835_p3 = por %p6834_p2, %p6833_p1 }
 0x610   :  { %p6836_p4 = pnand %p6835_p3, %p6829_p0 }
 0x611   :  { %6772 = vmatpush3.bf16.msra.mxu1 %v6771_v24 }
 0x612   :  { %6774 = vmatprep.subr.bf16.mxu1 %v6773_v55 }
 0x615   :  { %6776 = vmatpush3.bf16.msra.mxu1 %v6775_v45 }
 0x616   :  { %6778 = vmatprep.subr.bf16.mxu1 %v6777_v28 }
 0x619   :  { %6780 = vmatpush3.bf16.msra.mxu1 %v6779_v11 }
 0x61a   :  { %6782 = vmatprep.subr.bf16.mxu1 %v6781_v40 }
 0x61d   :  { %6784 = vmatpush3.bf16.msra.mxu1 %v6783_v38 }
 0x61e   :  { %6786 = vmatprep.subr.bf16.mxu1 %v6785_v46 }
 0x621   :  { %6788 = vmatpush3.bf16.msra.mxu1 %v6787_v54 }
 0x622   :  { %6790 = vmatprep.subr.bf16.mxu1 %v6789_v20 }
 0x625   :  { %6792 = vmatpush3.bf16.msra.mxu1 %v6791_v30 }
 0x626   :  { %6794 = vmatprep.subr.bf16.mxu1 %v6793_v47 }
 0x629   :  { %6796 = vmatpush3.bf16.msra.mxu1 %v6795_v10 }
 0x62a   :  { %6797 = vmatprep.subr.bf16.mxu1 %v6859_v22 }
 0x62c   :  { %5645 = vmatmul.mubr.f32.vlgmr.msra.gmra.mrb[116].mxu1 %v5503_v7 }
 0x62d   :  { %6799 = vmatpush3.bf16.msra.mxu1 %v6798_v19  ;;  %6663 = vmatprep.mubr.msk.f32.mxu1 %vm6861_vm1, %v6862_v6 }
 0x62e   :  { %6800 = vmatprep.subr.bf16.mxu1 %v6859_v22 }
 0x631   :  { %6802 = vmatpush3.bf16.msra.mxu1 %v6801_v16 }
 0x632   :  { %6803 = vmatprep.subr.bf16.mxu1 %v6859_v22 }
 0x635   :  { %6805 = vmatpush3.bf16.msra.mxu1 %v6804_v50 }
 0x636   :  { %6661 = vmatprep.subr.mxu1 %v6862_v6 }
 0x639   :  { %6662 = vmatpush3.msk.msra.mxu1 %vm5668_vm2, %v5656_v8 }
 0x6df   :  { %v6307_v22 = vpop.f32.mrb[114].mxu1 }
 0x6e0   :  { %v6308_v32 = vpop.f32.mrb[115].mxu1 }
 0x6e1   :  { %v6309_v39 = vadd.f32 %v6308_v32, %v6307_v22 }
 0x6e3   :  { %v5577_v34 = vadd.f32 %v6309_v39, %v5995_v23 }
 0x6ff   :  { %v6342_v26 = vpop.f32.mrb[116].mxu1 }
 0x700   :  { %v6343_v4 = vpop.f32.mrb[117].mxu1 }
 0x701   :  { %v6344_v52 = vadd.f32 %v6343_v4, %v6342_v26 }
 0x703   :  { %v5647_v2 = vadd.f32 %v6344_v52, %v5577_v34 }
 0x705   :  { %6664 = vmatmul.mubr.msk.f32.vlgmr.msra.gmra.mrb[118].mxu1 %vm5664_vm3, %v5647_v2 }
 0x7d8   :  { %v5738_v57 = vpop.f32.mrb[118].mxu1 }
 0x7d9   :  { %v5739_v7 = vadd.f32 %v5996_v59, %v5738_v57  ;;  %v6665_v44 = vpop.f32.mrb[119].mxu1 }
 0x7db   :  { %v5743_v3 = vsel %vm5742_vm4, %v5739_v7, -inf }
 0x7dc   :  { %5744 = vmax.xlane.f32.xlu0 %v5743_v3 }
 0x869   :  { %v5745_v9 = vpop.xlane.xlu0 %5744 }
 0x86a   :  { %v5746_v51 = vsub.f32 %v5739_v7, %v5745_v9 }
 0x86c   :  { %v5747_v0 = vmul.f32 1.442695, %v5746_v51 }
 0x86e   :  { %6823 = vpow2.f32 %v5747_v0 }
 0x878   :  { %v6824_v60 = vpop.eup %6823 }
 0x879   :  { %v5749_v24 = vsel %vm5742_vm4, %v6824_v60, 0.0 }
 0x87a   :  { %5750 = vadd.xlane.f32.xlu1 %v5749_v24 }
 0x907   :  { %v5751_v55 = vpop.xlane.xlu1 %5750 }
 0x908   :  { %6825 = vlog2.f32 %v5751_v55 }
 0x912   :  { %v6826_v18 = vpop.eup %6825 }
 0x913   :  { %v5753_v31 = vmul.f32 0.6931472, %v6826_v18 }
 0x915   :  { %v5754_v21 = vsub.f32 %v5746_v51, %v5753_v31 }
 0x917   :  { %5755 = vst.msk [vmem:[#allocation5] sm:$0x3] %vm5742_vm4, %v5754_v21 }
 0x918   :  { %6839 = shalt.err (!%p6836_p4)
}
 0x919   :  { %s6840_s30 = scalar_lea.hbm %s10106_s9, 32 }
 0x91a   :  { %p6841_p5 = scmp.ne.s32.totalorder %s10106_s9, %s6840_s30  ;;  %p6844_p6 = scmp.lt.u32.totalorder %s6840_s30, %s10106_s9 }
 0x91c   :  { %p6846_p7 = pnand %p6844_p6, %p6841_p5 }
 0x91e   :  { %6849 = shalt.err (!%p6846_p7)
}
 0x91f   :  { %5765 = dma.vmem_to_hbm [thread:$0]  %s5763_s7, 32, %s10106_s9, [#allocation6]  }
 0x920   :  { %6850 = dma.done.wait [#allocation6], 32  }
 0x921   :  { %6851 = vsyncadd [#allocation6], 4294967264 }
 0x922   :  { %5769 = vsyncpa [#allocation6], 1 }

</bundles_post_ra>
